<compile_context>
chip_gen: v7x
topology: tpu7x:2x2x1
jax: 0.10.0
libtpu: 0.0.40
codegen_flags: <defaults>
</compile_context>

<pallas_src>
import jax
import jax.numpy as jnp
from jax.experimental import pallas as pl
from jax.experimental.pallas import tpu as pltpu

# True model dims (PyTorch Linear chain).
DIMS = (1024, 512, 256, 128, 64, 10)
# Lane-dense internal dims: 64 -> 128 and 10 -> 128 (zero-padded, exact result).
PAD_DIMS = (1024, 512, 256, 128, 128, 128)

TM_MAX = 1024    # max batch-tile rows per grid step
TM_ALIGN = 256   # multiple of 256 (v6e/v7x MXU rows) and 128 (v5e)


def _round_up(n, m):
    return ((n + m - 1) // m) * m


def _choose_tm(batch):
    """Right-size the batch tile; guarantee >=2 grid steps for large batches
    so the parallel batch axis shards across v7x's two TensorCores."""
    tm = min(TM_MAX, _round_up(max(batch, 1), TM_ALIGN))
    if batch > TM_ALIGN and pl.cdiv(_round_up(batch, TM_ALIGN), tm) < 2:
        tm = max(TM_ALIGN, _round_up(pl.cdiv(batch, 2), TM_ALIGN))
    return tm


def mlp_kernel(x_ref,
               w1_ref, b1_ref,
               w2_ref, b2_ref,
               w3_ref, b3_ref,
               w4_ref, b4_ref,
               w5_ref, b5_ref,
               o_ref):
    """Whole forward pass for one batch tile, fused in VMEM.

    x arrives f32 and is cast to bf16 in-kernel; matmuls run bf16 on the MXU
    with f32 accumulation; bias add + ReLU in f32; recast to bf16 per layer.
    """
    h = x_ref[...].astype(jnp.bfloat16)                                   # (TM, 1024)

    a = jnp.dot(h, w1_ref[...], preferred_element_type=jnp.float32) + b1_ref[...]
    h = jnp.maximum(a, 0.0).astype(jnp.bfloat16)                          # (TM, 512)

    a = jnp.dot(h, w2_ref[...], preferred_element_type=jnp.float32) + b2_ref[...]
    h = jnp.maximum(a, 0.0).astype(jnp.bfloat16)                          # (TM, 256)

    a = jnp.dot(h, w3_ref[...], preferred_element_type=jnp.float32) + b3_ref[...]
    h = jnp.maximum(a, 0.0).astype(jnp.bfloat16)                          # (TM, 128)

    a = jnp.dot(h, w4_ref[...], preferred_element_type=jnp.float32) + b4_ref[...]
    h = jnp.maximum(a, 0.0).astype(jnp.bfloat16)                          # (TM, 128) lanes[64:]=0

    # Final layer (no activation); eval-mode dropout == identity.
    o_ref[...] = jnp.dot(h, w5_ref[...], preferred_element_type=jnp.float32) + b5_ref[...]


def _invariant_spec(shape):
    """Constant-index-map spec for VMEM-resident weights/biases, single-buffered."""
    if hasattr(pl, "Buffered"):
        return pl.BlockSpec(shape, lambda i: (0, 0), pipeline_mode=pl.Buffered(1))
    return pl.BlockSpec(shape, lambda i: (0, 0))


@jax.jit
def server_model_forward(x, params):
    """x: (B, 1024) float32. params: list of 5 (W_(in,out), b_(1,out)) f32 pairs
    (PyTorch Linear weights transposed to (in, out))."""
    B = x.shape[0]
    tm = _choose_tm(B)
    nb = pl.cdiv(B, tm)
    b_pad = nb * tm

    # Pad batch only when needed; keep f32 (bf16 cast happens in-kernel).
    if b_pad != B:
        x = jnp.pad(x, ((0, b_pad - B), (0, 0)))

    # Weights -> bf16, biases stay f32; zero-pad layers 4/5 to lane-dense 128.
    flat = []
    for l, (w, b) in enumerate(params):
        d_in, d_out = DIMS[l], DIMS[l + 1]
        d_in_p, d_out_p = PAD_DIMS[l], PAD_DIMS[l + 1]
        w = w.astype(jnp.bfloat16)
        b = b.astype(jnp.float32).reshape(1, d_out)
        if (d_in_p, d_out_p) != (d_in, d_out):
            w = jnp.pad(w, ((0, d_in_p - d_in), (0, d_out_p - d_out)))
            b = jnp.pad(b, ((0, 0), (0, d_out_p - d_out)))
        flat.extend([w, b])

    # BlockSpecs: x/out tiled over batch; weights/biases whole-array resident.
    in_specs = [pl.BlockSpec((tm, PAD_DIMS[0]), lambda i: (i, 0))]
    for l in range(5):
        d_in_p, d_out_p = PAD_DIMS[l], PAD_DIMS[l + 1]
        in_specs.append(_invariant_spec((d_in_p, d_out_p)))
        in_specs.append(_invariant_spec((1, d_out_p)))

    out_spec = pl.BlockSpec((tm, PAD_DIMS[-1]), lambda i: (i, 0))

    flops = 2 * b_pad * sum(PAD_DIMS[l] * PAD_DIMS[l + 1] for l in range(5))
    bytes_accessed = (
        b_pad * PAD_DIMS[0] * 4                      # x (f32 in)
        + b_pad * PAD_DIMS[-1] * 4                   # padded output (f32)
        + sum(PAD_DIMS[l] * PAD_DIMS[l + 1] * 2      # bf16 weights
              + PAD_DIMS[l + 1] * 4                  # f32 biases
              for l in range(5))
    )

    out_padded = pl.pallas_call(
        mlp_kernel,
        out_shape=jax.ShapeDtypeStruct((b_pad, PAD_DIMS[-1]), jnp.float32),
        grid_spec=pltpu.PrefetchScalarGridSpec(
            num_scalar_prefetch=0,
            grid=(nb,),
            in_specs=in_specs,
            out_specs=out_spec,
        ),
        compiler_params=pltpu.CompilerParams(
            dimension_semantics=("parallel",),
            vmem_limit_bytes=48 * 1024 * 1024,
        ),
        cost_estimate=pl.CostEstimate(
            flops=flops, transcendentals=0, bytes_accessed=bytes_accessed),
    )(x, *flat)

    # Drop batch padding and the padded output lanes.
    return out_padded[:B, :DIMS[-1]]


def init_params(key):
    """Deterministic init mimicking PyTorch Linear default (U[-1/sqrt(in), 1/sqrt(in)]).
    Weights stored transposed as (in, out); biases as (1, out); both f32."""
    params = []
    for l in range(5):
        d_in, d_out = DIMS[l], DIMS[l + 1]
        key, kw, kb = jax.random.split(key, 3)
        bound = 1.0 / jnp.sqrt(jnp.float32(d_in))
        w = jax.random.uniform(kw, (d_in, d_out), jnp.float32, -bound, bound)
        b = jax.random.uniform(kb, (1, d_out), jnp.float32, -bound, bound)
        params.append((w, b))
    return params


def reference_forward(x, params):
    """Pure-JAX reference matching the kernel's bf16-in / f32-accumulate math."""
    h = x.astype(jnp.bfloat16)
    for l, (w, b) in enumerate(params):
        a = jnp.dot(h, w.astype(jnp.bfloat16),
                    preferred_element_type=jnp.float32) + b.astype(jnp.float32)
        if l < 4:
            h = jnp.maximum(a, 0.0).astype(jnp.bfloat16)
        else:
            h = a
    return h


if __name__ == "__main__":
    key = jax.random.PRNGKey(0)
    key, kx = jax.random.split(key)

    B = 4  # small demo batch; wrapper right-sizes the tile and pads internally
    x = jax.random.normal(kx, (B, DIMS[0]), jnp.float32)
    params = init_params(key)

    out = server_model_forward(x, params)
    out = jax.block_until_ready(out)
    assert out.shape == (B, DIMS[-1]), out.shape

    ref = reference_forward(x, params)
    assert jnp.allclose(out, ref, atol=2e-2, rtol=2e-2), "mismatch vs reference"

    print("KERNEL_OK")
</pallas_src>

<mosaic_0001>
module attributes {stable_mosaic.version = 11 : i64} {
  func.func @mlp_kernel(%arg0: i32, %arg1: memref<256x1024xf32, #tpu.memory_space<vmem>>, %arg2: memref<1024x512xbf16, #tpu.memory_space<vmem>>, %arg3: memref<1x512xf32, #tpu.memory_space<vmem>>, %arg4: memref<512x256xbf16, #tpu.memory_space<vmem>>, %arg5: memref<1x256xf32, #tpu.memory_space<vmem>>, %arg6: memref<256x128xbf16, #tpu.memory_space<vmem>>, %arg7: memref<1x128xf32, #tpu.memory_space<vmem>>, %arg8: memref<128x128xbf16, #tpu.memory_space<vmem>>, %arg9: memref<1x128xf32, #tpu.memory_space<vmem>>, %arg10: memref<128x128xbf16, #tpu.memory_space<vmem>>, %arg11: memref<1x128xf32, #tpu.memory_space<vmem>>, %arg12: memref<256x128xf32, #tpu.memory_space<vmem>>) attributes {dimension_semantics = [#tpu.dimension_semantics<parallel>], iteration_bounds = array<i64: 1>, scalar_prefetch = 0 : i64, scratch_operands = 0 : i64, tpu.core_type = #tpu.core_type<tc>, window_params = [{transform_indices = @transform_0, window_bounds = array<i64: 256, 1024>}, {pipeline_mode = #tpu.pipeline_mode<synchronous>, transform_indices = @transform_1, window_bounds = array<i64: 1024, 512>}, {pipeline_mode = #tpu.pipeline_mode<synchronous>, transform_indices = @transform_2, window_bounds = array<i64: 1, 512>}, {pipeline_mode = #tpu.pipeline_mode<synchronous>, transform_indices = @transform_3, window_bounds = array<i64: 512, 256>}, {pipeline_mode = #tpu.pipeline_mode<synchronous>, transform_indices = @transform_4, window_bounds = array<i64: 1, 256>}, {pipeline_mode = #tpu.pipeline_mode<synchronous>, transform_indices = @transform_5, window_bounds = array<i64: 256, 128>}, {pipeline_mode = #tpu.pipeline_mode<synchronous>, transform_indices = @transform_6, window_bounds = array<i64: 1, 128>}, {pipeline_mode = #tpu.pipeline_mode<synchronous>, transform_indices = @transform_7, window_bounds = array<i64: 128, 128>}, {pipeline_mode = #tpu.pipeline_mode<synchronous>, transform_indices = @transform_8, window_bounds = array<i64: 1, 128>}, {pipeline_mode = #tpu.pipeline_mode<synchronous>, transform_indices = @transform_9, window_bounds = array<i64: 128, 128>}, {pipeline_mode = #tpu.pipeline_mode<synchronous>, transform_indices = @transform_10, window_bounds = array<i64: 1, 128>}, {transform_indices = @transform_11, window_bounds = array<i64: 256, 128>}]} {
    %c0 = arith.constant 0 : index
    %c0_0 = arith.constant 0 : index
    %0 = vector.load %arg1[%c0, %c0_0] : memref<256x1024xf32, #tpu.memory_space<vmem>>, vector<256x1024xf32>
    %1 = arith.truncf %0 : vector<256x1024xf32> to vector<256x1024xbf16>
    %c0_1 = arith.constant 0 : index
    %c0_2 = arith.constant 0 : index
    %2 = vector.load %arg2[%c0_1, %c0_2] : memref<1024x512xbf16, #tpu.memory_space<vmem>>, vector<1024x512xbf16>
    %cst = arith.constant dense<0.000000e+00> : vector<256x512xf32>
    %3 = tpu.matmul %1, %2, %cst {dimension_numbers = #tpu.dot_dimension_numbers<[1], [0], [0], [1], [0, 0, 1, 1], [], []>} : vector<256x1024xbf16>, vector<1024x512xbf16>, vector<256x512xf32> -> vector<256x512xf32>
    %c0_3 = arith.constant 0 : index
    %c0_4 = arith.constant 0 : index
    %4 = vector.load %arg3[%c0_3, %c0_4] : memref<1x512xf32, #tpu.memory_space<vmem>>, vector<1x512xf32>
    %5 = vector.broadcast %4 : vector<1x512xf32> to vector<256x512xf32>
    %6 = arith.addf %3, %5 : vector<256x512xf32>
    %cst_5 = arith.constant 0.000000e+00 : f32
    %7 = vector.broadcast %cst_5 : f32 to vector<256x512xf32>
    %8 = arith.maximumf %6, %7 : vector<256x512xf32>
    %9 = arith.truncf %8 : vector<256x512xf32> to vector<256x512xbf16>
    %c0_6 = arith.constant 0 : index
    %c0_7 = arith.constant 0 : index
    %10 = vector.load %arg4[%c0_6, %c0_7] : memref<512x256xbf16, #tpu.memory_space<vmem>>, vector<512x256xbf16>
    %cst_8 = arith.constant dense<0.000000e+00> : vector<256x256xf32>
    %11 = tpu.matmul %9, %10, %cst_8 {dimension_numbers = #tpu.dot_dimension_numbers<[1], [0], [0], [1], [0, 0, 1, 1], [], []>} : vector<256x512xbf16>, vector<512x256xbf16>, vector<256x256xf32> -> vector<256x256xf32>
    %c0_9 = arith.constant 0 : index
    %c0_10 = arith.constant 0 : index
    %12 = vector.load %arg5[%c0_9, %c0_10] : memref<1x256xf32, #tpu.memory_space<vmem>>, vector<1x256xf32>
    %13 = vector.broadcast %12 : vector<1x256xf32> to vector<256x256xf32>
    %14 = arith.addf %11, %13 : vector<256x256xf32>
    %cst_11 = arith.constant 0.000000e+00 : f32
    %15 = vector.broadcast %cst_11 : f32 to vector<256x256xf32>
    %16 = arith.maximumf %14, %15 : vector<256x256xf32>
    %17 = arith.truncf %16 : vector<256x256xf32> to vector<256x256xbf16>
    %c0_12 = arith.constant 0 : index
    %c0_13 = arith.constant 0 : index
    %18 = vector.load %arg6[%c0_12, %c0_13] : memref<256x128xbf16, #tpu.memory_space<vmem>>, vector<256x128xbf16>
    %cst_14 = arith.constant dense<0.000000e+00> : vector<256x128xf32>
    %19 = tpu.matmul %17, %18, %cst_14 {dimension_numbers = #tpu.dot_dimension_numbers<[1], [0], [0], [1], [0, 0, 1, 1], [], []>} : vector<256x256xbf16>, vector<256x128xbf16>, vector<256x128xf32> -> vector<256x128xf32>
    %c0_15 = arith.constant 0 : index
    %c0_16 = arith.constant 0 : index
    %20 = vector.load %arg7[%c0_15, %c0_16] : memref<1x128xf32, #tpu.memory_space<vmem>>, vector<1x128xf32>
    %21 = vector.broadcast %20 : vector<1x128xf32> to vector<256x128xf32>
    %22 = arith.addf %19, %21 : vector<256x128xf32>
    %cst_17 = arith.constant 0.000000e+00 : f32
    %23 = vector.broadcast %cst_17 : f32 to vector<256x128xf32>
    %24 = arith.maximumf %22, %23 : vector<256x128xf32>
    %25 = arith.truncf %24 : vector<256x128xf32> to vector<256x128xbf16>
    %c0_18 = arith.constant 0 : index
    %c0_19 = arith.constant 0 : index
    %26 = vector.load %arg8[%c0_18, %c0_19] : memref<128x128xbf16, #tpu.memory_space<vmem>>, vector<128x128xbf16>
    %cst_20 = arith.constant dense<0.000000e+00> : vector<256x128xf32>
    %27 = tpu.matmul %25, %26, %cst_20 {dimension_numbers = #tpu.dot_dimension_numbers<[1], [0], [0], [1], [0, 0, 1, 1], [], []>} : vector<256x128xbf16>, vector<128x128xbf16>, vector<256x128xf32> -> vector<256x128xf32>
    %c0_21 = arith.constant 0 : index
    %c0_22 = arith.constant 0 : index
    %28 = vector.load %arg9[%c0_21, %c0_22] : memref<1x128xf32, #tpu.memory_space<vmem>>, vector<1x128xf32>
    %29 = vector.broadcast %28 : vector<1x128xf32> to vector<256x128xf32>
    %30 = arith.addf %27, %29 : vector<256x128xf32>
    %cst_23 = arith.constant 0.000000e+00 : f32
    %31 = vector.broadcast %cst_23 : f32 to vector<256x128xf32>
    %32 = arith.maximumf %30, %31 : vector<256x128xf32>
    %33 = arith.truncf %32 : vector<256x128xf32> to vector<256x128xbf16>
    %c0_24 = arith.constant 0 : index
    %c0_25 = arith.constant 0 : index
    %34 = vector.load %arg10[%c0_24, %c0_25] : memref<128x128xbf16, #tpu.memory_space<vmem>>, vector<128x128xbf16>
    %cst_26 = arith.constant dense<0.000000e+00> : vector<256x128xf32>
    %35 = tpu.matmul %33, %34, %cst_26 {dimension_numbers = #tpu.dot_dimension_numbers<[1], [0], [0], [1], [0, 0, 1, 1], [], []>} : vector<256x128xbf16>, vector<128x128xbf16>, vector<256x128xf32> -> vector<256x128xf32>
    %c0_27 = arith.constant 0 : index
    %c0_28 = arith.constant 0 : index
    %36 = vector.load %arg11[%c0_27, %c0_28] : memref<1x128xf32, #tpu.memory_space<vmem>>, vector<1x128xf32>
    %37 = vector.broadcast %36 : vector<1x128xf32> to vector<256x128xf32>
    %38 = arith.addf %35, %37 : vector<256x128xf32>
    %c0_29 = arith.constant 0 : index
    %c0_30 = arith.constant 0 : index
    %39 = vector.load %arg12[%c0_29, %c0_30] : memref<256x128xf32, #tpu.memory_space<vmem>>, vector<256x128xf32>
    tpu.vector_store %arg12[%c0_29, %c0_30], %38 {strides = array<i32>} : memref<256x128xf32, #tpu.memory_space<vmem>>, vector<256x128xf32>,
    return
  }
  func.func @transform_0(%arg0: i32) -> (i32, i32) {
    %c0_i32 = arith.constant 0 : i32
    %c0_i32_0 = arith.constant 0 : i32
    return %arg0, %c0_i32 : i32, i32
  }
  func.func @transform_1(%arg0: i32) -> (i32, i32) {
    %c0_i32 = arith.constant 0 : i32
    %c0_i32_0 = arith.constant 0 : i32
    %c0_i32_1 = arith.constant 0 : i32
    return %c0_i32, %c0_i32_0 : i32, i32
  }
  func.func @transform_2(%arg0: i32) -> (i32, i32) {
    %c0_i32 = arith.constant 0 : i32
    %c0_i32_0 = arith.constant 0 : i32
    %c0_i32_1 = arith.constant 0 : i32
    return %c0_i32, %c0_i32_0 : i32, i32
  }
  func.func @transform_3(%arg0: i32) -> (i32, i32) {
    %c0_i32 = arith.constant 0 : i32
    %c0_i32_0 = arith.constant 0 : i32
    %c0_i32_1 = arith.constant 0 : i32
    return %c0_i32, %c0_i32_0 : i32, i32
  }
  func.func @transform_4(%arg0: i32) -> (i32, i32) {
    %c0_i32 = arith.constant 0 : i32
    %c0_i32_0 = arith.constant 0 : i32
    %c0_i32_1 = arith.constant 0 : i32
    return %c0_i32, %c0_i32_0 : i32, i32
  }
  func.func @transform_5(%arg0: i32) -> (i32, i32) {
    %c0_i32 = arith.constant 0 : i32
    %c0_i32_0 = arith.constant 0 : i32
    %c0_i32_1 = arith.constant 0 : i32
    return %c0_i32, %c0_i32_0 : i32, i32
  }
  func.func @transform_6(%arg0: i32) -> (i32, i32) {
    %c0_i32 = arith.constant 0 : i32
    %c0_i32_0 = arith.constant 0 : i32
    %c0_i32_1 = arith.constant 0 : i32
    return %c0_i32, %c0_i32_0 : i32, i32
  }
  func.func @transform_7(%arg0: i32) -> (i32, i32) {
    %c0_i32 = arith.constant 0 : i32
    %c0_i32_0 = arith.constant 0 : i32
    %c0_i32_1 = arith.constant 0 : i32
    return %c0_i32, %c0_i32_0 : i32, i32
  }
  func.func @transform_8(%arg0: i32) -> (i32, i32) {
    %c0_i32 = arith.constant 0 : i32
    %c0_i32_0 = arith.constant 0 : i32
    %c0_i32_1 = arith.constant 0 : i32
    return %c0_i32, %c0_i32_0 : i32, i32
  }
  func.func @transform_9(%arg0: i32) -> (i32, i32) {
    %c0_i32 = arith.constant 0 : i32
    %c0_i32_0 = arith.constant 0 : i32
    %c0_i32_1 = arith.constant 0 : i32
    return %c0_i32, %c0_i32_0 : i32, i32
  }
  func.func @transform_10(%arg0: i32) -> (i32, i32) {
    %c0_i32 = arith.constant 0 : i32
    %c0_i32_0 = arith.constant 0 : i32
    %c0_i32_1 = arith.constant 0 : i32
    return %c0_i32, %c0_i32_0 : i32, i32
  }
  func.func @transform_11(%arg0: i32) -> (i32, i32) {
    %c0_i32 = arith.constant 0 : i32
    %c0_i32_0 = arith.constant 0 : i32
    return %arg0, %c0_i32 : i32, i32
  }
}

</mosaic_0001>

<bundles_post_ra>
// kernel: server_model_forward.1
= control target key start
LH: loop header
LB: loop body
LE: loop exit
PB: predicated region body
PF: predicated region fallthrough
CT: control target
= control target key end

     0   :  { %s9655_s1 = inlined_call_operand.vmem [shape: bf16[1024,512], index: 1, kind: input, shape index: {}]   ;;  %s9656_s0 = inlined_call_operand.vmem [shape: f32[256,1024], index: 0, kind: input, shape index: {}]   ;;  %s9657_s3 = inlined_call_operand.vmem [shape: bf16[512,256], index: 3, kind: input, shape index: {}]   ;;  %s9658_s2 = inlined_call_operand.vmem [shape: f32[1,512], index: 2, kind: input, shape index: {}]   ;;  %s9659_s5 = inlined_call_operand.vmem [shape: bf16[256,128], index: 5, kind: input, shape index: {}]   ;;  %s9660_s4 = inlined_call_operand.vmem [shape: f32[1,256], index: 4, kind: input, shape index: {}]   ;;  %s9661_s7 = inlined_call_operand.vmem [shape: bf16[128,128], index: 7, kind: input, shape index: {}]   ;;  %s9662_s6 = inlined_call_operand.vmem [shape: f32[1,128], index: 6, kind: input, shape index: {}]   ;;  %s9663_s9 = inlined_call_operand.vmem [shape: bf16[128,128], index: 9, kind: input, shape index: {}]   ;;  %s9664_s8 = inlined_call_operand.vmem [shape: f32[1,128], index: 8, kind: input, shape index: {}]   ;;  %s9665_s10 = inlined_call_operand.vmem [shape: f32[1,128], index: 10, kind: input, shape index: {}]   ;;  %s9666_s11 = inlined_call_operand.vmem [shape: f32[256,128], index: 11, kind: output, shape index: {}]  }
   0x1   :  { %v6738_v0 = vld [vmem:[%s9655_s1 + $0x4] ss:$16 sps:$4 sm:$0xff]   ;;  %v6740_v1 = vld [vmem:[%s9655_s1 + $0xc] ss:$16 sps:$4 sm:$0xff]   ;;  %v6742_v2 = vld [vmem:[%s9655_s1] ss:$16 sps:$4 sm:$0xff]  }
   0x2   :  { %1981 = vmatprep.subr.bf16.mxu0 %v6738_v0  ;;  %v6743_v3 = vld [vmem:[%s9655_s1 + $0x8] ss:$16 sps:$4 sm:$0xff]   ;;  %2753 = vmatprep.subr.bf16.mxu1 %v6740_v1  ;;  %v6744_v4 = vld [vmem:[%s9655_s1 + $0x24] ss:$16 sps:$4 sm:$0xff]   ;;  %v6746_v5 = vld [vmem:[%s9655_s1 + $0x2c] ss:$16 sps:$4 sm:$0xff]  }
   0x3   :  { %1982 = vmatpush1.bf16.msra.mxu0 %v6742_v2  ;;  %2754 = vmatpush1.bf16.msra.mxu1 %v6743_v3  ;;  %v6748_v6 = vld [vmem:[%s9655_s1 + $0x20] ss:$16 sps:$4 sm:$0xff]   ;;  %v6749_v7 = vld [vmem:[%s9655_s1 + $0x28] ss:$16 sps:$4 sm:$0xff]   ;;  %v6750_v8 = vld [vmem:[%s9655_s1 + $0x44] ss:$16 sps:$4 sm:$0xff]  }
   0x4   :  { %1983 = vmatprep.subr.bf16.mxu0 %v6744_v4  ;;  %2755 = vmatprep.subr.bf16.mxu1 %v6746_v5  ;;  %v6752_v9 = vld [vmem:[%s9655_s1 + $0x4c] ss:$16 sps:$4 sm:$0xff]   ;;  %v6754_v10 = vld [vmem:[%s9655_s1 + $0x40] ss:$16 sps:$4 sm:$0xff]   ;;  %v6755_v11 = vld [vmem:[%s9655_s1 + $0x48] ss:$16 sps:$4 sm:$0xff]  }
   0x5   :  { %v6756_v12 = vld [vmem:[%s9655_s1 + $0x64] ss:$16 sps:$4 sm:$0xff]   ;;  %v6758_v13 = vld [vmem:[%s9655_s1 + $0x6c] ss:$16 sps:$4 sm:$0xff]   ;;  %v6760_v14 = vld [vmem:[%s9655_s1 + $0x60] ss:$16 sps:$4 sm:$0xff]  }
   0x6   :  { %v6761_v15 = vld [vmem:[%s9655_s1 + $0x68] ss:$16 sps:$4 sm:$0xff]   ;;  %v6762_v16 = vld [vmem:[%s9655_s1 + $0x84] ss:$16 sps:$4 sm:$0xff]   ;;  %v6764_v17 = vld [vmem:[%s9655_s1 + $0x8c] ss:$16 sps:$4 sm:$0xff]  }
   0x7   :  { %1984 = vmatpush1.bf16.msra.mxu0 %v6748_v6  ;;  %2756 = vmatpush1.bf16.msra.mxu1 %v6749_v7  ;;  %v6766_v18 = vld [vmem:[%s9655_s1 + $0x80] ss:$16 sps:$4 sm:$0xff]   ;;  %v6767_v19 = vld [vmem:[%s9655_s1 + $0x88] ss:$16 sps:$4 sm:$0xff]   ;;  %v6768_v20 = vld [vmem:[%s9655_s1 + $0xa4] ss:$16 sps:$4 sm:$0xff]  }
   0x8   :  { %1985 = vmatprep.subr.bf16.mxu0 %v6750_v8  ;;  %2757 = vmatprep.subr.bf16.mxu1 %v6752_v9  ;;  %v6770_v21 = vld [vmem:[%s9655_s1 + $0xac] ss:$16 sps:$4 sm:$0xff]   ;;  %v6772_v22 = vld [vmem:[%s9655_s1 + $0xa0] ss:$16 sps:$4 sm:$0xff]   ;;  %v6773_v23 = vld [vmem:[%s9655_s1 + $0xa8] ss:$16 sps:$4 sm:$0xff]  }
   0x9   :  { %v6774_v24 = vld [vmem:[%s9655_s1 + $0xc4] ss:$16 sps:$4 sm:$0xff]   ;;  %v6776_v25 = vld [vmem:[%s9655_s1 + $0xcc] ss:$16 sps:$4 sm:$0xff]   ;;  %v6778_v26 = vld [vmem:[%s9655_s1 + $0xc0] ss:$16 sps:$4 sm:$0xff]  }
   0xa   :  { %v6779_v27 = vld [vmem:[%s9655_s1 + $0xc8] ss:$16 sps:$4 sm:$0xff]   ;;  %v6780_v28 = vld [vmem:[%s9655_s1 + $0xe4] ss:$16 sps:$4 sm:$0xff]   ;;  %v6782_v29 = vld [vmem:[%s9655_s1 + $0xec] ss:$16 sps:$4 sm:$0xff]  }
   0xb   :  { %1986 = vmatpush1.bf16.msra.mxu0 %v6754_v10  ;;  %2758 = vmatpush1.bf16.msra.mxu1 %v6755_v11  ;;  %v6784_v30 = vld [vmem:[%s9655_s1 + $0xe0] ss:$16 sps:$4 sm:$0xff]   ;;  %v6785_v31 = vld [vmem:[%s9655_s1 + $0xe8] ss:$16 sps:$4 sm:$0xff]   ;;  %v6786_v32 = vld [vmem:[%s9655_s1 + $0x104] ss:$16 sps:$4 sm:$0xff]  }
   0xc   :  { %1987 = vmatprep.subr.bf16.mxu0 %v6756_v12  ;;  %2759 = vmatprep.subr.bf16.mxu1 %v6758_v13  ;;  %v6788_v33 = vld [vmem:[%s9655_s1 + $0x10c] ss:$16 sps:$4 sm:$0xff]   ;;  %v6790_v34 = vld [vmem:[%s9655_s1 + $0x100] ss:$16 sps:$4 sm:$0xff]   ;;  %v6791_v35 = vld [vmem:[%s9655_s1 + $0x108] ss:$16 sps:$4 sm:$0xff]  }
   0xd   :  { %v6792_v36 = vld [vmem:[%s9655_s1 + $0x124] ss:$16 sps:$4 sm:$0xff]   ;;  %v6794_v37 = vld [vmem:[%s9655_s1 + $0x12c] ss:$16 sps:$4 sm:$0xff]   ;;  %v6796_v38 = vld [vmem:[%s9655_s1 + $0x120] ss:$16 sps:$4 sm:$0xff]  }
   0xe   :  { %v6797_v39 = vld [vmem:[%s9655_s1 + $0x128] ss:$16 sps:$4 sm:$0xff]   ;;  %v6798_v40 = vld [vmem:[%s9655_s1 + $0x144] ss:$16 sps:$4 sm:$0xff]   ;;  %v6800_v41 = vld [vmem:[%s9655_s1 + $0x14c] ss:$16 sps:$4 sm:$0xff]  }
   0xf   :  { %1988 = vmatpush1.bf16.msra.mxu0 %v6760_v14  ;;  %2760 = vmatpush1.bf16.msra.mxu1 %v6761_v15  ;;  %v6802_v42 = vld [vmem:[%s9655_s1 + $0x140] ss:$16 sps:$4 sm:$0xff]   ;;  %v6803_v43 = vld [vmem:[%s9655_s1 + $0x148] ss:$16 sps:$4 sm:$0xff]   ;;  %v6804_v44 = vld [vmem:[%s9655_s1 + $0x164] ss:$16 sps:$4 sm:$0xff]  }
  0x10   :  { %1989 = vmatprep.subr.bf16.mxu0 %v6762_v16  ;;  %2761 = vmatprep.subr.bf16.mxu1 %v6764_v17  ;;  %v6806_v45 = vld [vmem:[%s9655_s1 + $0x16c] ss:$16 sps:$4 sm:$0xff]   ;;  %v6808_v47 = vld [vmem:[%s9655_s1 + $0x160] ss:$16 sps:$4 sm:$0xff]   ;;  %v6809_v49 = vld [vmem:[%s9655_s1 + $0x168] ss:$16 sps:$4 sm:$0xff]  }
  0x11   :  { %v40_v46 = vld [vmem:[%s9656_s0 + $0x8] sm:$0xff]  ;;  %v6810_v51 = vld [vmem:[%s9655_s1 + $0x184] ss:$16 sps:$4 sm:$0xff]   ;;  %v6814_v53 = vld [vmem:[%s9655_s1 + $0x180] ss:$16 sps:$4 sm:$0xff]  }
  0x12   :  { %v48_v48 = vld [vmem:[%s9656_s0 + $0x48] sm:$0xff]  ;;  %v6816_v55 = vld [vmem:[%s9655_s1 + $0x1a4] ss:$16 sps:$4 sm:$0xff]   ;;  %v6820_v57 = vld [vmem:[%s9655_s1 + $0x1a0] ss:$16 sps:$4 sm:$0xff]  }
  0x13   :  { %1990 = vmatpush1.bf16.msra.mxu0 %v6766_v18  ;;  %2762 = vmatpush1.bf16.msra.mxu1 %v6767_v19  ;;  %v296_v50 = vpack.c.bf16 %v48_v48, %v40_v46  ;;  %v6812_v52 = vld [vmem:[%s9655_s1 + $0x18c] ss:$16 sps:$4 sm:$0xff]   ;;  %v6815_v54 = vld [vmem:[%s9655_s1 + $0x188] ss:$16 sps:$4 sm:$0xff]   ;;  %v6822_v59 = vld [vmem:[%s9655_s1 + $0x1c4] ss:$16 sps:$4 sm:$0xff]  }
  0x14   :  { %1991 = vmatprep.subr.bf16.mxu0 %v6768_v20  ;;  %2763 = vmatprep.subr.bf16.mxu1 %v6770_v21  ;;  %v6818_v56 = vld [vmem:[%s9655_s1 + $0x1ac] ss:$16 sps:$4 sm:$0xff]   ;;  %v6821_v58 = vld [vmem:[%s9655_s1 + $0x1a8] ss:$16 sps:$4 sm:$0xff]   ;;  %v6826_v61 = vld [vmem:[%s9655_s1 + $0x1c0] ss:$16 sps:$4 sm:$0xff]  }
  0x15   :  { %2013 = vmatprep.mubr.bf16.mxu0 %v296_v50  ;;  %2785 = vmatprep.mubr.bf16.mxu1 %v296_v50  ;;  %v6824_v60 = vld [vmem:[%s9655_s1 + $0x1cc] ss:$16 sps:$4 sm:$0xff]   ;;  %v6827_v62 = vld [vmem:[%s9655_s1 + $0x1c8] ss:$16 sps:$4 sm:$0xff]   ;;  %v6828_v63 = vld [vmem:[%s9655_s1 + $0x1e4] ss:$16 sps:$4 sm:$0xff]  }
  0x16   :  { %v6830_v0 = vld [vmem:[%s9655_s1 + $0x1ec] ss:$16 sps:$4 sm:$0xff]   ;;  %v6832_v1 = vld [vmem:[%s9655_s1 + $0x1e0] ss:$16 sps:$4 sm:$0xff]   ;;  %v6833_v2 = vld [vmem:[%s9655_s1 + $0x1e8] ss:$16 sps:$4 sm:$0xff]  }
  0x17   :  { %1992 = vmatpush1.bf16.msra.mxu0 %v6772_v22  ;;  %2764 = vmatpush1.bf16.msra.mxu1 %v6773_v23  ;;  %v39_v3 = vld [vmem:[%s9656_s0] sm:$0xff]  ;;  %v56_v6 = vld [vmem:[%s9656_s0 + $0x88] sm:$0xff] }
  0x18   :  { %1993 = vmatprep.subr.bf16.mxu0 %v6774_v24  ;;  %2765 = vmatprep.subr.bf16.mxu1 %v6776_v25  ;;  %v47_v4 = vld [vmem:[%s9656_s0 + $0x40] sm:$0xff]  ;;  %v64_v7 = vld [vmem:[%s9656_s0 + $0xc8] sm:$0xff] }
  0x19   :  { %v6836_v5 = vld [vmem:[%s9655_s1 + $0x204] ss:$16 sps:$4 sm:$0xff]   ;;  %v295_v8 = vpack.c.bf16 %v47_v4, %v39_v3  ;;  %v6834_v9 = vld [vmem:[%s9655_s1 + $0x200] ss:$16 sps:$4 sm:$0xff]   ;;  %v304_v10 = vpack.c.bf16 %v64_v7, %v56_v6  ;;  %v6861_v15 = vld [vmem:[%s9655_s1 + $0x208] ss:$16 sps:$4 sm:$0xff]  }
  0x1a   :  { %v6839_v11 = vld [vmem:[%s9655_s1 + $0x224] ss:$16 sps:$4 sm:$0xff]   ;;  %v6837_v14 = vld [vmem:[%s9655_s1 + $0x220] ss:$16 sps:$4 sm:$0xff]   ;;  %v6863_v16 = vld [vmem:[%s9655_s1 + $0x20c] ss:$16 sps:$4 sm:$0xff]  }
  0x1b   :  { %1994 = vmatpush1.bf16.msra.mxu0 %v6778_v26  ;;  %2766 = vmatpush1.bf16.msra.mxu1 %v6779_v27  ;;  %v55_v12 = vld [vmem:[%s9656_s0 + $0x80] sm:$0xff]  ;;  %v72_v17 = vld [vmem:[%s9656_s0 + $0x108] sm:$0xff] }
  0x1c   :  { %1995 = vmatprep.subr.bf16.mxu0 %v6780_v28  ;;  %2767 = vmatprep.subr.bf16.mxu1 %v6782_v29  ;;  %v63_v13 = vld [vmem:[%s9656_s0 + $0xc0] sm:$0xff]  ;;  %v80_v18 = vld [vmem:[%s9656_s0 + $0x148] sm:$0xff] }
  0x1d   :  { %v6842_v19 = vld [vmem:[%s9655_s1 + $0x244] ss:$16 sps:$4 sm:$0xff]   ;;  %v6866_v20 = vld [vmem:[%s9655_s1 + $0x22c] ss:$16 sps:$4 sm:$0xff]   ;;  %v303_v21 = vpack.c.bf16 %v63_v13, %v55_v12  ;;  %v312_v22 = vpack.c.bf16 %v80_v18, %v72_v17  ;;  %v6840_v23 = vld [vmem:[%s9655_s1 + $0x240] ss:$16 sps:$4 sm:$0xff]  }
  0x1e   :  { %v6864_v24 = vld [vmem:[%s9655_s1 + $0x228] ss:$16 sps:$4 sm:$0xff]   ;;  %v71_v25 = vld [vmem:[%s9656_s0 + $0x100] sm:$0xff]  ;;  %v6872_v27 = vld [vmem:[%s9655_s1 + $0x24c] ss:$16 sps:$4 sm:$0xff]  }
  0x1f   :  { %1996 = vmatpush1.bf16.msra.mxu0 %v6784_v30  ;;  %2768 = vmatpush1.bf16.msra.mxu1 %v6785_v31  ;;  %v6845_v26 = vld [vmem:[%s9655_s1 + $0x264] ss:$16 sps:$4 sm:$0xff]   ;;  %v88_v29 = vld [vmem:[%s9656_s0 + $0x188] sm:$0xff]  ;;  %v6843_v31 = vld [vmem:[%s9655_s1 + $0x260] ss:$16 sps:$4 sm:$0xff]  }
  0x20   :  { %1997 = vmatprep.subr.bf16.mxu0 %v6786_v32  ;;  %2769 = vmatprep.subr.bf16.mxu1 %v6788_v33  ;;  %v79_v28 = vld [vmem:[%s9656_s0 + $0x140] sm:$0xff]  ;;  %v96_v30 = vld [vmem:[%s9656_s0 + $0x1c8] sm:$0xff] }
  0x21   :  { %v6870_v32 = vld [vmem:[%s9655_s1 + $0x248] ss:$16 sps:$4 sm:$0xff]   ;;  %v6848_v33 = vld [vmem:[%s9655_s1 + $0x284] ss:$16 sps:$4 sm:$0xff]   ;;  %v6884_v48 = vld [vmem:[%s9655_s1 + $0x2ac] ss:$16 sps:$4 sm:$0xff]  }
  0x22   :  { %v6879_v46 = vld [vmem:[%s9655_s1 + $0x288] ss:$16 sps:$4 sm:$0xff]   ;;  %v6869_v3 = vld [vmem:[%s9655_s1 + $0x324] ss:$16 sps:$4 sm:$0xff]   ;;  %v6899_v4 = vld [vmem:[%s9655_s1 + $0x30c] ss:$16 sps:$4 sm:$0xff]  }
  0x23   :  { %1998 = vmatpush1.bf16.msra.mxu0 %v6790_v34  ;;  %2770 = vmatpush1.bf16.msra.mxu1 %v6791_v35  ;;  %v6875_v34 = vld [vmem:[%s9655_s1 + $0x26c] ss:$16 sps:$4 sm:$0xff]   ;;  %v311_v35 = vpack.c.bf16 %v79_v28, %v71_v25  ;;  %v127_v6 = vld [vmem:[%s9656_s0 + $0x2c0] sm:$0xff] }
  0x24   :  { %1999 = vmatprep.subr.bf16.mxu0 %v6792_v36  ;;  %2771 = vmatprep.subr.bf16.mxu1 %v6794_v37  ;;  %v320_v36 = vpack.c.bf16 %v96_v30, %v88_v29  ;;  %v6846_v37 = vld [vmem:[%s9655_s1 + $0x280] ss:$16 sps:$4 sm:$0xff]   ;;  %v136_v7 = vld [vmem:[%s9656_s0 + $0x308] sm:$0xff]  ;;  %v6887_v17 = vld [vmem:[%s9655_s1 + $0x364] ss:$16 sps:$4 sm:$0xff]  }
  0x25   :  { %v6902_v12 = vld [vmem:[%s9655_s1 + $0x32c] ss:$16 sps:$4 sm:$0xff]   ;;  %v6896_v25 = vld [vmem:[%s9655_s1 + $0x384] ss:$16 sps:$4 sm:$0xff]   ;;  %v6894_v29 = vld [vmem:[%s9655_s1 + $0x380] ss:$16 sps:$4 sm:$0xff]  }
  0x26   :  { %v6908_v18 = vld [vmem:[%s9655_s1 + $0x34c] ss:$16 sps:$4 sm:$0xff]   ;;  %v6909_v30 = vld [vmem:[%s9655_s1 + $0x368] ss:$16 sps:$4 sm:$0xff]  }
  0x27   :  { %2000 = vmatpush1.bf16.msra.mxu0 %v6796_v38  ;;  %2772 = vmatpush1.bf16.msra.mxu1 %v6797_v39  ;;  %v6873_v38 = vld [vmem:[%s9655_s1 + $0x268] ss:$16 sps:$4 sm:$0xff]   ;;  %v6851_v39 = vld [vmem:[%s9655_s1 + $0x2a4] ss:$16 sps:$4 sm:$0xff]  }
  0x28   :  { %2001 = vmatprep.subr.bf16.mxu0 %v6798_v40  ;;  %2773 = vmatprep.subr.bf16.mxu1 %v6800_v41  ;;  %v6881_v40 = vld [vmem:[%s9655_s1 + $0x28c] ss:$16 sps:$4 sm:$0xff]   ;;  %v87_v41 = vld [vmem:[%s9656_s0 + $0x180] sm:$0xff] }
  0x2b   :  { %2002 = vmatpush1.bf16.msra.mxu0 %v6802_v42  ;;  %2774 = vmatpush1.bf16.msra.mxu1 %v6803_v43  ;;  %v95_v42 = vld [vmem:[%s9656_s0 + $0x1c0] sm:$0xff]  ;;  %v104_v43 = vld [vmem:[%s9656_s0 + $0x208] sm:$0xff] }
  0x2c   :  { %2003 = vmatprep.subr.bf16.mxu0 %v6804_v44  ;;  %2775 = vmatprep.subr.bf16.mxu1 %v6806_v45  ;;  %v112_v44 = vld [vmem:[%s9656_s0 + $0x248] sm:$0xff]  ;;  %v6849_v45 = vld [vmem:[%s9655_s1 + $0x2a0] ss:$16 sps:$4 sm:$0xff]  }
  0x2d   :  { %v328_v50 = vpack.c.bf16 %v112_v44, %v104_v43  ;;  %v6912_v43 = vld [vmem:[%s9655_s1 + $0x3c0] ss:$16 sps:$4 sm:$0xff]   ;;  %v6918_v44 = vld [vmem:[%s9655_s1 + $0x3a8] ss:$16 sps:$4 sm:$0xff]  }
  0x2f   :  { %2004 = vmatpush1.bf16.msra.mxu0 %v6808_v47  ;;  %2776 = vmatpush1.bf16.msra.mxu1 %v6809_v49  ;;  %v6854_v47 = vld [vmem:[%s9655_s1 + $0x2c4] ss:$16 sps:$4 sm:$0xff]   ;;  %v319_v49 = vpack.c.bf16 %v95_v42, %v87_v41 }
  0x30   :  { %2005 = vmatprep.subr.bf16.mxu0 %v6810_v51  ;;  %2777 = vmatprep.subr.bf16.mxu1 %v6812_v52  ;;  %v6852_v51 = vld [vmem:[%s9655_s1 + $0x2c0] ss:$16 sps:$4 sm:$0xff]   ;;  %v6882_v52 = vld [vmem:[%s9655_s1 + $0x2a8] ss:$16 sps:$4 sm:$0xff]  }
  0x33   :  { %2006 = vmatpush1.bf16.msra.mxu0 %v6814_v53  ;;  %2778 = vmatpush1.bf16.msra.mxu1 %v6815_v54  ;;  %v103_v53 = vld [vmem:[%s9656_s0 + $0x200] sm:$0xff] }
  0x34   :  { %2007 = vmatprep.subr.bf16.mxu0 %v6816_v55  ;;  %2779 = vmatprep.subr.bf16.mxu1 %v6818_v56  ;;  %v6857_v54 = vld [vmem:[%s9655_s1 + $0x2e4] ss:$16 sps:$4 sm:$0xff]   ;;  %v6890_v55 = vld [vmem:[%s9655_s1 + $0x2cc] ss:$16 sps:$4 sm:$0xff]  }
  0x35   :  { %v111_v56 = vld [vmem:[%s9656_s0 + $0x240] sm:$0xff] }
  0x37   :  { %2008 = vmatpush1.bf16.msra.mxu0 %v6820_v57  ;;  %2780 = vmatpush1.bf16.msra.mxu1 %v6821_v58  ;;  %v120_v57 = vld [vmem:[%s9656_s0 + $0x288] sm:$0xff] }
  0x38   :  { %2009 = vmatprep.subr.bf16.mxu0 %v6822_v59  ;;  %2781 = vmatprep.subr.bf16.mxu1 %v6824_v60  ;;  %v128_v58 = vld [vmem:[%s9656_s0 + $0x2c8] sm:$0xff]  ;;  %v6855_v59 = vld [vmem:[%s9655_s1 + $0x2e0] ss:$16 sps:$4 sm:$0xff]  }
  0x39   :  { %v6888_v60 = vld [vmem:[%s9655_s1 + $0x2c8] ss:$16 sps:$4 sm:$0xff]  }
  0x3b   :  { %2010 = vmatpush1.bf16.msra.mxu0 %v6826_v61  ;;  %2782 = vmatpush1.bf16.msra.mxu1 %v6827_v62  ;;  %v6860_v61 = vld [vmem:[%s9655_s1 + $0x304] ss:$16 sps:$4 sm:$0xff]   ;;  %v6893_v62 = vld [vmem:[%s9655_s1 + $0x2ec] ss:$16 sps:$4 sm:$0xff]  }
  0x3c   :  { %2011 = vmatprep.subr.bf16.mxu0 %v6828_v63  ;;  %2783 = vmatprep.subr.bf16.mxu1 %v6830_v0  ;;  %v327_v63 = vpack.c.bf16 %v111_v56, %v103_v53  ;;  %v336_v0 = vpack.c.bf16 %v128_v58, %v120_v57  ;;  %v6929_v53 = vld [vmem:[%s9655_s1 + $0x3ec] ss:$16 sps:$4 sm:$0xff]   ;;  %v6927_v57 = vld [vmem:[%s9655_s1 + $0x3e8] ss:$16 sps:$4 sm:$0xff]   ;;  %v183_v58 = vld [vmem:[%s9656_s0 + $0x480] sm:$0xff] }
  0x3f   :  { %2012 = vmatpush1.bf16.msra.mxu0 %v6832_v1  ;;  %2784 = vmatpush1.bf16.msra.mxu1 %v6833_v2  ;;  %v6858_v1 = vld [vmem:[%s9655_s1 + $0x300] ss:$16 sps:$4 sm:$0xff]   ;;  %v6891_v2 = vld [vmem:[%s9655_s1 + $0x2e8] ss:$16 sps:$4 sm:$0xff]  }
  0x40   :  { %2174 = vmatprep.subr.bf16.mxu0 %v6836_v5  ;;  %2946 = vmatprep.subr.bf16.mxu1 %v6863_v16  ;;  %v119_v5 = vld [vmem:[%s9656_s0 + $0x280] sm:$0xff]  ;;  %v6900_v16 = vld [vmem:[%s9655_s1 + $0x328] ss:$16 sps:$4 sm:$0xff]  }
  0x41   :  { %v335_v13 = vpack.c.bf16 %v127_v6, %v119_v5 }
  0x42   :  { %2014 = vmatmul.mubr.bf16.vlgmr.msra.gmra.mrb[0].mxu0 %v295_v8  ;;  %2786 = vmatmul.mubr.bf16.vlgmr.msra.gmra.mrb[0].mxu1 %v295_v8  ;;  %v144_v8 = vld [vmem:[%s9656_s0 + $0x348] sm:$0xff] }
  0x43   :  { %2175 = vmatpush1.bf16.msra.mxu0 %v6834_v9  ;;  %2023 = vmatprep.mubr.bf16.mxu0 %v304_v10  ;;  %v6867_v9 = vld [vmem:[%s9655_s1 + $0x320] ss:$16 sps:$4 sm:$0xff]  }
  0x44   :  { %2795 = vmatprep.mubr.bf16.mxu1 %v304_v10  ;;  %2176 = vmatprep.subr.bf16.mxu0 %v6839_v11  ;;  %v6897_v10 = vld [vmem:[%s9655_s1 + $0x308] ss:$16 sps:$4 sm:$0xff]   ;;  %v6878_v11 = vld [vmem:[%s9655_s1 + $0x344] ss:$16 sps:$4 sm:$0xff]  }
  0x45   :  { %2947 = vmatpush1.bf16.msra.mxu1 %v6861_v15  ;;  %v6876_v15 = vld [vmem:[%s9655_s1 + $0x340] ss:$16 sps:$4 sm:$0xff]  }
  0x46   :  { %2948 = vmatprep.subr.bf16.mxu1 %v6866_v20  ;;  %v143_v20 = vld [vmem:[%s9656_s0 + $0x340] sm:$0xff] }
  0x47   :  { %2177 = vmatpush1.bf16.msra.mxu0 %v6837_v14  ;;  %v344_v14 = vpack.c.bf16 %v144_v8, %v136_v7  ;;  %v215_v7 = vld [vmem:[%s9656_s0 + $0x580] sm:$0xff] }
  0x48   :  { %2178 = vmatprep.subr.bf16.mxu0 %v6842_v19  ;;  %v135_v19 = vld [vmem:[%s9656_s0 + $0x300] sm:$0xff] }
  0x49   :  { %2949 = vmatpush1.bf16.msra.mxu1 %v6864_v24  ;;  %v6906_v24 = vld [vmem:[%s9655_s1 + $0x348] ss:$16 sps:$4 sm:$0xff]   ;;  %v223_v8 = vld [vmem:[%s9656_s0 + $0x5c0] sm:$0xff] }
  0x4a   :  { %2024 = vmatmul.mubr.bf16.gmra.mrb[4].mxu0 %v303_v21  ;;  %2796 = vmatmul.mubr.bf16.gmra.mrb[4].mxu1 %v303_v21  ;;  %v152_v21 = vld [vmem:[%s9656_s0 + $0x388] sm:$0xff] }
  0x4b   :  { %2033 = vmatprep.mubr.bf16.mxu0 %v312_v22  ;;  %2805 = vmatprep.mubr.bf16.mxu1 %v312_v22  ;;  %v160_v22 = vld [vmem:[%s9656_s0 + $0x3c8] sm:$0xff] }
  0x4c   :  { %2179 = vmatpush1.bf16.msra.mxu0 %v6840_v23  ;;  %2950 = vmatprep.subr.bf16.mxu1 %v6872_v27  ;;  %v6885_v23 = vld [vmem:[%s9655_s1 + $0x360] ss:$16 sps:$4 sm:$0xff]   ;;  %v343_v27 = vpack.c.bf16 %v143_v20, %v135_v19  ;;  %v352_v28 = vpack.c.bf16 %v160_v22, %v152_v21  ;;  %v264_v21 = vld [vmem:[%s9656_s0 + $0x708] sm:$0xff] }
  0x4d   :  { %2180 = vmatprep.subr.bf16.mxu0 %v6845_v26  ;;  %2951 = vmatpush1.bf16.msra.mxu1 %v6870_v32  ;;  %v6911_v26 = vld [vmem:[%s9655_s1 + $0x36c] ss:$16 sps:$4 sm:$0xff]   ;;  %v247_v19 = vld [vmem:[%s9656_s0 + $0x680] sm:$0xff] }
  0x4e   :  { %2952 = vmatprep.subr.bf16.mxu1 %v6875_v34  ;;  %v6917_v32 = vld [vmem:[%s9655_s1 + $0x38c] ss:$16 sps:$4 sm:$0xff]   ;;  %v159_v34 = vld [vmem:[%s9656_s0 + $0x3c0] sm:$0xff] }
  0x4f   :  { %v255_v20 = vld [vmem:[%s9656_s0 + $0x6c0] sm:$0xff]  ;;  %v272_v22 = vld [vmem:[%s9656_s0 + $0x748] sm:$0xff] }
  0x50   :  { %2181 = vmatpush1.bf16.msra.mxu0 %v6843_v31  ;;  %v6905_v31 = vld [vmem:[%s9655_s1 + $0x3a4] ss:$16 sps:$4 sm:$0xff]  }
  0x51   :  { %2182 = vmatprep.subr.bf16.mxu0 %v6848_v33  ;;  %2953 = vmatpush1.bf16.msra.mxu1 %v6873_v38  ;;  %v151_v33 = vld [vmem:[%s9656_s0 + $0x380] sm:$0xff]  ;;  %v6915_v38 = vld [vmem:[%s9655_s1 + $0x388] ss:$16 sps:$4 sm:$0xff]  }
  0x52   :  { %2034 = vmatmul.mubr.bf16.gmra.mrb[8].mxu0 %v311_v35  ;;  %2806 = vmatmul.mubr.bf16.gmra.mrb[8].mxu1 %v311_v35  ;;  %v168_v35 = vld [vmem:[%s9656_s0 + $0x408] sm:$0xff]  ;;  %v351_v41 = vpack.c.bf16 %v159_v34, %v151_v33  ;;  %v42_v33 = vld [vmem:[%s9656_s0 + $0x18] sm:$0xff] }
  0x53   :  { %2043 = vmatprep.mubr.bf16.mxu0 %v320_v36  ;;  %2815 = vmatprep.mubr.bf16.mxu1 %v320_v36  ;;  %v176_v36 = vld [vmem:[%s9656_s0 + $0x448] sm:$0xff]  ;;  %v50_v34 = vld [vmem:[%s9656_s0 + $0x58] sm:$0xff] }
  0x54   :  { %2183 = vmatpush1.bf16.msra.mxu0 %v6846_v37  ;;  %2954 = vmatprep.subr.bf16.mxu1 %v6881_v40  ;;  %v6903_v37 = vld [vmem:[%s9655_s1 + $0x3a0] ss:$16 sps:$4 sm:$0xff]   ;;  %v6920_v40 = vld [vmem:[%s9655_s1 + $0x3ac] ss:$16 sps:$4 sm:$0xff]   ;;  %v360_v42 = vpack.c.bf16 %v176_v36, %v168_v35  ;;  %v298_v36 = vpack.c.bf16 %v50_v34, %v42_v33 }
  0x55   :  { %2184 = vmatprep.subr.bf16.mxu0 %v6851_v39  ;;  %2955 = vmatpush1.bf16.msra.mxu1 %v6879_v46  ;;  %v6914_v39 = vld [vmem:[%s9655_s1 + $0x3c4] ss:$16 sps:$4 sm:$0xff]   ;;  %v6926_v46 = vld [vmem:[%s9655_s1 + $0x3cc] ss:$16 sps:$4 sm:$0xff]   ;;  %v6954_v34 = vld [vmem:[%s9655_s1 + $0x500] ss:$16 sps:$4 sm:$0xff]  }
  0x56   :  { %2956 = vmatprep.subr.bf16.mxu1 %v6884_v48  ;;  %v175_v48 = vld [vmem:[%s9656_s0 + $0x440] sm:$0xff] }
  0x58   :  { %2185 = vmatpush1.bf16.msra.mxu0 %v6849_v45  ;;  %v6923_v45 = vld [vmem:[%s9655_s1 + $0x3e4] ss:$16 sps:$4 sm:$0xff]  }
  0x59   :  { %2186 = vmatprep.subr.bf16.mxu0 %v6854_v47  ;;  %2957 = vmatpush1.bf16.msra.mxu1 %v6882_v52  ;;  %v167_v47 = vld [vmem:[%s9656_s0 + $0x400] sm:$0xff]  ;;  %v6924_v52 = vld [vmem:[%s9655_s1 + $0x3c8] ss:$16 sps:$4 sm:$0xff]  }
  0x5a   :  { %2044 = vmatmul.mubr.bf16.gmra.mrb[12].mxu0 %v319_v49  ;;  %2816 = vmatmul.mubr.bf16.gmra.mrb[12].mxu1 %v319_v49  ;;  %v184_v49 = vld [vmem:[%s9656_s0 + $0x488] sm:$0xff] }
  0x5b   :  { %2053 = vmatprep.mubr.bf16.mxu0 %v328_v50  ;;  %2825 = vmatprep.mubr.bf16.mxu1 %v328_v50  ;;  %v192_v50 = vld [vmem:[%s9656_s0 + $0x4c8] sm:$0xff] }
  0x5c   :  { %2187 = vmatpush1.bf16.msra.mxu0 %v6852_v51  ;;  %2958 = vmatprep.subr.bf16.mxu1 %v6890_v55  ;;  %v6921_v51 = vld [vmem:[%s9655_s1 + $0x3e0] ss:$16 sps:$4 sm:$0xff]   ;;  %v359_v55 = vpack.c.bf16 %v175_v48, %v167_v47  ;;  %v368_v56 = vpack.c.bf16 %v192_v50, %v184_v49  ;;  %v74_v50 = vld [vmem:[%s9656_s0 + $0x118] sm:$0xff] }
  0x5d   :  { %2188 = vmatprep.subr.bf16.mxu0 %v6857_v54  ;;  %2959 = vmatpush1.bf16.msra.mxu1 %v6888_v60  ;;  %v6932_v54 = vld [vmem:[%s9655_s1 + $0x404] ss:$16 sps:$4 sm:$0xff]   ;;  %v6933_v49 = vld [vmem:[%s9655_s1 + $0x420] ss:$16 sps:$4 sm:$0xff]  }
  0x5e   :  { %2960 = vmatprep.subr.bf16.mxu1 %v6893_v62  ;;  %v191_v60 = vld [vmem:[%s9656_s0 + $0x4c0] sm:$0xff]  ;;  %v208_v62 = vld [vmem:[%s9656_s0 + $0x548] sm:$0xff]  ;;  %v57_v47 = vld [vmem:[%s9656_s0 + $0x90] sm:$0xff] }
  0x5f   :  { %v65_v48 = vld [vmem:[%s9656_s0 + $0xd0] sm:$0xff] }
  0x60   :  { %2189 = vmatpush1.bf16.msra.mxu0 %v6855_v59  ;;  %v6959_v59 = vld [vmem:[%s9655_s1 + $0x40c] ss:$16 sps:$4 sm:$0xff]  }
  0x61   :  { %2190 = vmatprep.subr.bf16.mxu0 %v6860_v61  ;;  %2961 = vmatpush1.bf16.msra.mxu1 %v6891_v2  ;;  %v200_v61 = vld [vmem:[%s9656_s0 + $0x508] sm:$0xff]  ;;  %v207_v2 = vld [vmem:[%s9656_s0 + $0x540] sm:$0xff] }
  0x62   :  { %2054 = vmatmul.mubr.bf16.gmra.mrb[16].mxu0 %v327_v63  ;;  %2826 = vmatmul.mubr.bf16.gmra.mrb[16].mxu1 %v327_v63  ;;  %v367_v63 = vpack.c.bf16 %v191_v60, %v183_v58  ;;  %v6941_v58 = vld [vmem:[%s9655_s1 + $0x464] ss:$16 sps:$4 sm:$0xff]   ;;  %v6971_v60 = vld [vmem:[%s9655_s1 + $0x46c] ss:$16 sps:$4 sm:$0xff]  }
  0x63   :  { %2063 = vmatprep.mubr.bf16.mxu0 %v336_v0  ;;  %2835 = vmatprep.mubr.bf16.mxu1 %v336_v0  ;;  %v376_v0 = vpack.c.bf16 %v208_v62, %v200_v61  ;;  %v73_v61 = vld [vmem:[%s9656_s0 + $0x110] sm:$0xff] }
  0x64   :  { %2191 = vmatpush1.bf16.msra.mxu0 %v6858_v1  ;;  %2962 = vmatprep.subr.bf16.mxu1 %v6899_v4  ;;  %v199_v1 = vld [vmem:[%s9656_s0 + $0x500] sm:$0xff]  ;;  %v224_v4 = vld [vmem:[%s9656_s0 + $0x5c8] sm:$0xff]  ;;  %v81_v62 = vld [vmem:[%s9656_s0 + $0x150] sm:$0xff] }
  0x65   :  { %2192 = vmatprep.subr.bf16.mxu0 %v6869_v3  ;;  %2963 = vmatpush1.bf16.msra.mxu1 %v6897_v10  ;;  %v216_v3 = vld [vmem:[%s9656_s0 + $0x588] sm:$0xff]  ;;  %v375_v5 = vpack.c.bf16 %v207_v2, %v199_v1  ;;  %v6939_v1 = vld [vmem:[%s9655_s1 + $0x460] ss:$16 sps:$4 sm:$0xff]   ;;  %v6944_v2 = vld [vmem:[%s9655_s1 + $0x484] ss:$16 sps:$4 sm:$0xff]  }
  0x66   :  { %2964 = vmatprep.subr.bf16.mxu1 %v6902_v12  ;;  %v384_v6 = vpack.c.bf16 %v224_v4, %v216_v3  ;;  %v240_v10 = vld [vmem:[%s9656_s0 + $0x648] sm:$0xff]  ;;  %v313_v4 = vpack.c.bf16 %v81_v62, %v73_v61  ;;  %v6990_v62 = vld [vmem:[%s9655_s1 + $0x580] ss:$16 sps:$4 sm:$0xff]  }
  0x67   :  { %v6969_v3 = vld [vmem:[%s9655_s1 + $0x468] ss:$16 sps:$4 sm:$0xff]  }
  0x68   :  { %2193 = vmatpush1.bf16.msra.mxu0 %v6867_v9  ;;  %v232_v9 = vld [vmem:[%s9656_s0 + $0x608] sm:$0xff] }
  0x69   :  { %2194 = vmatprep.subr.bf16.mxu0 %v6878_v11  ;;  %2965 = vmatpush1.bf16.msra.mxu1 %v6900_v16  ;;  %v383_v11 = vpack.c.bf16 %v223_v8, %v215_v7  ;;  %v392_v12 = vpack.c.bf16 %v240_v10, %v232_v9  ;;  %v256_v16 = vld [vmem:[%s9656_s0 + $0x6c8] sm:$0xff]  ;;  %v6947_v8 = vld [vmem:[%s9655_s1 + $0x4a4] ss:$16 sps:$4 sm:$0xff]  }
  0x6a   :  { %2064 = vmatmul.mubr.bf16.gmra.mrb[20].mxu0 %v335_v13  ;;  %2836 = vmatmul.mubr.bf16.gmra.mrb[20].mxu1 %v335_v13  ;;  %v231_v13 = vld [vmem:[%s9656_s0 + $0x600] sm:$0xff]  ;;  %v6977_v7 = vld [vmem:[%s9655_s1 + $0x48c] ss:$16 sps:$4 sm:$0xff]   ;;  %v6975_v9 = vld [vmem:[%s9655_s1 + $0x488] ss:$16 sps:$4 sm:$0xff]  }
  0x6b   :  { %2073 = vmatprep.mubr.bf16.mxu0 %v344_v14  ;;  %2845 = vmatprep.mubr.bf16.mxu1 %v344_v14  ;;  %v239_v14 = vld [vmem:[%s9656_s0 + $0x640] sm:$0xff]  ;;  %v6980_v10 = vld [vmem:[%s9655_s1 + $0x4ac] ss:$16 sps:$4 sm:$0xff]  }
  0x6c   :  { %2195 = vmatpush1.bf16.msra.mxu0 %v6876_v15  ;;  %2966 = vmatprep.subr.bf16.mxu1 %v6908_v18  ;;  %v248_v15 = vld [vmem:[%s9656_s0 + $0x688] sm:$0xff] }
  0x6d   :  { %2196 = vmatprep.subr.bf16.mxu0 %v6887_v17  ;;  %2967 = vmatpush1.bf16.msra.mxu1 %v6906_v24  ;;  %v391_v17 = vpack.c.bf16 %v239_v14, %v231_v13  ;;  %v400_v18 = vpack.c.bf16 %v256_v16, %v248_v15  ;;  %v408_v24 = vpack.c.bf16 %v272_v22, %v264_v21  ;;  %v106_v13 = vld [vmem:[%s9656_s0 + $0x218] sm:$0xff]  ;;  %v6945_v15 = vld [vmem:[%s9655_s1 + $0x4a0] ss:$16 sps:$4 sm:$0xff]   ;;  %v6950_v16 = vld [vmem:[%s9655_s1 + $0x4c4] ss:$16 sps:$4 sm:$0xff]  }
  0x6e   :  { %2968 = vmatprep.subr.bf16.mxu1 %v6911_v26  ;;  %v271_v26 = vld [vmem:[%s9656_s0 + $0x740] sm:$0xff]  ;;  %v114_v14 = vld [vmem:[%s9656_s0 + $0x258] sm:$0xff] }
  0x6f   :  { %v6986_v21 = vld [vmem:[%s9655_s1 + $0x4cc] ss:$16 sps:$4 sm:$0xff]   ;;  %v6953_v22 = vld [vmem:[%s9655_s1 + $0x4e4] ss:$16 sps:$4 sm:$0xff]  }
  0x70   :  { %2197 = vmatpush1.bf16.msra.mxu0 %v6885_v23  ;;  %v399_v23 = vpack.c.bf16 %v255_v20, %v247_v19  ;;  %v330_v19 = vpack.c.bf16 %v114_v14, %v106_v13  ;;  %v6948_v20 = vld [vmem:[%s9655_s1 + $0x4c0] ss:$16 sps:$4 sm:$0xff]   ;;  %v7022_v13 = vld [vmem:[%s9655_s1 + $0x5cc] ss:$16 sps:$4 sm:$0xff]   ;;  %v7019_v14 = vld [vmem:[%s9655_s1 + $0x5e4] ss:$16 sps:$4 sm:$0xff]  }
  0x71   :  { %2198 = vmatprep.subr.bf16.mxu0 %v6896_v25  ;;  %2969 = vmatpush1.bf16.msra.mxu1 %v6909_v30  ;;  %v263_v25 = vld [vmem:[%s9656_s0 + $0x700] sm:$0xff] }
  0x72   :  { %2074 = vmatmul.mubr.bf16.gmra.mrb[24].mxu0 %v343_v27  ;;  %2846 = vmatmul.mubr.bf16.gmra.mrb[24].mxu1 %v343_v27  ;;  %v280_v27 = vld [vmem:[%s9656_s0 + $0x788] sm:$0xff] }
  0x73   :  { %2083 = vmatprep.mubr.bf16.mxu0 %v352_v28  ;;  %2855 = vmatprep.mubr.bf16.mxu1 %v352_v28  ;;  %v288_v28 = vld [vmem:[%s9656_s0 + $0x7c8] sm:$0xff] }
  0x74   :  { %2199 = vmatpush1.bf16.msra.mxu0 %v6894_v29  ;;  %2970 = vmatprep.subr.bf16.mxu1 %v6917_v32  ;;  %v407_v29 = vpack.c.bf16 %v271_v26, %v263_v25  ;;  %v416_v30 = vpack.c.bf16 %v288_v28, %v280_v27  ;;  %v287_v32 = vld [vmem:[%s9656_s0 + $0x7c0] sm:$0xff]  ;;  %v105_v25 = vld [vmem:[%s9656_s0 + $0x210] sm:$0xff]  ;;  %v122_v27 = vld [vmem:[%s9656_s0 + $0x298] sm:$0xff] }
  0x75   :  { %2200 = vmatprep.subr.bf16.mxu0 %v6905_v31  ;;  %2971 = vmatpush1.bf16.msra.mxu1 %v6915_v38  ;;  %v279_v31 = vld [vmem:[%s9656_s0 + $0x780] sm:$0xff]  ;;  %v49_v38 = vld [vmem:[%s9656_s0 + $0x50] sm:$0xff]  ;;  %v130_v28 = vld [vmem:[%s9656_s0 + $0x2d8] sm:$0xff] }
  0x76   :  { %2972 = vmatprep.subr.bf16.mxu1 %v6920_v40  ;;  %v415_v35 = vpack.c.bf16 %v287_v32, %v279_v31  ;;  %v66_v40 = vld [vmem:[%s9656_s0 + $0xd8] sm:$0xff]  ;;  %v113_v26 = vld [vmem:[%s9656_s0 + $0x250] sm:$0xff]  ;;  %v338_v33 = vpack.c.bf16 %v130_v28, %v122_v27 }
  0x77   :  { %v6987_v31 = vld [vmem:[%s9655_s1 + $0x4e8] ss:$16 sps:$4 sm:$0xff]   ;;  %v329_v32 = vpack.c.bf16 %v113_v26, %v105_v25  ;;  %v7055_v26 = vld [vmem:[%s9655_s1 + $0x60c] ss:$16 sps:$4 sm:$0xff]   ;;  %v185_v27 = vld [vmem:[%s9656_s0 + $0x490] sm:$0xff] }
  0x78   :  { %2201 = vmatpush1.bf16.msra.mxu0 %v6903_v37  ;;  %v41_v37 = vld [vmem:[%s9656_s0 + $0x10] sm:$0xff] }
  0x79   :  { %2202 = vmatprep.subr.bf16.mxu0 %v6914_v39  ;;  %2973 = vmatpush1.bf16.msra.mxu1 %v6918_v44  ;;  %v58_v39 = vld [vmem:[%s9656_s0 + $0x98] sm:$0xff]  ;;  %v6935_v44 = vld [vmem:[%s9655_s1 + $0x424] ss:$16 sps:$4 sm:$0xff]  }
  0x7a   :  { %2084 = vmatmul.mubr.bf16.gmra.mrb[28].mxu0 %v351_v41  ;;  %2856 = vmatmul.mubr.bf16.gmra.mrb[28].mxu1 %v351_v41  ;;  %v6930_v41 = vld [vmem:[%s9655_s1 + $0x400] ss:$16 sps:$4 sm:$0xff]  }
  0x7b   :  { %2093 = vmatprep.mubr.bf16.mxu0 %v360_v42  ;;  %2865 = vmatprep.mubr.bf16.mxu1 %v360_v42  ;;  %v297_v42 = vpack.c.bf16 %v49_v38, %v41_v37  ;;  %v6993_v37 = vld [vmem:[%s9655_s1 + $0x508] ss:$16 sps:$4 sm:$0xff]   ;;  %v6998_v38 = vld [vmem:[%s9655_s1 + $0x52c] ss:$16 sps:$4 sm:$0xff]   ;;  %v193_v28 = vld [vmem:[%s9656_s0 + $0x4d0] sm:$0xff] }
  0x7c   :  { %2203 = vmatpush1.bf16.msra.mxu0 %v6912_v43  ;;  %2974 = vmatprep.subr.bf16.mxu1 %v6926_v46  ;;  %v306_v43 = vpack.c.bf16 %v66_v40, %v58_v39  ;;  %v6962_v46 = vld [vmem:[%s9655_s1 + $0x42c] ss:$16 sps:$4 sm:$0xff]   ;;  %v121_v39 = vld [vmem:[%s9656_s0 + $0x290] sm:$0xff] }
  0x7d   :  { %2204 = vmatprep.subr.bf16.mxu0 %v6923_v45  ;;  %2975 = vmatpush1.bf16.msra.mxu1 %v6924_v52  ;;  %v6957_v45 = vld [vmem:[%s9655_s1 + $0x408] ss:$16 sps:$4 sm:$0xff]   ;;  %v6938_v52 = vld [vmem:[%s9655_s1 + $0x444] ss:$16 sps:$4 sm:$0xff]  }
  0x7e   :  { %2976 = vmatprep.subr.bf16.mxu1 %v6929_v53  ;;  %v6960_v53 = vld [vmem:[%s9655_s1 + $0x428] ss:$16 sps:$4 sm:$0xff]   ;;  %v129_v40 = vld [vmem:[%s9656_s0 + $0x2d0] sm:$0xff] }
  0x80   :  { %2205 = vmatpush1.bf16.msra.mxu0 %v6921_v51  ;;  %v82_v51 = vld [vmem:[%s9656_s0 + $0x158] sm:$0xff] }
  0x81   :  { %2367 = vmatprep.subr.bf16.mxu0 %v6932_v54  ;;  %2977 = vmatpush1.bf16.msra.mxu1 %v6927_v57  ;;  %v305_v54 = vpack.c.bf16 %v65_v48, %v57_v47  ;;  %v6968_v57 = vld [vmem:[%s9655_s1 + $0x44c] ss:$16 sps:$4 sm:$0xff]   ;;  %v6972_v48 = vld [vmem:[%s9655_s1 + $0x540] ss:$16 sps:$4 sm:$0xff]  }
  0x82   :  { %2094 = vmatmul.mubr.bf16.gmra.mrb[32].mxu0 %v359_v55  ;;  %2866 = vmatmul.mubr.bf16.gmra.mrb[32].mxu1 %v359_v55  ;;  %v314_v55 = vpack.c.bf16 %v82_v51, %v74_v50  ;;  %v6983_v50 = vld [vmem:[%s9655_s1 + $0x564] ss:$16 sps:$4 sm:$0xff]   ;;  %v7002_v51 = vld [vmem:[%s9655_s1 + $0x548] ss:$16 sps:$4 sm:$0xff]  }
  0x83   :  { %2103 = vmatprep.mubr.bf16.mxu0 %v368_v56  ;;  %2875 = vmatprep.mubr.bf16.mxu1 %v368_v56  ;;  %v6936_v56 = vld [vmem:[%s9655_s1 + $0x440] ss:$16 sps:$4 sm:$0xff]  }
  0x84   :  { %3139 = vmatprep.subr.bf16.mxu1 %v6959_v59  ;;  %v6966_v59 = vld [vmem:[%s9655_s1 + $0x448] ss:$16 sps:$4 sm:$0xff]  }
  0x8a   :  { %2104 = vmatmul.mubr.bf16.gmra.mrb[36].mxu0 %v367_v63  ;;  %2876 = vmatmul.mubr.bf16.gmra.mrb[36].mxu1 %v367_v63  ;;  %v90_v63 = vld [vmem:[%s9656_s0 + $0x198] sm:$0xff] }
  0x8b   :  { %2113 = vmatprep.mubr.bf16.mxu0 %v376_v0  ;;  %2885 = vmatprep.mubr.bf16.mxu1 %v376_v0  ;;  %v98_v0 = vld [vmem:[%s9656_s0 + $0x1d8] sm:$0xff] }
  0x92   :  { %2114 = vmatmul.mubr.bf16.gmra.mrb[40].mxu0 %v375_v5  ;;  %2886 = vmatmul.mubr.bf16.gmra.mrb[40].mxu1 %v375_v5  ;;  %v322_v5 = vpack.c.bf16 %v98_v0, %v90_v63  ;;  %v7013_v63 = vld [vmem:[%s9655_s1 + $0x58c] ss:$16 sps:$4 sm:$0xff]   ;;  %v7001_v0 = vld [vmem:[%s9655_s1 + $0x5a4] ss:$16 sps:$4 sm:$0xff]  }
  0x93   :  { %2123 = vmatprep.mubr.bf16.mxu0 %v384_v6  ;;  %2895 = vmatprep.mubr.bf16.mxu1 %v384_v6  ;;  %v6942_v6 = vld [vmem:[%s9655_s1 + $0x480] ss:$16 sps:$4 sm:$0xff]  }
  0x9a   :  { %2124 = vmatmul.mubr.bf16.gmra.mrb[44].mxu0 %v383_v11  ;;  %2896 = vmatmul.mubr.bf16.gmra.mrb[44].mxu1 %v383_v11  ;;  %v89_v11 = vld [vmem:[%s9656_s0 + $0x190] sm:$0xff] }
  0x9b   :  { %2133 = vmatprep.mubr.bf16.mxu0 %v392_v12  ;;  %2905 = vmatprep.mubr.bf16.mxu1 %v392_v12  ;;  %v97_v12 = vld [vmem:[%s9656_s0 + $0x1d0] sm:$0xff] }
  0xa2   :  { %2134 = vmatmul.mubr.bf16.gmra.mrb[48].mxu0 %v391_v17  ;;  %2906 = vmatmul.mubr.bf16.gmra.mrb[48].mxu1 %v391_v17  ;;  %v6978_v17 = vld [vmem:[%s9655_s1 + $0x4a8] ss:$16 sps:$4 sm:$0xff]  }
  0xa3   :  { %2143 = vmatprep.mubr.bf16.mxu0 %v400_v18  ;;  %2915 = vmatprep.mubr.bf16.mxu1 %v400_v18  ;;  %v321_v18 = vpack.c.bf16 %v97_v12, %v89_v11  ;;  %v7008_v12 = vld [vmem:[%s9655_s1 + $0x5c0] ss:$16 sps:$4 sm:$0xff]  }
  0xaa   :  { %2144 = vmatmul.mubr.bf16.gmra.mrb[52].mxu0 %v399_v23  ;;  %2916 = vmatmul.mubr.bf16.gmra.mrb[52].mxu1 %v399_v23  ;;  %v6984_v23 = vld [vmem:[%s9655_s1 + $0x4c8] ss:$16 sps:$4 sm:$0xff]  }
  0xab   :  { %2153 = vmatprep.mubr.bf16.mxu0 %v408_v24  ;;  %2925 = vmatprep.mubr.bf16.mxu1 %v408_v24  ;;  %v6989_v24 = vld [vmem:[%s9655_s1 + $0x4ec] ss:$16 sps:$4 sm:$0xff]  }
  0xb2   :  { %2154 = vmatmul.mubr.bf16.gmra.mrb[56].mxu0 %v407_v29  ;;  %2926 = vmatmul.mubr.bf16.gmra.mrb[56].mxu1 %v407_v29  ;;  %v6951_v29 = vld [vmem:[%s9655_s1 + $0x4e0] ss:$16 sps:$4 sm:$0xff]  }
  0xb3   :  { %2163 = vmatprep.mubr.bf16.mxu0 %v416_v30  ;;  %2935 = vmatprep.mubr.bf16.mxu1 %v416_v30  ;;  %v6956_v30 = vld [vmem:[%s9655_s1 + $0x504] ss:$16 sps:$4 sm:$0xff]  }
  0xba   :  { %2164 = vmatmul.mubr.bf16.gmra.mrb[60].mxu0 %v415_v35  ;;  %2936 = vmatmul.mubr.bf16.gmra.mrb[60].mxu1 %v415_v35  ;;  %v6995_v35 = vld [vmem:[%s9655_s1 + $0x50c] ss:$16 sps:$4 sm:$0xff]  }
  0xbb   :  { %2206 = vmatprep.mubr.bf16.mxu0 %v298_v36  ;;  %2978 = vmatprep.mubr.bf16.mxu1 %v298_v36  ;;  %v6965_v36 = vld [vmem:[%s9655_s1 + $0x524] ss:$16 sps:$4 sm:$0xff]  }
  0xc2   :  { %2207 = vmatmul.mubr.bf16.vlgmr.msra.gmra.mrb[0].mxu0 %v297_v42  ;;  %2979 = vmatmul.mubr.bf16.vlgmr.msra.gmra.mrb[0].mxu1 %v297_v42  ;;  %v146_v42 = vld [vmem:[%s9656_s0 + $0x358] sm:$0xff] }
  0xc3   :  { %2368 = vmatpush1.bf16.msra.mxu0 %v6930_v41  ;;  %2216 = vmatprep.mubr.bf16.mxu0 %v306_v43  ;;  %v138_v41 = vld [vmem:[%s9656_s0 + $0x318] sm:$0xff] }
  0xc4   :  { %2988 = vmatprep.mubr.bf16.mxu1 %v306_v43  ;;  %2369 = vmatprep.subr.bf16.mxu0 %v6935_v44  ;;  %v6963_v43 = vld [vmem:[%s9655_s1 + $0x520] ss:$16 sps:$4 sm:$0xff]   ;;  %v6974_v44 = vld [vmem:[%s9655_s1 + $0x544] ss:$16 sps:$4 sm:$0xff]   ;;  %v346_v47 = vpack.c.bf16 %v146_v42, %v138_v41  ;;  %v234_v41 = vld [vmem:[%s9656_s0 + $0x618] sm:$0xff] }
  0xc5   :  { %3140 = vmatpush1.bf16.msra.mxu1 %v6957_v45  ;;  %v6996_v45 = vld [vmem:[%s9655_s1 + $0x528] ss:$16 sps:$4 sm:$0xff]  }
  0xc6   :  { %3141 = vmatprep.subr.bf16.mxu1 %v6962_v46  ;;  %v337_v46 = vpack.c.bf16 %v129_v40, %v121_v39  ;;  %v217_v39 = vld [vmem:[%s9656_s0 + $0x590] sm:$0xff]  ;;  %v242_v42 = vld [vmem:[%s9656_s0 + $0x658] sm:$0xff] }
  0xc7   :  { %2370 = vmatpush1.bf16.msra.mxu0 %v6933_v49  ;;  %v7004_v49 = vld [vmem:[%s9655_s1 + $0x54c] ss:$16 sps:$4 sm:$0xff]   ;;  %v225_v40 = vld [vmem:[%s9656_s0 + $0x5d0] sm:$0xff] }
  0xc8   :  { %2371 = vmatprep.subr.bf16.mxu0 %v6938_v52  ;;  %v7007_v52 = vld [vmem:[%s9655_s1 + $0x56c] ss:$16 sps:$4 sm:$0xff]  }
  0xc9   :  { %3142 = vmatpush1.bf16.msra.mxu1 %v6960_v53  ;;  %v137_v53 = vld [vmem:[%s9656_s0 + $0x310] sm:$0xff] }
  0xca   :  { %2217 = vmatmul.mubr.bf16.gmra.mrb[4].mxu0 %v305_v54  ;;  %2989 = vmatmul.mubr.bf16.gmra.mrb[4].mxu1 %v305_v54  ;;  %v145_v54 = vld [vmem:[%s9656_s0 + $0x350] sm:$0xff] }
  0xcb   :  { %2226 = vmatprep.mubr.bf16.mxu0 %v314_v55  ;;  %2998 = vmatprep.mubr.bf16.mxu1 %v314_v55  ;;  %v154_v55 = vld [vmem:[%s9656_s0 + $0x398] sm:$0xff] }
  0xcc   :  { %2372 = vmatpush1.bf16.msra.mxu0 %v6936_v56  ;;  %3143 = vmatprep.subr.bf16.mxu1 %v6968_v57  ;;  %v162_v56 = vld [vmem:[%s9656_s0 + $0x3d8] sm:$0xff]  ;;  %v6981_v57 = vld [vmem:[%s9655_s1 + $0x560] ss:$16 sps:$4 sm:$0xff]  }
  0xcd   :  { %2373 = vmatprep.subr.bf16.mxu0 %v6941_v58  ;;  %3144 = vmatpush1.bf16.msra.mxu1 %v6966_v59  ;;  %v6992_v58 = vld [vmem:[%s9655_s1 + $0x584] ss:$16 sps:$4 sm:$0xff]   ;;  %v7005_v59 = vld [vmem:[%s9655_s1 + $0x568] ss:$16 sps:$4 sm:$0xff]   ;;  %v354_v61 = vpack.c.bf16 %v162_v56, %v154_v55 }
  0xce   :  { %3145 = vmatprep.subr.bf16.mxu1 %v6971_v60  ;;  %v345_v60 = vpack.c.bf16 %v145_v54, %v137_v53  ;;  %v266_v53 = vld [vmem:[%s9656_s0 + $0x718] sm:$0xff] }
  0xcf   :  { %v274_v54 = vld [vmem:[%s9656_s0 + $0x758] sm:$0xff] }
  0xd0   :  { %2374 = vmatpush1.bf16.msra.mxu0 %v6939_v1  ;;  %v7011_v1 = vld [vmem:[%s9655_s1 + $0x588] ss:$16 sps:$4 sm:$0xff]   ;;  %v410_v56 = vpack.c.bf16 %v274_v54, %v266_v53  ;;  %v7082_v53 = vld [vmem:[%s9655_s1 + $0x6cc] ss:$16 sps:$4 sm:$0xff]   ;;  %v7049_v54 = vld [vmem:[%s9655_s1 + $0x6e4] ss:$16 sps:$4 sm:$0xff]  }
  0xd1   :  { %2375 = vmatprep.subr.bf16.mxu0 %v6944_v2  ;;  %3146 = vmatpush1.bf16.msra.mxu1 %v6969_v3  ;;  %v7016_v2 = vld [vmem:[%s9655_s1 + $0x5ac] ss:$16 sps:$4 sm:$0xff]   ;;  %v153_v3 = vld [vmem:[%s9656_s0 + $0x390] sm:$0xff] }
  0xd2   :  { %2227 = vmatmul.mubr.bf16.gmra.mrb[8].mxu0 %v313_v4  ;;  %2999 = vmatmul.mubr.bf16.gmra.mrb[8].mxu1 %v313_v4  ;;  %v161_v4 = vld [vmem:[%s9656_s0 + $0x3d0] sm:$0xff] }
  0xd3   :  { %2236 = vmatprep.mubr.bf16.mxu0 %v322_v5  ;;  %3008 = vmatprep.mubr.bf16.mxu1 %v322_v5  ;;  %v170_v5 = vld [vmem:[%s9656_s0 + $0x418] sm:$0xff] }
  0xd4   :  { %2376 = vmatpush1.bf16.msra.mxu0 %v6942_v6  ;;  %3147 = vmatprep.subr.bf16.mxu1 %v6977_v7  ;;  %v178_v6 = vld [vmem:[%s9656_s0 + $0x458] sm:$0xff]  ;;  %v6999_v7 = vld [vmem:[%s9655_s1 + $0x5a0] ss:$16 sps:$4 sm:$0xff]  }
  0xd5   :  { %2377 = vmatprep.subr.bf16.mxu0 %v6947_v8  ;;  %3148 = vmatpush1.bf16.msra.mxu1 %v6975_v9  ;;  %v7010_v8 = vld [vmem:[%s9655_s1 + $0x5c4] ss:$16 sps:$4 sm:$0xff]   ;;  %v7014_v9 = vld [vmem:[%s9655_s1 + $0x5a8] ss:$16 sps:$4 sm:$0xff]   ;;  %v362_v11 = vpack.c.bf16 %v178_v6, %v170_v5 }
  0xd6   :  { %3149 = vmatprep.subr.bf16.mxu1 %v6980_v10  ;;  %v353_v10 = vpack.c.bf16 %v161_v4, %v153_v3  ;;  %v43_v5 = vld [vmem:[%s9656_s0 + $0x20] sm:$0xff] }
  0xd7   :  { %v51_v6 = vld [vmem:[%s9656_s0 + $0x60] sm:$0xff] }
  0xd8   :  { %2378 = vmatpush1.bf16.msra.mxu0 %v6945_v15  ;;  %v7020_v15 = vld [vmem:[%s9655_s1 + $0x5c8] ss:$16 sps:$4 sm:$0xff]  }
  0xd9   :  { %2379 = vmatprep.subr.bf16.mxu0 %v6950_v16  ;;  %3150 = vmatpush1.bf16.msra.mxu1 %v6978_v17  ;;  %v7025_v16 = vld [vmem:[%s9655_s1 + $0x5ec] ss:$16 sps:$4 sm:$0xff]   ;;  %v169_v17 = vld [vmem:[%s9656_s0 + $0x410] sm:$0xff] }
  0xda   :  { %2237 = vmatmul.mubr.bf16.gmra.mrb[12].mxu0 %v321_v18  ;;  %3009 = vmatmul.mubr.bf16.gmra.mrb[12].mxu1 %v321_v18  ;;  %v177_v18 = vld [vmem:[%s9656_s0 + $0x450] sm:$0xff] }
  0xdb   :  { %2246 = vmatprep.mubr.bf16.mxu0 %v330_v19  ;;  %3018 = vmatprep.mubr.bf16.mxu1 %v330_v19  ;;  %v186_v19 = vld [vmem:[%s9656_s0 + $0x498] sm:$0xff] }
  0xdc   :  { %2380 = vmatpush1.bf16.msra.mxu0 %v6948_v20  ;;  %3151 = vmatprep.subr.bf16.mxu1 %v6986_v21  ;;  %v194_v20 = vld [vmem:[%s9656_s0 + $0x4d8] sm:$0xff]  ;;  %v7017_v21 = vld [vmem:[%s9655_s1 + $0x5e0] ss:$16 sps:$4 sm:$0xff]  }
  0xdd   :  { %2381 = vmatprep.subr.bf16.mxu0 %v6953_v22  ;;  %3152 = vmatpush1.bf16.msra.mxu1 %v6984_v23  ;;  %v7023_v22 = vld [vmem:[%s9655_s1 + $0x5e8] ss:$16 sps:$4 sm:$0xff]   ;;  %v7028_v23 = vld [vmem:[%s9655_s1 + $0x604] ss:$16 sps:$4 sm:$0xff]   ;;  %v370_v25 = vpack.c.bf16 %v194_v20, %v186_v19 }
  0xde   :  { %3153 = vmatprep.subr.bf16.mxu1 %v6989_v24  ;;  %v361_v24 = vpack.c.bf16 %v177_v18, %v169_v17  ;;  %v7029_v17 = vld [vmem:[%s9655_s1 + $0x620] ss:$16 sps:$4 sm:$0xff]   ;;  %v76_v18 = vld [vmem:[%s9656_s0 + $0x128] sm:$0xff]  ;;  %v7034_v20 = vld [vmem:[%s9655_s1 + $0x644] ss:$16 sps:$4 sm:$0xff]  }
  0xdf   :  { %v84_v19 = vld [vmem:[%s9656_s0 + $0x168] sm:$0xff] }
  0xe0   :  { %2382 = vmatpush1.bf16.msra.mxu0 %v6951_v29  ;;  %v202_v29 = vld [vmem:[%s9656_s0 + $0x518] sm:$0xff] }
  0xe1   :  { %2383 = vmatprep.subr.bf16.mxu0 %v6956_v30  ;;  %3154 = vmatpush1.bf16.msra.mxu1 %v6987_v31  ;;  %v210_v30 = vld [vmem:[%s9656_s0 + $0x558] sm:$0xff]  ;;  %v369_v31 = vpack.c.bf16 %v193_v28, %v185_v27 }
  0xe2   :  { %2247 = vmatmul.mubr.bf16.gmra.mrb[16].mxu0 %v329_v32  ;;  %3019 = vmatmul.mubr.bf16.gmra.mrb[16].mxu1 %v329_v32  ;;  %v378_v32 = vpack.c.bf16 %v210_v30, %v202_v29  ;;  %v7062_v27 = vld [vmem:[%s9655_s1 + $0x648] ss:$16 sps:$4 sm:$0xff]   ;;  %v7067_v28 = vld [vmem:[%s9655_s1 + $0x66c] ss:$16 sps:$4 sm:$0xff]   ;;  %v75_v29 = vld [vmem:[%s9656_s0 + $0x120] sm:$0xff] }
  0xe3   :  { %2256 = vmatprep.mubr.bf16.mxu0 %v338_v33  ;;  %3028 = vmatprep.mubr.bf16.mxu1 %v338_v33  ;;  %v201_v33 = vld [vmem:[%s9656_s0 + $0x510] sm:$0xff]  ;;  %v83_v30 = vld [vmem:[%s9656_s0 + $0x160] sm:$0xff] }
  0xe4   :  { %2384 = vmatpush1.bf16.msra.mxu0 %v6954_v34  ;;  %3155 = vmatprep.subr.bf16.mxu1 %v6995_v35  ;;  %v209_v34 = vld [vmem:[%s9656_s0 + $0x550] sm:$0xff]  ;;  %v218_v35 = vld [vmem:[%s9656_s0 + $0x598] sm:$0xff] }
  0xe5   :  { %2385 = vmatprep.subr.bf16.mxu0 %v6965_v36  ;;  %3156 = vmatpush1.bf16.msra.mxu1 %v6993_v37  ;;  %v226_v36 = vld [vmem:[%s9656_s0 + $0x5d8] sm:$0xff]  ;;  %v377_v37 = vpack.c.bf16 %v209_v34, %v201_v33  ;;  %v7035_v33 = vld [vmem:[%s9655_s1 + $0x660] ss:$16 sps:$4 sm:$0xff]   ;;  %v7040_v34 = vld [vmem:[%s9655_s1 + $0x684] ss:$16 sps:$4 sm:$0xff]  }
  0xe6   :  { %3157 = vmatprep.subr.bf16.mxu1 %v6998_v38  ;;  %v386_v38 = vpack.c.bf16 %v226_v36, %v218_v35  ;;  %v7065_v35 = vld [vmem:[%s9655_s1 + $0x668] ss:$16 sps:$4 sm:$0xff]   ;;  %v315_v36 = vpack.c.bf16 %v83_v30, %v75_v29  ;;  %v7086_v30 = vld [vmem:[%s9655_s1 + $0x780] ss:$16 sps:$4 sm:$0xff]  }
  0xe8   :  { %2386 = vmatpush1.bf16.msra.mxu0 %v6963_v43  ;;  %v385_v43 = vpack.c.bf16 %v225_v40, %v217_v39  ;;  %v7073_v39 = vld [vmem:[%s9655_s1 + $0x68c] ss:$16 sps:$4 sm:$0xff]   ;;  %v7043_v40 = vld [vmem:[%s9655_s1 + $0x6a4] ss:$16 sps:$4 sm:$0xff]  }
  0xe9   :  { %2387 = vmatprep.subr.bf16.mxu0 %v6974_v44  ;;  %3158 = vmatpush1.bf16.msra.mxu1 %v6996_v45  ;;  %v394_v44 = vpack.c.bf16 %v242_v42, %v234_v41  ;;  %v233_v45 = vld [vmem:[%s9656_s0 + $0x610] sm:$0xff]  ;;  %v7071_v41 = vld [vmem:[%s9655_s1 + $0x688] ss:$16 sps:$4 sm:$0xff]   ;;  %v7076_v42 = vld [vmem:[%s9655_s1 + $0x6ac] ss:$16 sps:$4 sm:$0xff]  }
  0xea   :  { %2257 = vmatmul.mubr.bf16.gmra.mrb[20].mxu0 %v337_v46  ;;  %3029 = vmatmul.mubr.bf16.gmra.mrb[20].mxu1 %v337_v46  ;;  %v241_v46 = vld [vmem:[%s9656_s0 + $0x650] sm:$0xff] }
  0xeb   :  { %2266 = vmatprep.mubr.bf16.mxu0 %v346_v47  ;;  %3038 = vmatprep.mubr.bf16.mxu1 %v346_v47  ;;  %v250_v47 = vld [vmem:[%s9656_s0 + $0x698] sm:$0xff] }
  0xec   :  { %2388 = vmatpush1.bf16.msra.mxu0 %v6972_v48  ;;  %3159 = vmatprep.subr.bf16.mxu1 %v7004_v49  ;;  %v258_v48 = vld [vmem:[%s9656_s0 + $0x6d8] sm:$0xff]  ;;  %v393_v49 = vpack.c.bf16 %v241_v46, %v233_v45  ;;  %v108_v45 = vld [vmem:[%s9656_s0 + $0x228] sm:$0xff] }
  0xed   :  { %2389 = vmatprep.subr.bf16.mxu0 %v6983_v50  ;;  %3160 = vmatpush1.bf16.msra.mxu1 %v7002_v51  ;;  %v402_v50 = vpack.c.bf16 %v258_v48, %v250_v47  ;;  %v249_v51 = vld [vmem:[%s9656_s0 + $0x690] sm:$0xff]  ;;  %v116_v46 = vld [vmem:[%s9656_s0 + $0x268] sm:$0xff] }
  0xee   :  { %3161 = vmatprep.subr.bf16.mxu1 %v7007_v52  ;;  %v257_v52 = vld [vmem:[%s9656_s0 + $0x6d0] sm:$0xff] }
  0xef   :  { %v401_v55 = vpack.c.bf16 %v257_v52, %v249_v51  ;;  %v7041_v47 = vld [vmem:[%s9655_s1 + $0x6a0] ss:$16 sps:$4 sm:$0xff]   ;;  %v7046_v48 = vld [vmem:[%s9655_s1 + $0x6c4] ss:$16 sps:$4 sm:$0xff]   ;;  %v332_v51 = vpack.c.bf16 %v116_v46, %v108_v45  ;;  %v7118_v45 = vld [vmem:[%s9655_s1 + $0x7cc] ss:$16 sps:$4 sm:$0xff]  }
  0xf0   :  { %2390 = vmatpush1.bf16.msra.mxu0 %v6981_v57  ;;  %v265_v57 = vld [vmem:[%s9656_s0 + $0x710] sm:$0xff] }
  0xf1   :  { %2391 = vmatprep.subr.bf16.mxu0 %v6992_v58  ;;  %3162 = vmatpush1.bf16.msra.mxu1 %v7005_v59  ;;  %v273_v58 = vld [vmem:[%s9656_s0 + $0x750] sm:$0xff]  ;;  %v282_v59 = vld [vmem:[%s9656_s0 + $0x798] sm:$0xff] }
  0xf2   :  { %2267 = vmatmul.mubr.bf16.gmra.mrb[24].mxu0 %v345_v60  ;;  %3039 = vmatmul.mubr.bf16.gmra.mrb[24].mxu1 %v345_v60  ;;  %v290_v60 = vld [vmem:[%s9656_s0 + $0x7d8] sm:$0xff]  ;;  %v7044_v52 = vld [vmem:[%s9655_s1 + $0x6c0] ss:$16 sps:$4 sm:$0xff]   ;;  %v7115_v46 = vld [vmem:[%s9655_s1 + $0x7e4] ss:$16 sps:$4 sm:$0xff]  }
  0xf3   :  { %2276 = vmatprep.mubr.bf16.mxu0 %v354_v61  ;;  %3048 = vmatprep.mubr.bf16.mxu1 %v354_v61  ;;  %v409_v61 = vpack.c.bf16 %v273_v58, %v265_v57  ;;  %v107_v57 = vld [vmem:[%s9656_s0 + $0x220] sm:$0xff] }
  0xf4   :  { %2392 = vmatpush1.bf16.msra.mxu0 %v6990_v62  ;;  %3163 = vmatprep.subr.bf16.mxu1 %v7013_v63  ;;  %v418_v62 = vpack.c.bf16 %v290_v60, %v282_v59  ;;  %v281_v63 = vld [vmem:[%s9656_s0 + $0x790] sm:$0xff]  ;;  %v115_v58 = vld [vmem:[%s9656_s0 + $0x260] sm:$0xff]  ;;  %v124_v59 = vld [vmem:[%s9656_s0 + $0x2a8] sm:$0xff] }
  0xf5   :  { %2393 = vmatprep.subr.bf16.mxu0 %v7001_v0  ;;  %3164 = vmatpush1.bf16.msra.mxu1 %v7011_v1  ;;  %v289_v0 = vld [vmem:[%s9656_s0 + $0x7d0] sm:$0xff]  ;;  %v44_v1 = vld [vmem:[%s9656_s0 + $0x28] sm:$0xff] }
  0xf6   :  { %3165 = vmatprep.subr.bf16.mxu1 %v7016_v2  ;;  %v52_v2 = vld [vmem:[%s9656_s0 + $0x68] sm:$0xff]  ;;  %v417_v3 = vpack.c.bf16 %v289_v0, %v281_v63  ;;  %v331_v0 = vpack.c.bf16 %v115_v58, %v107_v57  ;;  %v187_v57 = vld [vmem:[%s9656_s0 + $0x4a0] sm:$0xff] }
  0xf7   :  { %v300_v4 = vpack.c.bf16 %v52_v2, %v44_v1  ;;  %v132_v60 = vld [vmem:[%s9656_s0 + $0x2e8] sm:$0xff]  ;;  %v7050_v2 = vld [vmem:[%s9655_s1 + $0x700] ss:$16 sps:$4 sm:$0xff]  }
  0xf8   :  { %2394 = vmatpush1.bf16.msra.mxu0 %v6999_v7  ;;  %v60_v7 = vld [vmem:[%s9656_s0 + $0xa8] sm:$0xff]  ;;  %v340_v1 = vpack.c.bf16 %v132_v60, %v124_v59  ;;  %v195_v58 = vld [vmem:[%s9656_s0 + $0x4e0] sm:$0xff] }
  0xf9   :  { %2395 = vmatprep.subr.bf16.mxu0 %v7010_v8  ;;  %3166 = vmatpush1.bf16.msra.mxu1 %v7014_v9  ;;  %v68_v8 = vld [vmem:[%s9656_s0 + $0xe8] sm:$0xff]  ;;  %v299_v9 = vpack.c.bf16 %v51_v6, %v43_v5 }
  0xfa   :  { %2277 = vmatmul.mubr.bf16.gmra.mrb[28].mxu0 %v353_v10  ;;  %3049 = vmatmul.mubr.bf16.gmra.mrb[28].mxu1 %v353_v10  ;;  %v7026_v10 = vld [vmem:[%s9655_s1 + $0x600] ss:$16 sps:$4 sm:$0xff]   ;;  %v7083_v63 = vld [vmem:[%s9655_s1 + $0x6e8] ss:$16 sps:$4 sm:$0xff]   ;;  %v7094_v6 = vld [vmem:[%s9655_s1 + $0x72c] ss:$16 sps:$4 sm:$0xff]  }
  0xfb   :  { %2286 = vmatprep.mubr.bf16.mxu0 %v362_v11  ;;  %3058 = vmatprep.mubr.bf16.mxu1 %v362_v11  ;;  %v308_v11 = vpack.c.bf16 %v68_v8, %v60_v7  ;;  %v7089_v5 = vld [vmem:[%s9655_s1 + $0x708] ss:$16 sps:$4 sm:$0xff]   ;;  %v123_v7 = vld [vmem:[%s9656_s0 + $0x2a0] sm:$0xff] }
  0xfc   :  { %2396 = vmatpush1.bf16.msra.mxu0 %v7008_v12  ;;  %3167 = vmatprep.subr.bf16.mxu1 %v7022_v13  ;;  %v7031_v12 = vld [vmem:[%s9655_s1 + $0x624] ss:$16 sps:$4 sm:$0xff]   ;;  %v7053_v13 = vld [vmem:[%s9655_s1 + $0x608] ss:$16 sps:$4 sm:$0xff]  }
  0xfd   :  { %2397 = vmatprep.subr.bf16.mxu0 %v7019_v14  ;;  %3168 = vmatpush1.bf16.msra.mxu1 %v7020_v15  ;;  %v7058_v14 = vld [vmem:[%s9655_s1 + $0x62c] ss:$16 sps:$4 sm:$0xff]   ;;  %v59_v15 = vld [vmem:[%s9656_s0 + $0xa0] sm:$0xff] }
  0xfe   :  { %3169 = vmatprep.subr.bf16.mxu1 %v7025_v16  ;;  %v67_v16 = vld [vmem:[%s9656_s0 + $0xe0] sm:$0xff]  ;;  %v204_v59 = vld [vmem:[%s9656_s0 + $0x528] sm:$0xff] }
  0xff   :  { %v131_v8 = vld [vmem:[%s9656_s0 + $0x2e0] sm:$0xff]  ;;  %v212_v60 = vld [vmem:[%s9656_s0 + $0x568] sm:$0xff] }
 0x100   :  { %2398 = vmatpush1.bf16.msra.mxu0 %v7017_v21  ;;  %v7056_v21 = vld [vmem:[%s9655_s1 + $0x628] ss:$16 sps:$4 sm:$0xff]  }
 0x101   :  { %3170 = vmatpush1.bf16.msra.mxu1 %v7023_v22  ;;  %2560 = vmatprep.subr.bf16.mxu0 %v7028_v23  ;;  %v307_v22 = vpack.c.bf16 %v67_v16, %v59_v15  ;;  %v316_v23 = vpack.c.bf16 %v84_v19, %v76_v18  ;;  %v7068_v16 = vld [vmem:[%s9655_s1 + $0x740] ss:$16 sps:$4 sm:$0xff]   ;;  %v7079_v18 = vld [vmem:[%s9655_s1 + $0x764] ss:$16 sps:$4 sm:$0xff]   ;;  %v7098_v19 = vld [vmem:[%s9655_s1 + $0x748] ss:$16 sps:$4 sm:$0xff]  }
 0x102   :  { %2287 = vmatmul.mubr.bf16.gmra.mrb[32].mxu0 %v361_v24  ;;  %3059 = vmatmul.mubr.bf16.gmra.mrb[32].mxu1 %v361_v24  ;;  %v7032_v24 = vld [vmem:[%s9655_s1 + $0x640] ss:$16 sps:$4 sm:$0xff]  }
 0x103   :  { %2296 = vmatprep.mubr.bf16.mxu0 %v370_v25  ;;  %3068 = vmatprep.mubr.bf16.mxu1 %v370_v25  ;;  %v7064_v25 = vld [vmem:[%s9655_s1 + $0x64c] ss:$16 sps:$4 sm:$0xff]  }
 0x104   :  { %3332 = vmatprep.subr.bf16.mxu1 %v7055_v26  ;;  %v7037_v26 = vld [vmem:[%s9655_s1 + $0x664] ss:$16 sps:$4 sm:$0xff]  }
 0x10a   :  { %2297 = vmatmul.mubr.bf16.gmra.mrb[36].mxu0 %v369_v31  ;;  %3069 = vmatmul.mubr.bf16.gmra.mrb[36].mxu1 %v369_v31  ;;  %v92_v31 = vld [vmem:[%s9656_s0 + $0x1a8] sm:$0xff] }
 0x10b   :  { %2306 = vmatprep.mubr.bf16.mxu0 %v378_v32  ;;  %3078 = vmatprep.mubr.bf16.mxu1 %v378_v32  ;;  %v100_v32 = vld [vmem:[%s9656_s0 + $0x1e8] sm:$0xff] }
 0x112   :  { %2307 = vmatmul.mubr.bf16.gmra.mrb[40].mxu0 %v377_v37  ;;  %3079 = vmatmul.mubr.bf16.gmra.mrb[40].mxu1 %v377_v37  ;;  %v324_v37 = vpack.c.bf16 %v100_v32, %v92_v31  ;;  %v7109_v31 = vld [vmem:[%s9655_s1 + $0x78c] ss:$16 sps:$4 sm:$0xff]   ;;  %v7097_v32 = vld [vmem:[%s9655_s1 + $0x7a4] ss:$16 sps:$4 sm:$0xff]  }
 0x113   :  { %2316 = vmatprep.mubr.bf16.mxu0 %v386_v38  ;;  %3088 = vmatprep.mubr.bf16.mxu1 %v386_v38  ;;  %v7038_v38 = vld [vmem:[%s9655_s1 + $0x680] ss:$16 sps:$4 sm:$0xff]  }
 0x11a   :  { %2317 = vmatmul.mubr.bf16.gmra.mrb[44].mxu0 %v385_v43  ;;  %3089 = vmatmul.mubr.bf16.gmra.mrb[44].mxu1 %v385_v43  ;;  %v91_v43 = vld [vmem:[%s9656_s0 + $0x1a0] sm:$0xff] }
 0x11b   :  { %2326 = vmatprep.mubr.bf16.mxu0 %v394_v44  ;;  %3098 = vmatprep.mubr.bf16.mxu1 %v394_v44  ;;  %v99_v44 = vld [vmem:[%s9656_s0 + $0x1e0] sm:$0xff] }
 0x122   :  { %2327 = vmatmul.mubr.bf16.gmra.mrb[48].mxu0 %v393_v49  ;;  %3099 = vmatmul.mubr.bf16.gmra.mrb[48].mxu1 %v393_v49  ;;  %v7074_v49 = vld [vmem:[%s9655_s1 + $0x6a8] ss:$16 sps:$4 sm:$0xff]  }
 0x123   :  { %2336 = vmatprep.mubr.bf16.mxu0 %v402_v50  ;;  %3108 = vmatprep.mubr.bf16.mxu1 %v402_v50  ;;  %v323_v50 = vpack.c.bf16 %v99_v44, %v91_v43  ;;  %v7104_v44 = vld [vmem:[%s9655_s1 + $0x7c0] ss:$16 sps:$4 sm:$0xff]  }
 0x12a   :  { %2337 = vmatmul.mubr.bf16.gmra.mrb[52].mxu0 %v401_v55  ;;  %3109 = vmatmul.mubr.bf16.gmra.mrb[52].mxu1 %v401_v55  ;;  %v7080_v55 = vld [vmem:[%s9655_s1 + $0x6c8] ss:$16 sps:$4 sm:$0xff]  }
 0x12b   :  { %2346 = vmatprep.mubr.bf16.mxu0 %v410_v56  ;;  %3118 = vmatprep.mubr.bf16.mxu1 %v410_v56  ;;  %v7085_v56 = vld [vmem:[%s9655_s1 + $0x6ec] ss:$16 sps:$4 sm:$0xff]  }
 0x132   :  { %2347 = vmatmul.mubr.bf16.gmra.mrb[56].mxu0 %v409_v61  ;;  %3119 = vmatmul.mubr.bf16.gmra.mrb[56].mxu1 %v409_v61  ;;  %v7047_v61 = vld [vmem:[%s9655_s1 + $0x6e0] ss:$16 sps:$4 sm:$0xff]  }
 0x133   :  { %2356 = vmatprep.mubr.bf16.mxu0 %v418_v62  ;;  %3128 = vmatprep.mubr.bf16.mxu1 %v418_v62  ;;  %v7052_v62 = vld [vmem:[%s9655_s1 + $0x704] ss:$16 sps:$4 sm:$0xff]  }
 0x13a   :  { %2357 = vmatmul.mubr.bf16.gmra.mrb[60].mxu0 %v417_v3  ;;  %3129 = vmatmul.mubr.bf16.gmra.mrb[60].mxu1 %v417_v3  ;;  %v7091_v3 = vld [vmem:[%s9655_s1 + $0x70c] ss:$16 sps:$4 sm:$0xff]  }
 0x13b   :  { %2399 = vmatprep.mubr.bf16.mxu0 %v300_v4  ;;  %3171 = vmatprep.mubr.bf16.mxu1 %v300_v4  ;;  %v7061_v4 = vld [vmem:[%s9655_s1 + $0x724] ss:$16 sps:$4 sm:$0xff]  }
 0x142   :  { %2400 = vmatmul.mubr.bf16.vlgmr.msra.gmra.mrb[0].mxu0 %v299_v9  ;;  %3172 = vmatmul.mubr.bf16.vlgmr.msra.gmra.mrb[0].mxu1 %v299_v9  ;;  %v140_v9 = vld [vmem:[%s9656_s0 + $0x328] sm:$0xff] }
 0x143   :  { %2561 = vmatpush1.bf16.msra.mxu0 %v7026_v10  ;;  %2409 = vmatprep.mubr.bf16.mxu0 %v308_v11  ;;  %v148_v10 = vld [vmem:[%s9656_s0 + $0x368] sm:$0xff] }
 0x144   :  { %3181 = vmatprep.mubr.bf16.mxu1 %v308_v11  ;;  %2562 = vmatprep.subr.bf16.mxu0 %v7031_v12  ;;  %v7059_v11 = vld [vmem:[%s9655_s1 + $0x720] ss:$16 sps:$4 sm:$0xff]   ;;  %v7070_v12 = vld [vmem:[%s9655_s1 + $0x744] ss:$16 sps:$4 sm:$0xff]   ;;  %v348_v15 = vpack.c.bf16 %v148_v10, %v140_v9 }
 0x145   :  { %3333 = vmatpush1.bf16.msra.mxu1 %v7053_v13  ;;  %v7092_v13 = vld [vmem:[%s9655_s1 + $0x728] ss:$16 sps:$4 sm:$0xff]  }
 0x146   :  { %3334 = vmatprep.subr.bf16.mxu1 %v7058_v14  ;;  %v339_v14 = vpack.c.bf16 %v131_v8, %v123_v7  ;;  %v236_v7 = vld [vmem:[%s9656_s0 + $0x628] sm:$0xff] }
 0x147   :  { %2563 = vmatpush1.bf16.msra.mxu0 %v7029_v17  ;;  %v7100_v17 = vld [vmem:[%s9655_s1 + $0x74c] ss:$16 sps:$4 sm:$0xff]  }
 0x148   :  { %2564 = vmatprep.subr.bf16.mxu0 %v7034_v20  ;;  %v7103_v20 = vld [vmem:[%s9655_s1 + $0x76c] ss:$16 sps:$4 sm:$0xff]  }
 0x149   :  { %3335 = vmatpush1.bf16.msra.mxu1 %v7056_v21  ;;  %v139_v21 = vld [vmem:[%s9656_s0 + $0x320] sm:$0xff]  ;;  %v244_v8 = vld [vmem:[%s9656_s0 + $0x668] sm:$0xff] }
 0x14a   :  { %2410 = vmatmul.mubr.bf16.gmra.mrb[4].mxu0 %v307_v22  ;;  %3182 = vmatmul.mubr.bf16.gmra.mrb[4].mxu1 %v307_v22  ;;  %v147_v22 = vld [vmem:[%s9656_s0 + $0x360] sm:$0xff]  ;;  %v396_v10 = vpack.c.bf16 %v244_v8, %v236_v7 }
 0x14b   :  { %2419 = vmatprep.mubr.bf16.mxu0 %v316_v23  ;;  %3191 = vmatprep.mubr.bf16.mxu1 %v316_v23  ;;  %v156_v23 = vld [vmem:[%s9656_s0 + $0x3a8] sm:$0xff] }
 0x14c   :  { %2565 = vmatpush1.bf16.msra.mxu0 %v7032_v24  ;;  %3336 = vmatprep.subr.bf16.mxu1 %v7064_v25  ;;  %v164_v24 = vld [vmem:[%s9656_s0 + $0x3e8] sm:$0xff]  ;;  %v7077_v25 = vld [vmem:[%s9655_s1 + $0x760] ss:$16 sps:$4 sm:$0xff]  }
 0x14d   :  { %2566 = vmatprep.subr.bf16.mxu0 %v7037_v26  ;;  %3337 = vmatpush1.bf16.msra.mxu1 %v7062_v27  ;;  %v7088_v26 = vld [vmem:[%s9655_s1 + $0x784] ss:$16 sps:$4 sm:$0xff]   ;;  %v7101_v27 = vld [vmem:[%s9655_s1 + $0x768] ss:$16 sps:$4 sm:$0xff]   ;;  %v356_v29 = vpack.c.bf16 %v164_v24, %v156_v23 }
 0x14e   :  { %3338 = vmatprep.subr.bf16.mxu1 %v7067_v28  ;;  %v347_v28 = vpack.c.bf16 %v147_v22, %v139_v21  ;;  %v276_v21 = vld [vmem:[%s9656_s0 + $0x768] sm:$0xff]  ;;  %v267_v24 = vld [vmem:[%s9656_s0 + $0x720] sm:$0xff] }
 0x14f   :  { %v7140_v8 = vld [vmem:[%s9657_s3 + $0x60] ss:$8 sps:$4 sm:$0xff]  }
 0x150   :  { %2567 = vmatpush1.bf16.msra.mxu0 %v7035_v33  ;;  %v7107_v33 = vld [vmem:[%s9655_s1 + $0x788] ss:$16 sps:$4 sm:$0xff]  }
 0x151   :  { %2568 = vmatprep.subr.bf16.mxu0 %v7040_v34  ;;  %3339 = vmatpush1.bf16.msra.mxu1 %v7065_v35  ;;  %v7112_v34 = vld [vmem:[%s9655_s1 + $0x7ac] ss:$16 sps:$4 sm:$0xff]   ;;  %v155_v35 = vld [vmem:[%s9656_s0 + $0x3a0] sm:$0xff] }
 0x152   :  { %2420 = vmatmul.mubr.bf16.gmra.mrb[8].mxu0 %v315_v36  ;;  %3192 = vmatmul.mubr.bf16.gmra.mrb[8].mxu1 %v315_v36  ;;  %v163_v36 = vld [vmem:[%s9656_s0 + $0x3e0] sm:$0xff] }
 0x153   :  { %2429 = vmatprep.mubr.bf16.mxu0 %v324_v37  ;;  %3201 = vmatprep.mubr.bf16.mxu1 %v324_v37  ;;  %v172_v37 = vld [vmem:[%s9656_s0 + $0x428] sm:$0xff] }
 0x154   :  { %2569 = vmatpush1.bf16.msra.mxu0 %v7038_v38  ;;  %3340 = vmatprep.subr.bf16.mxu1 %v7073_v39  ;;  %v180_v38 = vld [vmem:[%s9656_s0 + $0x468] sm:$0xff]  ;;  %v7095_v39 = vld [vmem:[%s9655_s1 + $0x7a0] ss:$16 sps:$4 sm:$0xff]  }
 0x155   :  { %2570 = vmatprep.subr.bf16.mxu0 %v7043_v40  ;;  %3341 = vmatpush1.bf16.msra.mxu1 %v7071_v41  ;;  %v7106_v40 = vld [vmem:[%s9655_s1 + $0x7c4] ss:$16 sps:$4 sm:$0xff]   ;;  %v7110_v41 = vld [vmem:[%s9655_s1 + $0x7a8] ss:$16 sps:$4 sm:$0xff]   ;;  %v364_v43 = vpack.c.bf16 %v180_v38, %v172_v37 }
 0x156   :  { %3342 = vmatprep.subr.bf16.mxu1 %v7076_v42  ;;  %v355_v42 = vpack.c.bf16 %v163_v36, %v155_v35  ;;  %v45_v36 = vld [vmem:[%s9656_s0 + $0x30] sm:$0xff]  ;;  %v62_v38 = vld [vmem:[%s9656_s0 + $0xb8] sm:$0xff] }
 0x157   :  { %v53_v37 = vld [vmem:[%s9656_s0 + $0x70] sm:$0xff] }
 0x158   :  { %2571 = vmatpush1.bf16.msra.mxu0 %v7041_v47  ;;  %v7116_v47 = vld [vmem:[%s9655_s1 + $0x7c8] ss:$16 sps:$4 sm:$0xff]  }
 0x159   :  { %2572 = vmatprep.subr.bf16.mxu0 %v7046_v48  ;;  %3343 = vmatpush1.bf16.msra.mxu1 %v7074_v49  ;;  %v7121_v48 = vld [vmem:[%s9655_s1 + $0x7ec] ss:$16 sps:$4 sm:$0xff]   ;;  %v171_v49 = vld [vmem:[%s9656_s0 + $0x420] sm:$0xff] }
 0x15a   :  { %2430 = vmatmul.mubr.bf16.gmra.mrb[12].mxu0 %v323_v50  ;;  %3202 = vmatmul.mubr.bf16.gmra.mrb[12].mxu1 %v323_v50  ;;  %v179_v50 = vld [vmem:[%s9656_s0 + $0x460] sm:$0xff] }
 0x15b   :  { %2439 = vmatprep.mubr.bf16.mxu0 %v332_v51  ;;  %3211 = vmatprep.mubr.bf16.mxu1 %v332_v51  ;;  %v188_v51 = vld [vmem:[%s9656_s0 + $0x4a8] sm:$0xff] }
 0x15c   :  { %2573 = vmatpush1.bf16.msra.mxu0 %v7044_v52  ;;  %3344 = vmatprep.subr.bf16.mxu1 %v7082_v53  ;;  %v196_v52 = vld [vmem:[%s9656_s0 + $0x4e8] sm:$0xff]  ;;  %v7113_v53 = vld [vmem:[%s9655_s1 + $0x7e0] ss:$16 sps:$4 sm:$0xff]  }
 0x15d   :  { %2574 = vmatprep.subr.bf16.mxu0 %v7049_v54  ;;  %3345 = vmatpush1.bf16.msra.mxu1 %v7080_v55  ;;  %v7119_v54 = vld [vmem:[%s9655_s1 + $0x7e8] ss:$16 sps:$4 sm:$0xff]   ;;  %v363_v55 = vpack.c.bf16 %v179_v50, %v171_v49  ;;  %v7130_v49 = vld [vmem:[%s9657_s3 + $0x24] ss:$8 sps:$4 sm:$0xff]  }
 0x15e   :  { %3346 = vmatprep.subr.bf16.mxu1 %v7085_v56  ;;  %v372_v56 = vpack.c.bf16 %v196_v52, %v188_v51  ;;  %v7128_v52 = vld [vmem:[%s9657_s3 + $0x20] ss:$8 sps:$4 sm:$0xff]  }
 0x160   :  { %2575 = vmatpush1.bf16.msra.mxu0 %v7047_v61  ;;  %v371_v61 = vpack.c.bf16 %v195_v58, %v187_v57  ;;  %v102_v57 = vld [vmem:[%s9656_s0 + $0x1f8] sm:$0xff] }
 0x161   :  { %2576 = vmatprep.subr.bf16.mxu0 %v7052_v62  ;;  %3347 = vmatpush1.bf16.msra.mxu1 %v7083_v63  ;;  %v380_v62 = vpack.c.bf16 %v212_v60, %v204_v59  ;;  %v203_v63 = vld [vmem:[%s9656_s0 + $0x520] sm:$0xff]  ;;  %v7131_v58 = vld [vmem:[%s9657_s3 + $0x30] ss:$8 sps:$4 sm:$0xff]  }
 0x162   :  { %2440 = vmatmul.mubr.bf16.gmra.mrb[16].mxu0 %v331_v0  ;;  %3212 = vmatmul.mubr.bf16.gmra.mrb[16].mxu1 %v331_v0  ;;  %v211_v0 = vld [vmem:[%s9656_s0 + $0x560] sm:$0xff] }
 0x163   :  { %2449 = vmatprep.mubr.bf16.mxu0 %v340_v1  ;;  %3221 = vmatprep.mubr.bf16.mxu1 %v340_v1  ;;  %v220_v1 = vld [vmem:[%s9656_s0 + $0x5a8] sm:$0xff] }
 0x164   :  { %2577 = vmatpush1.bf16.msra.mxu0 %v7050_v2  ;;  %3348 = vmatprep.subr.bf16.mxu1 %v7091_v3  ;;  %v228_v2 = vld [vmem:[%s9656_s0 + $0x5e8] sm:$0xff]  ;;  %v379_v3 = vpack.c.bf16 %v211_v0, %v203_v63  ;;  %v7139_v63 = vld [vmem:[%s9657_s3 + $0x54] ss:$8 sps:$4 sm:$0xff]  }
 0x165   :  { %2578 = vmatprep.subr.bf16.mxu0 %v7061_v4  ;;  %3349 = vmatpush1.bf16.msra.mxu1 %v7089_v5  ;;  %v388_v4 = vpack.c.bf16 %v228_v2, %v220_v1  ;;  %v219_v5 = vld [vmem:[%s9656_s0 + $0x5a0] sm:$0xff]  ;;  %v93_v0 = vld [vmem:[%s9656_s0 + $0x1b0] sm:$0xff]  ;;  %v110_v2 = vld [vmem:[%s9656_s0 + $0x238] sm:$0xff] }
 0x166   :  { %3350 = vmatprep.subr.bf16.mxu1 %v7094_v6  ;;  %v227_v6 = vld [vmem:[%s9656_s0 + $0x5e0] sm:$0xff]  ;;  %v101_v1 = vld [vmem:[%s9656_s0 + $0x1f0] sm:$0xff] }
 0x167   :  { %v387_v9 = vpack.c.bf16 %v227_v6, %v219_v5  ;;  %v7136_v59 = vld [vmem:[%s9657_s3 + $0x44] ss:$8 sps:$4 sm:$0xff]   ;;  %v325_v6 = vpack.c.bf16 %v101_v1, %v93_v0  ;;  %v230_v0 = vld [vmem:[%s9656_s0 + $0x5f8] sm:$0xff] }
 0x168   :  { %2579 = vmatpush1.bf16.msra.mxu0 %v7059_v11  ;;  %v235_v11 = vld [vmem:[%s9656_s0 + $0x620] sm:$0xff] }
 0x169   :  { %2580 = vmatprep.subr.bf16.mxu0 %v7070_v12  ;;  %3351 = vmatpush1.bf16.msra.mxu1 %v7092_v13  ;;  %v243_v12 = vld [vmem:[%s9656_s0 + $0x660] sm:$0xff]  ;;  %v252_v13 = vld [vmem:[%s9656_s0 + $0x6a8] sm:$0xff] }
 0x16a   :  { %2450 = vmatmul.mubr.bf16.gmra.mrb[20].mxu0 %v339_v14  ;;  %3222 = vmatmul.mubr.bf16.gmra.mrb[20].mxu1 %v339_v14  ;;  %v260_v14 = vld [vmem:[%s9656_s0 + $0x6e8] sm:$0xff] }
 0x16b   :  { %2459 = vmatprep.mubr.bf16.mxu0 %v348_v15  ;;  %3231 = vmatprep.mubr.bf16.mxu1 %v348_v15  ;;  %v7124_v15 = vld [vmem:[%s9657_s3 + $0x4] ss:$8 sps:$4 sm:$0xff]  }
 0x16c   :  { %2581 = vmatpush1.bf16.msra.mxu0 %v7068_v16  ;;  %3352 = vmatprep.subr.bf16.mxu1 %v7100_v17  ;;  %v395_v16 = vpack.c.bf16 %v243_v12, %v235_v11  ;;  %v404_v17 = vpack.c.bf16 %v260_v14, %v252_v13  ;;  %v7142_v5 = vld [vmem:[%s9657_s3 + $0x64] ss:$8 sps:$4 sm:$0xff]   ;;  %v117_v11 = vld [vmem:[%s9656_s0 + $0x270] sm:$0xff]  ;;  %v126_v12 = vld [vmem:[%s9656_s0 + $0x2b8] sm:$0xff] }
 0x16d   :  { %2582 = vmatprep.subr.bf16.mxu0 %v7079_v18  ;;  %3353 = vmatpush1.bf16.msra.mxu1 %v7098_v19  ;;  %v251_v18 = vld [vmem:[%s9656_s0 + $0x6a0] sm:$0xff]  ;;  %v134_v13 = vld [vmem:[%s9656_s0 + $0x2f8] sm:$0xff] }
 0x16e   :  { %3354 = vmatprep.subr.bf16.mxu1 %v7103_v20  ;;  %v259_v19 = vld [vmem:[%s9656_s0 + $0x6e0] sm:$0xff]  ;;  %v268_v20 = vld [vmem:[%s9656_s0 + $0x728] sm:$0xff]  ;;  %v7143_v14 = vld [vmem:[%s9657_s3 + $0x70] ss:$8 sps:$4 sm:$0xff]  }
 0x16f   :  { %v403_v22 = vpack.c.bf16 %v259_v19, %v251_v18  ;;  %v412_v23 = vpack.c.bf16 %v276_v21, %v268_v20  ;;  %v7146_v18 = vld [vmem:[%s9657_s3 + $0x80] ss:$8 sps:$4 sm:$0xff]   ;;  %v7151_v19 = vld [vmem:[%s9657_s3 + $0x94] ss:$8 sps:$4 sm:$0xff]  }
 0x170   :  { %2583 = vmatpush1.bf16.msra.mxu0 %v7077_v25  ;;  %v275_v25 = vld [vmem:[%s9656_s0 + $0x760] sm:$0xff]  ;;  %v125_v20 = vld [vmem:[%s9656_s0 + $0x2b0] sm:$0xff] }
 0x171   :  { %2584 = vmatprep.subr.bf16.mxu0 %v7088_v26  ;;  %3355 = vmatpush1.bf16.msra.mxu1 %v7101_v27  ;;  %v284_v26 = vld [vmem:[%s9656_s0 + $0x7a8] sm:$0xff]  ;;  %v133_v21 = vld [vmem:[%s9656_s0 + $0x2f0] sm:$0xff] }
 0x172   :  { %2460 = vmatmul.mubr.bf16.gmra.mrb[24].mxu0 %v347_v28  ;;  %3232 = vmatmul.mubr.bf16.gmra.mrb[24].mxu1 %v347_v28  ;;  %v292_v27 = vld [vmem:[%s9656_s0 + $0x7e8] sm:$0xff]  ;;  %v411_v28 = vpack.c.bf16 %v275_v25, %v267_v24  ;;  %v7149_v24 = vld [vmem:[%s9657_s3 + $0x90] ss:$8 sps:$4 sm:$0xff]  }
 0x173   :  { %2469 = vmatprep.mubr.bf16.mxu0 %v356_v29  ;;  %3241 = vmatprep.mubr.bf16.mxu1 %v356_v29  ;;  %v420_v29 = vpack.c.bf16 %v292_v27, %v284_v26  ;;  %v7154_v25 = vld [vmem:[%s9657_s3 + $0xa4] ss:$8 sps:$4 sm:$0xff]   ;;  %v341_v26 = vpack.c.bf16 %v133_v21, %v125_v20  ;;  %v278_v20 = vld [vmem:[%s9656_s0 + $0x778] sm:$0xff] }
 0x174   :  { %2585 = vmatpush1.bf16.msra.mxu0 %v7086_v30  ;;  %3356 = vmatprep.subr.bf16.mxu1 %v7109_v31  ;;  %v283_v30 = vld [vmem:[%s9656_s0 + $0x7a0] sm:$0xff] }
 0x175   :  { %2586 = vmatprep.subr.bf16.mxu0 %v7097_v32  ;;  %3357 = vmatpush1.bf16.msra.mxu1 %v7107_v33  ;;  %v291_v31 = vld [vmem:[%s9656_s0 + $0x7e0] sm:$0xff]  ;;  %v46_v32 = vld [vmem:[%s9656_s0 + $0x38] sm:$0xff] }
 0x176   :  { %3358 = vmatprep.subr.bf16.mxu1 %v7112_v34  ;;  %v54_v33 = vld [vmem:[%s9656_s0 + $0x78] sm:$0xff]  ;;  %v419_v34 = vpack.c.bf16 %v291_v31, %v283_v30  ;;  %v141_v30 = vld [vmem:[%s9656_s0 + $0x330] sm:$0xff]  ;;  %v7172_v21 = vld [vmem:[%s9657_s3 + $0x104] ss:$8 sps:$4 sm:$0xff]  }
 0x177   :  { %v302_v35 = vpack.c.bf16 %v54_v33, %v46_v32  ;;  %v149_v31 = vld [vmem:[%s9656_s0 + $0x370] sm:$0xff]  ;;  %v158_v32 = vld [vmem:[%s9656_s0 + $0x3b8] sm:$0xff] }
 0x178   :  { %2587 = vmatpush1.bf16.msra.mxu0 %v7095_v39  ;;  %v70_v39 = vld [vmem:[%s9656_s0 + $0xf8] sm:$0xff] }
 0x179   :  { %2588 = vmatprep.subr.bf16.mxu0 %v7106_v40  ;;  %3359 = vmatpush1.bf16.msra.mxu1 %v7110_v41  ;;  %v301_v40 = vpack.c.bf16 %v53_v37, %v45_v36  ;;  %v310_v41 = vpack.c.bf16 %v70_v39, %v62_v38  ;;  %v166_v33 = vld [vmem:[%s9656_s0 + $0x3f8] sm:$0xff]  ;;  %v349_v36 = vpack.c.bf16 %v149_v31, %v141_v30  ;;  %v7158_v38 = vld [vmem:[%s9657_s3 + $0xc0] ss:$8 sps:$4 sm:$0xff]   ;;  %v285_v30 = vld [vmem:[%s9656_s0 + $0x7b0] sm:$0xff] }
 0x17a   :  { %2470 = vmatmul.mubr.bf16.gmra.mrb[28].mxu0 %v355_v42  ;;  %3242 = vmatmul.mubr.bf16.gmra.mrb[28].mxu1 %v355_v42  ;;  %v7122_v42 = vld [vmem:[%s9657_s3] ss:$8 sps:$4 sm:$0xff]   ;;  %v358_v37 = vpack.c.bf16 %v166_v33, %v158_v32  ;;  %v7163_v39 = vld [vmem:[%s9657_s3 + $0xd4] ss:$8 sps:$4 sm:$0xff]   ;;  %v681_v33 = vlaneseq }
 0x17b   :  { %2479 = vmatprep.mubr.bf16.mxu0 %v364_v43  ;;  %3251 = vmatprep.mubr.bf16.mxu1 %v364_v43  ;;  %v7127_v43 = vld [vmem:[%s9657_s3 + $0x14] ss:$8 sps:$4 sm:$0xff]  }
 0x17c   :  { %2589 = vmatpush1.bf16.msra.mxu0 %v7104_v44  ;;  %3360 = vmatprep.subr.bf16.mxu1 %v7118_v45  ;;  %v61_v44 = vld [vmem:[%s9656_s0 + $0xb0] sm:$0xff] }
 0x17d   :  { %2590 = vmatprep.subr.bf16.mxu0 %v7115_v46  ;;  %3361 = vmatpush1.bf16.msra.mxu1 %v7116_v47  ;;  %v69_v45 = vld [vmem:[%s9656_s0 + $0xf0] sm:$0xff]  ;;  %v78_v46 = vld [vmem:[%s9656_s0 + $0x138] sm:$0xff] }
 0x17e   :  { %3362 = vmatprep.subr.bf16.mxu1 %v7121_v48  ;;  %v86_v47 = vld [vmem:[%s9656_s0 + $0x178] sm:$0xff]  ;;  %v309_v50 = vpack.c.bf16 %v69_v45, %v61_v44  ;;  %v7166_v45 = vld [vmem:[%s9657_s3 + $0xe4] ss:$8 sps:$4 sm:$0xff]   ;;  %v293_v31 = vld [vmem:[%s9656_s0 + $0x7f0] sm:$0xff] }
 0x17f   :  { %v7125_v48 = vld [vmem:[%s9657_s3 + $0x10] ss:$8 sps:$4 sm:$0xff]   ;;  %v318_v51 = vpack.c.bf16 %v86_v47, %v78_v46  ;;  %v421_v32 = vpack.c.bf16 %v293_v31, %v285_v30  ;;  %v7178_v31 = vld [vmem:[%s9657_s3 + $0x124] ss:$8 sps:$4 sm:$0xff]  }
 0x180   :  { %2591 = vmatpush1.bf16.msra.mxu0 %v7113_v53  ;;  %v7133_v53 = vld [vmem:[%s9657_s3 + $0x34] ss:$8 sps:$4 sm:$0xff]   ;;  %v7161_v44 = vld [vmem:[%s9657_s3 + $0xd0] ss:$8 sps:$4 sm:$0xff]  }
 0x181   :  { %3363 = vmatpush1.bf16.msra.mxu1 %v7119_v54  ;;  %4113 = vmatprep.subr.bf16.mxu0 %v7124_v15  ;;  %v77_v54 = vld [vmem:[%s9656_s0 + $0x130] sm:$0xff]  ;;  %v7148_v15 = vld [vmem:[%s9657_s3 + $0x84] ss:$8 sps:$4 sm:$0xff]  }
 0x182   :  { %2480 = vmatmul.mubr.bf16.gmra.mrb[32].mxu0 %v363_v55  ;;  %3252 = vmatmul.mubr.bf16.gmra.mrb[32].mxu1 %v363_v55  ;;  %v85_v55 = vld [vmem:[%s9656_s0 + $0x170] sm:$0xff] }
 0x183   :  { %2489 = vmatprep.mubr.bf16.mxu0 %v372_v56  ;;  %3261 = vmatprep.mubr.bf16.mxu1 %v372_v56  ;;  %v94_v56 = vld [vmem:[%s9656_s0 + $0x1b8] sm:$0xff]  ;;  %v317_v60 = vpack.c.bf16 %v85_v55, %v77_v54  ;;  %v189_v55 = vld [vmem:[%s9656_s0 + $0x4b0] sm:$0xff] }
 0x18a   :  { %2490 = vmatmul.mubr.bf16.gmra.mrb[36].mxu0 %v371_v61  ;;  %3262 = vmatmul.mubr.bf16.gmra.mrb[36].mxu1 %v371_v61  ;;  %v326_v61 = vpack.c.bf16 %v102_v57, %v94_v56  ;;  %v197_v56 = vld [vmem:[%s9656_s0 + $0x4f0] sm:$0xff]  ;;  %v206_v57 = vld [vmem:[%s9656_s0 + $0x538] sm:$0xff] }
 0x18b   :  { %2499 = vmatprep.mubr.bf16.mxu0 %v380_v62  ;;  %3271 = vmatprep.mubr.bf16.mxu1 %v380_v62  ;;  %v7134_v62 = vld [vmem:[%s9657_s3 + $0x40] ss:$8 sps:$4 sm:$0xff]  }
 0x192   :  { %2500 = vmatmul.mubr.bf16.gmra.mrb[40].mxu0 %v379_v3  ;;  %3272 = vmatmul.mubr.bf16.gmra.mrb[40].mxu1 %v379_v3  ;;  %v118_v3 = vld [vmem:[%s9656_s0 + $0x278] sm:$0xff] }
 0x193   :  { %2509 = vmatprep.mubr.bf16.mxu0 %v388_v4  ;;  %3281 = vmatprep.mubr.bf16.mxu1 %v388_v4  ;;  %v7137_v4 = vld [vmem:[%s9657_s3 + $0x50] ss:$8 sps:$4 sm:$0xff]   ;;  %v334_v7 = vpack.c.bf16 %v118_v3, %v110_v2 }
 0x194   :  { %v221_v3 = vld [vmem:[%s9656_s0 + $0x5b0] sm:$0xff] }
 0x19a   :  { %2510 = vmatmul.mubr.bf16.gmra.mrb[44].mxu0 %v387_v9  ;;  %3282 = vmatmul.mubr.bf16.gmra.mrb[44].mxu1 %v387_v9  ;;  %v7145_v9 = vld [vmem:[%s9657_s3 + $0x74] ss:$8 sps:$4 sm:$0xff]  }
 0x19b   :  { %2519 = vmatprep.mubr.bf16.mxu0 %v396_v10  ;;  %3291 = vmatprep.mubr.bf16.mxu1 %v396_v10  ;;  %v109_v10 = vld [vmem:[%s9656_s0 + $0x230] sm:$0xff] }
 0x1a2   :  { %2520 = vmatmul.mubr.bf16.gmra.mrb[48].mxu0 %v395_v16  ;;  %3292 = vmatmul.mubr.bf16.gmra.mrb[48].mxu1 %v395_v16  ;;  %v333_v16 = vpack.c.bf16 %v117_v11, %v109_v10  ;;  %v237_v10 = vld [vmem:[%s9656_s0 + $0x630] sm:$0xff] }
 0x1a3   :  { %2529 = vmatprep.mubr.bf16.mxu0 %v404_v17  ;;  %3301 = vmatprep.mubr.bf16.mxu1 %v404_v17  ;;  %v342_v17 = vpack.c.bf16 %v134_v13, %v126_v12  ;;  %v245_v11 = vld [vmem:[%s9656_s0 + $0x670] sm:$0xff]  ;;  %v254_v13 = vld [vmem:[%s9656_s0 + $0x6b8] sm:$0xff] }
 0x1a4   :  { %v7167_v12 = vld [vmem:[%s9657_s3 + $0xf0] ss:$8 sps:$4 sm:$0xff]  }
 0x1aa   :  { %2530 = vmatmul.mubr.bf16.gmra.mrb[52].mxu0 %v403_v22  ;;  %3302 = vmatmul.mubr.bf16.gmra.mrb[52].mxu1 %v403_v22  ;;  %v142_v22 = vld [vmem:[%s9656_s0 + $0x338] sm:$0xff] }
 0x1ab   :  { %2539 = vmatprep.mubr.bf16.mxu0 %v412_v23  ;;  %3311 = vmatprep.mubr.bf16.mxu1 %v412_v23  ;;  %v150_v23 = vld [vmem:[%s9656_s0 + $0x378] sm:$0xff] }
 0x1ac   :  { %v350_v27 = vpack.c.bf16 %v150_v23, %v142_v22 }
 0x1b2   :  { %2540 = vmatmul.mubr.bf16.gmra.mrb[56].mxu0 %v411_v28  ;;  %3312 = vmatmul.mubr.bf16.gmra.mrb[56].mxu1 %v411_v28  ;;  %v7152_v28 = vld [vmem:[%s9657_s3 + $0xa0] ss:$8 sps:$4 sm:$0xff]  }
 0x1b3   :  { %2549 = vmatprep.mubr.bf16.mxu0 %v420_v29  ;;  %3321 = vmatprep.mubr.bf16.mxu1 %v420_v29  ;;  %v7157_v29 = vld [vmem:[%s9657_s3 + $0xb4] ss:$8 sps:$4 sm:$0xff]  }
 0x1ba   :  { %2550 = vmatmul.mubr.bf16.gmra.mrb[60].mxu0 %v419_v34  ;;  %3322 = vmatmul.mubr.bf16.gmra.mrb[60].mxu1 %v419_v34  ;;  %v7155_v34 = vld [vmem:[%s9657_s3 + $0xb0] ss:$8 sps:$4 sm:$0xff]  }
 0x1bb   :  { %2592 = vmatprep.mubr.bf16.mxu0 %v302_v35  ;;  %3364 = vmatprep.mubr.bf16.mxu1 %v302_v35  ;;  %v7160_v35 = vld [vmem:[%s9657_s3 + $0xc4] ss:$8 sps:$4 sm:$0xff]  }
 0x1c2   :  { %2593 = vmatmul.mubr.bf16.vlgmr.msra.gmra.mrb[0].mxu0 %v301_v40  ;;  %3365 = vmatmul.mubr.bf16.vlgmr.msra.gmra.mrb[0].mxu1 %v301_v40  ;;  %v157_v40 = vld [vmem:[%s9656_s0 + $0x3b0] sm:$0xff] }
 0x1c3   :  { %2602 = vmatprep.mubr.bf16.mxu0 %v310_v41  ;;  %3374 = vmatprep.mubr.bf16.mxu1 %v310_v41  ;;  %v165_v41 = vld [vmem:[%s9656_s0 + $0x3f0] sm:$0xff] }
 0x1c4   :  { %4114 = vmatpush1.bf16.msra.mxu0 %v7122_v42  ;;  %v174_v42 = vld [vmem:[%s9656_s0 + $0x438] sm:$0xff]  ;;  %v357_v46 = vpack.c.bf16 %v165_v41, %v157_v40 }
 0x1c5   :  { %4115 = vmatprep.subr.bf16.mxu0 %v7127_v43  ;;  %v182_v43 = vld [vmem:[%s9656_s0 + $0x478] sm:$0xff] }
 0x1c6   :  { %v366_v47 = vpack.c.bf16 %v182_v43, %v174_v42 }
 0x1c8   :  { %4116 = vmatpush1.bf16.msra.mxu0 %v7125_v48  ;;  %v7164_v48 = vld [vmem:[%s9657_s3 + $0xe0] ss:$8 sps:$4 sm:$0xff]  }
 0x1c9   :  { %4117 = vmatprep.subr.bf16.mxu0 %v7130_v49  ;;  %v173_v49 = vld [vmem:[%s9656_s0 + $0x430] sm:$0xff] }
 0x1ca   :  { %2603 = vmatmul.mubr.bf16.gmra.mrb[4].mxu0 %v309_v50  ;;  %3375 = vmatmul.mubr.bf16.gmra.mrb[4].mxu1 %v309_v50  ;;  %v181_v50 = vld [vmem:[%s9656_s0 + $0x470] sm:$0xff] }
 0x1cb   :  { %2612 = vmatprep.mubr.bf16.mxu0 %v318_v51  ;;  %3384 = vmatprep.mubr.bf16.mxu1 %v318_v51  ;;  %v190_v51 = vld [vmem:[%s9656_s0 + $0x4b8] sm:$0xff] }
 0x1cc   :  { %4118 = vmatpush1.bf16.msra.mxu0 %v7128_v52  ;;  %v198_v52 = vld [vmem:[%s9656_s0 + $0x4f8] sm:$0xff] }
 0x1cd   :  { %4119 = vmatprep.subr.bf16.mxu0 %v7133_v53  ;;  %v365_v53 = vpack.c.bf16 %v181_v50, %v173_v49  ;;  %v374_v54 = vpack.c.bf16 %v198_v52, %v190_v51 }
 0x1d0   :  { %4120 = vmatpush1.bf16.msra.mxu0 %v7131_v58  ;;  %v214_v58 = vld [vmem:[%s9656_s0 + $0x578] sm:$0xff] }
 0x1d1   :  { %4121 = vmatprep.subr.bf16.mxu0 %v7136_v59  ;;  %v373_v59 = vpack.c.bf16 %v197_v56, %v189_v55 }
 0x1d2   :  { %2613 = vmatmul.mubr.bf16.gmra.mrb[8].mxu0 %v317_v60  ;;  %3385 = vmatmul.mubr.bf16.gmra.mrb[8].mxu1 %v317_v60  ;;  %v382_v60 = vpack.c.bf16 %v214_v58, %v206_v57 }
 0x1d3   :  { %2622 = vmatprep.mubr.bf16.mxu0 %v326_v61  ;;  %3394 = vmatprep.mubr.bf16.mxu1 %v326_v61  ;;  %v205_v61 = vld [vmem:[%s9656_s0 + $0x530] sm:$0xff] }
 0x1d4   :  { %4122 = vmatpush1.bf16.msra.mxu0 %v7134_v62  ;;  %v213_v62 = vld [vmem:[%s9656_s0 + $0x570] sm:$0xff] }
 0x1d5   :  { %4123 = vmatprep.subr.bf16.mxu0 %v7139_v63  ;;  %v222_v63 = vld [vmem:[%s9656_s0 + $0x5b8] sm:$0xff]  ;;  %v381_v1 = vpack.c.bf16 %v213_v62, %v205_v61 }
 0x1d6   :  { %v390_v2 = vpack.c.bf16 %v230_v0, %v222_v63 }
 0x1d8   :  { %4124 = vmatpush1.bf16.msra.mxu0 %v7137_v4  ;;  %v229_v4 = vld [vmem:[%s9656_s0 + $0x5f0] sm:$0xff] }
 0x1d9   :  { %4125 = vmatprep.subr.bf16.mxu0 %v7142_v5  ;;  %v238_v5 = vld [vmem:[%s9656_s0 + $0x638] sm:$0xff] }
 0x1da   :  { %2623 = vmatmul.mubr.bf16.gmra.mrb[12].mxu0 %v325_v6  ;;  %3395 = vmatmul.mubr.bf16.gmra.mrb[12].mxu1 %v325_v6  ;;  %v246_v6 = vld [vmem:[%s9656_s0 + $0x678] sm:$0xff] }
 0x1db   :  { %2632 = vmatprep.mubr.bf16.mxu0 %v334_v7  ;;  %3404 = vmatprep.mubr.bf16.mxu1 %v334_v7  ;;  %v389_v7 = vpack.c.bf16 %v229_v4, %v221_v3 }
 0x1dc   :  { %4126 = vmatpush1.bf16.msra.mxu0 %v7140_v8  ;;  %v398_v8 = vpack.c.bf16 %v246_v6, %v238_v5 }
 0x1dd   :  { %4127 = vmatprep.subr.bf16.mxu0 %v7145_v9  ;;  %v7169_v9 = vld [vmem:[%s9657_s3 + $0xf4] ss:$8 sps:$4 sm:$0xff]  }
 0x1e0   :  { %4128 = vmatpush1.bf16.msra.mxu0 %v7143_v14  ;;  %v262_v14 = vld [vmem:[%s9656_s0 + $0x6f8] sm:$0xff] }
 0x1e1   :  { %4129 = vmatprep.subr.bf16.mxu0 %v7148_v15  ;;  %v397_v15 = vpack.c.bf16 %v245_v11, %v237_v10  ;;  %v7170_v10 = vld [vmem:[%s9657_s3 + $0x100] ss:$8 sps:$4 sm:$0xff]  }
 0x1e2   :  { %2633 = vmatmul.mubr.bf16.gmra.mrb[16].mxu0 %v333_v16  ;;  %3405 = vmatmul.mubr.bf16.gmra.mrb[16].mxu1 %v333_v16  ;;  %v406_v16 = vpack.c.bf16 %v262_v14, %v254_v13 }
 0x1e3   :  { %2642 = vmatprep.mubr.bf16.mxu0 %v342_v17  ;;  %3414 = vmatprep.mubr.bf16.mxu1 %v342_v17  ;;  %v253_v17 = vld [vmem:[%s9656_s0 + $0x6b0] sm:$0xff] }
 0x1e4   :  { %4130 = vmatpush1.bf16.msra.mxu0 %v7146_v18  ;;  %v261_v18 = vld [vmem:[%s9656_s0 + $0x6f0] sm:$0xff] }
 0x1e5   :  { %4131 = vmatprep.subr.bf16.mxu0 %v7151_v19  ;;  %v270_v19 = vld [vmem:[%s9656_s0 + $0x738] sm:$0xff]  ;;  %v405_v22 = vpack.c.bf16 %v261_v18, %v253_v17 }
 0x1e6   :  { %v414_v23 = vpack.c.bf16 %v278_v20, %v270_v19 }
 0x1e8   :  { %4132 = vmatpush1.bf16.msra.mxu0 %v7149_v24  ;;  %v269_v24 = vld [vmem:[%s9656_s0 + $0x730] sm:$0xff] }
 0x1e9   :  { %4133 = vmatprep.subr.bf16.mxu0 %v7154_v25  ;;  %v277_v25 = vld [vmem:[%s9656_s0 + $0x770] sm:$0xff] }
 0x1ea   :  { %2643 = vmatmul.mubr.bf16.gmra.mrb[20].mxu0 %v341_v26  ;;  %3415 = vmatmul.mubr.bf16.gmra.mrb[20].mxu1 %v341_v26  ;;  %v286_v26 = vld [vmem:[%s9656_s0 + $0x7b8] sm:$0xff] }
 0x1eb   :  { %2652 = vmatprep.mubr.bf16.mxu0 %v350_v27  ;;  %3424 = vmatprep.mubr.bf16.mxu1 %v350_v27  ;;  %v294_v27 = vld [vmem:[%s9656_s0 + $0x7f8] sm:$0xff] }
 0x1ec   :  { %4134 = vmatpush1.bf16.msra.mxu0 %v7152_v28  ;;  %v413_v28 = vpack.c.bf16 %v277_v25, %v269_v24 }
 0x1ed   :  { %4135 = vmatprep.subr.bf16.mxu0 %v7157_v29  ;;  %v422_v29 = vpack.c.bf16 %v294_v27, %v286_v26  ;;  %v7173_v26 = vld [vmem:[%s9657_s3 + $0x110] ss:$8 sps:$4 sm:$0xff]  }
 0x1f0   :  { %4136 = vmatpush1.bf16.msra.mxu0 %v7155_v34  ;;  %v8945_v34 = vshrl.u32 %v681_v33, 7 }
 0x1f1   :  { %4137 = vmatprep.subr.bf16.mxu0 %v7160_v35 }
 0x1f2   :  { %2653 = vmatmul.mubr.bf16.gmra.mrb[24].mxu0 %v349_v36  ;;  %3425 = vmatmul.mubr.bf16.gmra.mrb[24].mxu1 %v349_v36  ;;  %v683_v35 = vsub.s32 0, %v8945_v34  ;;  %v691_v36 = vsub.s32 2, %v8945_v34 }
 0x1f3   :  { %2662 = vmatprep.mubr.bf16.mxu0 %v358_v37  ;;  %3434 = vmatprep.mubr.bf16.mxu1 %v358_v37  ;;  %v679_v37 = vld [vmem:[%s9658_s2] sm:$0xf] }
 0x1f4   :  { %4138 = vmatpush1.bf16.msra.mxu0 %v7158_v38  ;;  %v687_v38 = vsub.s32 1, %v8945_v34  ;;  %v8956_v40 = vrot.slane %v679_v37, %v683_v35  ;;  %v8958_v41 = vrot.slane %v679_v37, %v691_v36 }
 0x1f5   :  { %4139 = vmatprep.subr.bf16.mxu0 %v7163_v39  ;;  %v695_v39 = vsub.s32 3, %v8945_v34 }
 0x1f6   :  { %v8962_v42 = vrot.slane %v679_v37, %v687_v38 }
 0x1f7   :  { %v8964_v43 = vrot.slane %v679_v37, %v695_v39 }
 0x1f8   :  { %4140 = vmatpush1.bf16.msra.mxu0 %v7161_v44 }
 0x1f9   :  { %4141 = vmatprep.subr.bf16.mxu0 %v7166_v45 }
 0x1fa   :  { %2663 = vmatmul.mubr.bf16.gmra.mrb[28].mxu0 %v357_v46  ;;  %3435 = vmatmul.mubr.bf16.gmra.mrb[28].mxu1 %v357_v46 }
 0x1fb   :  { %2672 = vmatprep.mubr.bf16.mxu0 %v366_v47  ;;  %3444 = vmatprep.mubr.bf16.mxu1 %v366_v47 }
 0x1fc   :  { %4142 = vmatpush1.bf16.msra.mxu0 %v7164_v48 }
 0x1fd   :  { %4143 = vmatprep.subr.bf16.mxu0 %v7169_v9 }
 0x200   :  { %4144 = vmatpush1.bf16.msra.mxu0 %v7167_v12 }
 0x201   :  { %4306 = vmatprep.subr.bf16.mxu0 %v7172_v21 }
 0x202   :  { %2673 = vmatmul.mubr.bf16.gmra.mrb[32].mxu0 %v365_v53  ;;  %3445 = vmatmul.mubr.bf16.gmra.mrb[32].mxu1 %v365_v53 }
 0x203   :  { %2682 = vmatprep.mubr.bf16.mxu0 %v374_v54  ;;  %3454 = vmatprep.mubr.bf16.mxu1 %v374_v54 }
 0x20a   :  { %2683 = vmatmul.mubr.bf16.gmra.mrb[36].mxu0 %v373_v59  ;;  %3455 = vmatmul.mubr.bf16.gmra.mrb[36].mxu1 %v373_v59 }
 0x20b   :  { %2692 = vmatprep.mubr.bf16.mxu0 %v382_v60  ;;  %3464 = vmatprep.mubr.bf16.mxu1 %v382_v60 }
 0x212   :  { %2693 = vmatmul.mubr.bf16.gmra.mrb[40].mxu0 %v381_v1  ;;  %3465 = vmatmul.mubr.bf16.gmra.mrb[40].mxu1 %v381_v1 }
 0x213   :  { %2702 = vmatprep.mubr.bf16.mxu0 %v390_v2  ;;  %3474 = vmatprep.mubr.bf16.mxu1 %v390_v2 }
 0x21a   :  { %2703 = vmatmul.mubr.bf16.gmra.mrb[44].mxu0 %v389_v7  ;;  %3475 = vmatmul.mubr.bf16.gmra.mrb[44].mxu1 %v389_v7 }
 0x21b   :  { %2712 = vmatprep.mubr.bf16.mxu0 %v398_v8  ;;  %3484 = vmatprep.mubr.bf16.mxu1 %v398_v8 }
 0x222   :  { %2713 = vmatmul.mubr.bf16.gmra.mrb[48].mxu0 %v397_v15  ;;  %3485 = vmatmul.mubr.bf16.gmra.mrb[48].mxu1 %v397_v15  ;;  %v7175_v15 = vld [vmem:[%s9657_s3 + $0x114] ss:$8 sps:$4 sm:$0xff]  }
 0x223   :  { %2722 = vmatprep.mubr.bf16.mxu0 %v406_v16  ;;  %3494 = vmatprep.mubr.bf16.mxu1 %v406_v16 }
 0x22a   :  { %2723 = vmatmul.mubr.bf16.gmra.mrb[52].mxu0 %v405_v22  ;;  %3495 = vmatmul.mubr.bf16.gmra.mrb[52].mxu1 %v405_v22 }
 0x22b   :  { %2732 = vmatprep.mubr.bf16.mxu0 %v414_v23  ;;  %3504 = vmatprep.mubr.bf16.mxu1 %v414_v23 }
 0x232   :  { %2733 = vmatmul.mubr.bf16.gmra.mrb[56].mxu0 %v413_v28  ;;  %3505 = vmatmul.mubr.bf16.gmra.mrb[56].mxu1 %v413_v28 }
 0x233   :  { %2742 = vmatprep.mubr.bf16.mxu0 %v422_v29  ;;  %3514 = vmatprep.mubr.bf16.mxu1 %v422_v29 }
 0x23a   :  { %2743 = vmatmul.mubr.bf16.gmra.mrb[60].mxu0 %v421_v32  ;;  %3515 = vmatmul.mubr.bf16.gmra.mrb[60].mxu1 %v421_v32 }
 0x295   :  { %v2594_v44 = vpop.f32.mrb[0].mxu0  ;;  %v3366_v45 = vpop.f32.mrb[0].mxu1 }
 0x296   :  { %v6098_v46 = vadd.f32 %v2594_v44, %v8956_v40  ;;  %v6162_v47 = vadd.f32 %v3366_v45, %v8958_v41  ;;  %v2596_v48 = vpop.f32.mrb[1].mxu0  ;;  %v3368_v49 = vpop.f32.mrb[1].mxu1 }
 0x297   :  { %v6099_v50 = vadd.f32 %v2596_v48, %v8962_v42  ;;  %v6163_v51 = vadd.f32 %v3368_v49, %v8964_v43  ;;  %v2598_v52 = vpop.f32.mrb[2].mxu0  ;;  %v3370_v53 = vpop.f32.mrb[2].mxu1  ;;  %v7176_v49 = vld [vmem:[%s9657_s3 + $0x120] ss:$8 sps:$4 sm:$0xff]  }
 0x298   :  { %v6100_v54 = vadd.f32 %v2598_v52, %v8956_v40  ;;  %v6164_v55 = vadd.f32 %v3370_v53, %v8958_v41  ;;  %v2600_v56 = vpop.f32.mrb[3].mxu0  ;;  %v3372_v57 = vpop.f32.mrb[3].mxu1  ;;  %v3525_v60 = vmax.f32 %v6098_v46, 0.0  ;;  %v3527_v61 = vmax.f32 %v6162_v47, 0.0 }
 0x299   :  { %v6101_v58 = vadd.f32 %v2600_v56, %v8962_v42  ;;  %v6165_v59 = vadd.f32 %v3372_v57, %v8964_v43  ;;  %v3526_v0 = vmax.f32 %v6099_v50, 0.0  ;;  %v3528_v1 = vmax.f32 %v6163_v51, 0.0 }
 0x29a   :  { %v3529_v62 = vmax.f32 %v6100_v54, 0.0  ;;  %v3531_v63 = vmax.f32 %v6164_v55, 0.0  ;;  %v7181_v54 = vld [vmem:[%s9657_s3 + $0x134] ss:$8 sps:$4 sm:$0xff]  }
 0x29b   :  { %v3530_v2 = vmax.f32 %v6101_v58, 0.0  ;;  %v3532_v3 = vmax.f32 %v6165_v59, 0.0 }
 0x29c   :  { %v3653_v4 = vpack.c.bf16 %v3529_v62, %v3525_v60  ;;  %v8974_v5 = vpack.c.bf16 %v3531_v63, %v3527_v61 }
 0x29d   :  { %v3654_v6 = vpack.c.bf16 %v3530_v2, %v3526_v0  ;;  %v8976_v7 = vpack.c.bf16 %v3532_v3, %v3528_v1  ;;  %v2604_v8 = vpop.f32.mrb[4].mxu0  ;;  %v3376_v9 = vpop.f32.mrb[4].mxu1  ;;  %v7179_v1 = vld [vmem:[%s9657_s3 + $0x130] ss:$8 sps:$4 sm:$0xff]  }
 0x29e   :  { %v6102_v11 = vadd.f32 %v2604_v8, %v8956_v40  ;;  %v6166_v12 = vadd.f32 %v3376_v9, %v8958_v41  ;;  %v2606_v13 = vpop.f32.mrb[5].mxu0  ;;  %v3378_v14 = vpop.f32.mrb[5].mxu1  ;;  %v7184_v8 = vld [vmem:[%s9657_s3 + $0x144] ss:$8 sps:$4 sm:$0xff]  }
 0x29f   :  { %v6103_v16 = vadd.f32 %v2606_v13, %v8962_v42  ;;  %v6167_v17 = vadd.f32 %v3378_v14, %v8964_v43  ;;  %v2608_v18 = vpop.f32.mrb[6].mxu0  ;;  %v3380_v19 = vpop.f32.mrb[6].mxu1  ;;  %4145 = vmatprep.mubr.bf16.mxu0 %v3654_v6 }
 0x2a0   :  { %v6104_v20 = vadd.f32 %v2608_v18, %v8956_v40  ;;  %v6168_v21 = vadd.f32 %v3380_v19, %v8958_v41  ;;  %v2610_v22 = vpop.f32.mrb[7].mxu0  ;;  %v3382_v23 = vpop.f32.mrb[7].mxu1  ;;  %4146 = vmatmul.mubr.bf16.vlgmr.msra.gmra.mrb[64].mxu0 %v3653_v4  ;;  %v3533_v27 = vmax.f32 %v6102_v11, 0.0  ;;  %v3535_v28 = vmax.f32 %v6166_v12, 0.0  ;;  %v7182_v19 = vld [vmem:[%s9657_s3 + $0x140] ss:$8 sps:$4 sm:$0xff]  }
 0x2a1   :  { %v6105_v24 = vadd.f32 %v2610_v22, %v8962_v42  ;;  %v6169_v25 = vadd.f32 %v3382_v23, %v8964_v43  ;;  %4307 = vmatpush1.bf16.msra.mxu0 %v7170_v10  ;;  %v3534_v32 = vmax.f32 %v6103_v16, 0.0  ;;  %v3536_v33 = vmax.f32 %v6167_v17, 0.0 }
 0x2a2   :  { %v3537_v29 = vmax.f32 %v6104_v20, 0.0  ;;  %v3539_v30 = vmax.f32 %v6168_v21, 0.0  ;;  %4308 = vmatprep.subr.bf16.mxu0 %v7175_v15 }
 0x2a3   :  { %v3538_v36 = vmax.f32 %v6105_v24, 0.0  ;;  %v3540_v37 = vmax.f32 %v6169_v25, 0.0  ;;  %v7187_v24 = vld [vmem:[%s9657_s3 + $0x154] ss:$8 sps:$4 sm:$0xff]  }
 0x2a4   :  { %v3657_v39 = vpack.c.bf16 %v3537_v29, %v3533_v27  ;;  %v8998_v44 = vpack.c.bf16 %v3539_v30, %v3535_v28 }
 0x2a5   :  { %v3658_v45 = vpack.c.bf16 %v3538_v36, %v3534_v32  ;;  %v9000_v46 = vpack.c.bf16 %v3540_v37, %v3536_v33  ;;  %v2614_v47 = vpop.f32.mrb[8].mxu0  ;;  %v3386_v48 = vpop.f32.mrb[8].mxu1  ;;  %4309 = vmatpush1.bf16.msra.mxu0 %v7173_v26  ;;  %v7185_v37 = vld [vmem:[%s9657_s3 + $0x150] ss:$8 sps:$4 sm:$0xff]  }
 0x2a6   :  { %v6106_v50 = vadd.f32 %v2614_v47, %v8956_v40  ;;  %v6170_v51 = vadd.f32 %v3386_v48, %v8958_v41  ;;  %v2616_v52 = vpop.f32.mrb[9].mxu0  ;;  %v3388_v53 = vpop.f32.mrb[9].mxu1  ;;  %4310 = vmatprep.subr.bf16.mxu0 %v7178_v31 }
 0x2a7   :  { %v6107_v55 = vadd.f32 %v2616_v52, %v8962_v42  ;;  %v6171_v56 = vadd.f32 %v3388_v53, %v8964_v43  ;;  %v2618_v57 = vpop.f32.mrb[10].mxu0  ;;  %v3390_v58 = vpop.f32.mrb[10].mxu1  ;;  %4155 = vmatprep.mubr.bf16.mxu0 %v3658_v45 }
 0x2a8   :  { %v6108_v59 = vadd.f32 %v2618_v57, %v8956_v40  ;;  %v6172_v60 = vadd.f32 %v3390_v58, %v8958_v41  ;;  %v2620_v61 = vpop.f32.mrb[11].mxu0  ;;  %v3392_v62 = vpop.f32.mrb[11].mxu1  ;;  %4156 = vmatmul.mubr.bf16.gmra.mrb[68].mxu0 %v3657_v39  ;;  %v3541_v2 = vmax.f32 %v6106_v50, 0.0  ;;  %v3543_v3 = vmax.f32 %v6170_v51, 0.0 }
 0x2a9   :  { %v6109_v63 = vadd.f32 %v2620_v61, %v8962_v42  ;;  %v6173_v0 = vadd.f32 %v3392_v62, %v8964_v43  ;;  %4311 = vmatpush1.bf16.msra.mxu0 %v7176_v49  ;;  %v3542_v9 = vmax.f32 %v6107_v55, 0.0  ;;  %v3544_v10 = vmax.f32 %v6171_v56, 0.0  ;;  %v7190_v49 = vld [vmem:[%s9657_s3 + $0x164] ss:$8 sps:$4 sm:$0xff]  }
 0x2aa   :  { %v3545_v4 = vmax.f32 %v6108_v59, 0.0  ;;  %v3547_v6 = vmax.f32 %v6172_v60, 0.0  ;;  %4312 = vmatprep.subr.bf16.mxu0 %v7181_v54  ;;  %v7188_v60 = vld [vmem:[%s9657_s3 + $0x160] ss:$8 sps:$4 sm:$0xff]  }
 0x2ab   :  { %v3546_v11 = vmax.f32 %v6109_v63, 0.0  ;;  %v3548_v12 = vmax.f32 %v6173_v0, 0.0 }
 0x2ac   :  { %v3661_v13 = vpack.c.bf16 %v3545_v4, %v3541_v2  ;;  %v9022_v14 = vpack.c.bf16 %v3547_v6, %v3543_v3 }
 0x2ad   :  { %v3662_v15 = vpack.c.bf16 %v3546_v11, %v3542_v9  ;;  %v9024_v16 = vpack.c.bf16 %v3548_v12, %v3544_v10  ;;  %v2624_v17 = vpop.f32.mrb[12].mxu0  ;;  %v3396_v18 = vpop.f32.mrb[12].mxu1  ;;  %4313 = vmatpush1.bf16.msra.mxu0 %v7179_v1  ;;  %v7193_v1 = vld [vmem:[%s9657_s3 + $0x174] ss:$8 sps:$4 sm:$0xff]  }
 0x2ae   :  { %v6110_v20 = vadd.f32 %v2624_v17, %v8956_v40  ;;  %v6174_v21 = vadd.f32 %v3396_v18, %v8958_v41  ;;  %v2626_v22 = vpop.f32.mrb[13].mxu0  ;;  %v3398_v23 = vpop.f32.mrb[13].mxu1  ;;  %4314 = vmatprep.subr.bf16.mxu0 %v7184_v8 }
 0x2af   :  { %v6111_v25 = vadd.f32 %v2626_v22, %v8962_v42  ;;  %v6175_v26 = vadd.f32 %v3398_v23, %v8964_v43  ;;  %v2628_v27 = vpop.f32.mrb[14].mxu0  ;;  %v3400_v28 = vpop.f32.mrb[14].mxu1  ;;  %4165 = vmatprep.mubr.bf16.mxu0 %v3662_v15  ;;  %v7191_v15 = vld [vmem:[%s9657_s3 + $0x170] ss:$8 sps:$4 sm:$0xff]  }
 0x2b0   :  { %v6112_v29 = vadd.f32 %v2628_v27, %v8956_v40  ;;  %v6176_v30 = vadd.f32 %v3400_v28, %v8958_v41  ;;  %v2630_v31 = vpop.f32.mrb[15].mxu0  ;;  %v3402_v32 = vpop.f32.mrb[15].mxu1  ;;  %4166 = vmatmul.mubr.bf16.gmra.mrb[72].mxu0 %v3661_v13  ;;  %v3549_v39 = vmax.f32 %v6110_v20, 0.0  ;;  %v3551_v45 = vmax.f32 %v6174_v21, 0.0  ;;  %v7196_v21 = vld [vmem:[%s9657_s3 + $0x184] ss:$8 sps:$4 sm:$0xff]  }
 0x2b1   :  { %v6113_v33 = vadd.f32 %v2630_v31, %v8962_v42  ;;  %v6177_v36 = vadd.f32 %v3402_v32, %v8964_v43  ;;  %4315 = vmatpush1.bf16.msra.mxu0 %v7182_v19  ;;  %v3550_v50 = vmax.f32 %v6111_v25, 0.0  ;;  %v3552_v51 = vmax.f32 %v6175_v26, 0.0  ;;  %v7194_v32 = vld [vmem:[%s9657_s3 + $0x180] ss:$8 sps:$4 sm:$0xff]  }
 0x2b2   :  { %v3553_v47 = vmax.f32 %v6112_v29, 0.0  ;;  %v3555_v48 = vmax.f32 %v6176_v30, 0.0  ;;  %4316 = vmatprep.subr.bf16.mxu0 %v7187_v24 }
 0x2b3   :  { %v3554_v52 = vmax.f32 %v6113_v33, 0.0  ;;  %v3556_v53 = vmax.f32 %v6177_v36, 0.0 }
 0x2b4   :  { %v3665_v54 = vpack.c.bf16 %v3553_v47, %v3549_v39  ;;  %v9046_v55 = vpack.c.bf16 %v3555_v48, %v3551_v45  ;;  %v7199_v45 = vld [vmem:[%s9657_s3 + $0x194] ss:$8 sps:$4 sm:$0xff]  }
 0x2b5   :  { %v3666_v56 = vpack.c.bf16 %v3554_v52, %v3550_v50  ;;  %v9048_v57 = vpack.c.bf16 %v3556_v53, %v3552_v51  ;;  %v2634_v58 = vpop.f32.mrb[16].mxu0  ;;  %v3406_v59 = vpop.f32.mrb[16].mxu1  ;;  %4317 = vmatpush1.bf16.msra.mxu0 %v7185_v37 }
 0x2b6   :  { %v6114_v61 = vadd.f32 %v2634_v58, %v8956_v40  ;;  %v6178_v62 = vadd.f32 %v3406_v59, %v8958_v41  ;;  %v2636_v63 = vpop.f32.mrb[17].mxu0  ;;  %v3408_v0 = vpop.f32.mrb[17].mxu1  ;;  %4318 = vmatprep.subr.bf16.mxu0 %v7190_v49  ;;  %v7197_v59 = vld [vmem:[%s9657_s3 + $0x190] ss:$8 sps:$4 sm:$0xff]  }
 0x2b7   :  { %v6115_v2 = vadd.f32 %v2636_v63, %v8962_v42  ;;  %v6179_v3 = vadd.f32 %v3408_v0, %v8964_v43  ;;  %v2638_v4 = vpop.f32.mrb[18].mxu0  ;;  %v3410_v6 = vpop.f32.mrb[18].mxu1  ;;  %4175 = vmatprep.mubr.bf16.mxu0 %v3666_v56  ;;  %v7202_v0 = vld [vmem:[%s9657_s3 + $0x1a4] ss:$8 sps:$4 sm:$0xff]  }
 0x2b8   :  { %v6116_v8 = vadd.f32 %v2638_v4, %v8956_v40  ;;  %v6180_v9 = vadd.f32 %v3410_v6, %v8958_v41  ;;  %v2640_v10 = vpop.f32.mrb[19].mxu0  ;;  %v3412_v11 = vpop.f32.mrb[19].mxu1  ;;  %4176 = vmatmul.mubr.bf16.gmra.mrb[76].mxu0 %v3665_v54  ;;  %v3557_v17 = vmax.f32 %v6114_v61, 0.0  ;;  %v3559_v18 = vmax.f32 %v6178_v62, 0.0 }
 0x2b9   :  { %v6117_v12 = vadd.f32 %v2640_v10, %v8962_v42  ;;  %v6181_v13 = vadd.f32 %v3412_v11, %v8964_v43  ;;  %4319 = vmatpush1.bf16.msra.mxu0 %v7188_v60  ;;  %v3558_v22 = vmax.f32 %v6115_v2, 0.0  ;;  %v3560_v23 = vmax.f32 %v6179_v3, 0.0 }
 0x2ba   :  { %v3561_v19 = vmax.f32 %v6116_v8, 0.0  ;;  %v3563_v20 = vmax.f32 %v6180_v9, 0.0  ;;  %4320 = vmatprep.subr.bf16.mxu0 %v7193_v1 }
 0x2bb   :  { %v3562_v24 = vmax.f32 %v6117_v12, 0.0  ;;  %v3564_v25 = vmax.f32 %v6181_v13, 0.0  ;;  %v7200_v13 = vld [vmem:[%s9657_s3 + $0x1a0] ss:$8 sps:$4 sm:$0xff]  }
 0x2bc   :  { %v3669_v26 = vpack.c.bf16 %v3561_v19, %v3557_v17  ;;  %v9070_v27 = vpack.c.bf16 %v3563_v20, %v3559_v18  ;;  %v7205_v20 = vld [vmem:[%s9657_s3 + $0x1b4] ss:$8 sps:$4 sm:$0xff]  }
 0x2bd   :  { %v3670_v28 = vpack.c.bf16 %v3562_v24, %v3558_v22  ;;  %v9072_v29 = vpack.c.bf16 %v3564_v25, %v3560_v23  ;;  %v2644_v30 = vpop.f32.mrb[20].mxu0  ;;  %v3416_v31 = vpop.f32.mrb[20].mxu1  ;;  %4321 = vmatpush1.bf16.msra.mxu0 %v7191_v15 }
 0x2be   :  { %v6118_v33 = vadd.f32 %v2644_v30, %v8956_v40  ;;  %v6182_v36 = vadd.f32 %v3416_v31, %v8958_v41  ;;  %v2646_v37 = vpop.f32.mrb[21].mxu0  ;;  %v3418_v39 = vpop.f32.mrb[21].mxu1  ;;  %4322 = vmatprep.subr.bf16.mxu0 %v7196_v21 }
 0x2bf   :  { %v6119_v47 = vadd.f32 %v2646_v37, %v8962_v42  ;;  %v6183_v48 = vadd.f32 %v3418_v39, %v8964_v43  ;;  %v2648_v49 = vpop.f32.mrb[22].mxu0  ;;  %v3420_v50 = vpop.f32.mrb[22].mxu1  ;;  %4185 = vmatprep.mubr.bf16.mxu0 %v3670_v28 }
 0x2c0   :  { %v6120_v51 = vadd.f32 %v2648_v49, %v8956_v40  ;;  %v6184_v52 = vadd.f32 %v3420_v50, %v8958_v41  ;;  %v2650_v53 = vpop.f32.mrb[23].mxu0  ;;  %v3422_v54 = vpop.f32.mrb[23].mxu1  ;;  %4186 = vmatmul.mubr.bf16.gmra.mrb[80].mxu0 %v3669_v26  ;;  %v3565_v60 = vmax.f32 %v6118_v33, 0.0  ;;  %v3567_v61 = vmax.f32 %v6182_v36, 0.0  ;;  %v7203_v33 = vld [vmem:[%s9657_s3 + $0x1b0] ss:$8 sps:$4 sm:$0xff]  }
 0x2c1   :  { %v6121_v56 = vadd.f32 %v2650_v53, %v8962_v42  ;;  %v6185_v58 = vadd.f32 %v3422_v54, %v8964_v43  ;;  %4323 = vmatpush1.bf16.msra.mxu0 %v7194_v32  ;;  %v3566_v1 = vmax.f32 %v6119_v47, 0.0  ;;  %v3568_v2 = vmax.f32 %v6183_v48, 0.0  ;;  %v7208_v47 = vld [vmem:[%s9657_s3 + $0x1c4] ss:$8 sps:$4 sm:$0xff]  }
 0x2c2   :  { %v3569_v62 = vmax.f32 %v6120_v51, 0.0  ;;  %v3571_v63 = vmax.f32 %v6184_v52, 0.0  ;;  %4324 = vmatprep.subr.bf16.mxu0 %v7199_v45 }
 0x2c3   :  { %v3570_v3 = vmax.f32 %v6121_v56, 0.0  ;;  %v3572_v4 = vmax.f32 %v6185_v58, 0.0 }
 0x2c4   :  { %v3673_v6 = vpack.c.bf16 %v3569_v62, %v3565_v60  ;;  %v9094_v8 = vpack.c.bf16 %v3571_v63, %v3567_v61  ;;  %v7206_v60 = vld [vmem:[%s9657_s3 + $0x1c0] ss:$8 sps:$4 sm:$0xff]  }
 0x2c5   :  { %v3674_v9 = vpack.c.bf16 %v3570_v3, %v3566_v1  ;;  %v9096_v10 = vpack.c.bf16 %v3572_v4, %v3568_v2  ;;  %v2654_v11 = vpop.f32.mrb[24].mxu0  ;;  %v3426_v12 = vpop.f32.mrb[24].mxu1  ;;  %4325 = vmatpush1.bf16.msra.mxu0 %v7197_v59  ;;  %v7211_v1 = vld [vmem:[%s9657_s3 + $0x1d4] ss:$8 sps:$4 sm:$0xff]  }
 0x2c6   :  { %v6122_v15 = vadd.f32 %v2654_v11, %v8956_v40  ;;  %v6186_v17 = vadd.f32 %v3426_v12, %v8958_v41  ;;  %v2656_v18 = vpop.f32.mrb[25].mxu0  ;;  %v3428_v19 = vpop.f32.mrb[25].mxu1  ;;  %4326 = vmatprep.subr.bf16.mxu0 %v7202_v0 }
 0x2c7   :  { %v6123_v21 = vadd.f32 %v2656_v18, %v8962_v42  ;;  %v6187_v22 = vadd.f32 %v3428_v19, %v8964_v43  ;;  %v2658_v23 = vpop.f32.mrb[26].mxu0  ;;  %v3430_v24 = vpop.f32.mrb[26].mxu1  ;;  %4195 = vmatprep.mubr.bf16.mxu0 %v3674_v9  ;;  %v7209_v18 = vld [vmem:[%s9657_s3 + $0x1d0] ss:$8 sps:$4 sm:$0xff]  }
 0x2c8   :  { %v6124_v25 = vadd.f32 %v2658_v23, %v8956_v40  ;;  %v6188_v26 = vadd.f32 %v3430_v24, %v8958_v41  ;;  %v2660_v28 = vpop.f32.mrb[27].mxu0  ;;  %v3432_v30 = vpop.f32.mrb[27].mxu1  ;;  %4196 = vmatmul.mubr.bf16.gmra.mrb[84].mxu0 %v3673_v6  ;;  %v3573_v36 = vmax.f32 %v6122_v15, 0.0  ;;  %v3575_v37 = vmax.f32 %v6186_v17, 0.0  ;;  %v7214_v23 = vld [vmem:[%s9657_s3 + $0x1e4] ss:$8 sps:$4 sm:$0xff]  }
 0x2c9   :  { %v6125_v31 = vadd.f32 %v2660_v28, %v8962_v42  ;;  %v6189_v32 = vadd.f32 %v3432_v30, %v8964_v43  ;;  %4327 = vmatpush1.bf16.msra.mxu0 %v7200_v13  ;;  %v3574_v48 = vmax.f32 %v6123_v21, 0.0  ;;  %v3576_v49 = vmax.f32 %v6187_v22, 0.0 }
 0x2ca   :  { %v3577_v39 = vmax.f32 %v6124_v25, 0.0  ;;  %v3579_v45 = vmax.f32 %v6188_v26, 0.0  ;;  %4328 = vmatprep.subr.bf16.mxu0 %v7205_v20 }
 0x2cb   :  { %v3578_v50 = vmax.f32 %v6125_v31, 0.0  ;;  %v3580_v51 = vmax.f32 %v6189_v32, 0.0 }
 0x2cc   :  { %v3677_v52 = vpack.c.bf16 %v3577_v39, %v3573_v36  ;;  %v9118_v53 = vpack.c.bf16 %v3579_v45, %v3575_v37  ;;  %v7212_v39 = vld [vmem:[%s9657_s3 + $0x1e0] ss:$8 sps:$4 sm:$0xff]  }
 0x2cd   :  { %v3678_v54 = vpack.c.bf16 %v3578_v50, %v3574_v48  ;;  %v9120_v56 = vpack.c.bf16 %v3580_v51, %v3576_v49  ;;  %v2664_v58 = vpop.f32.mrb[28].mxu0  ;;  %v3436_v59 = vpop.f32.mrb[28].mxu1  ;;  %4329 = vmatpush1.bf16.msra.mxu0 %v7203_v33  ;;  %v7217_v50 = vld [vmem:[%s9657_s3 + $0x1f4] ss:$8 sps:$4 sm:$0xff]  }
 0x2ce   :  { %v6126_v61 = vadd.f32 %v2664_v58, %v8956_v40  ;;  %v6190_v62 = vadd.f32 %v3436_v59, %v8958_v41  ;;  %v2666_v63 = vpop.f32.mrb[29].mxu0  ;;  %v3438_v0 = vpop.f32.mrb[29].mxu1  ;;  %4330 = vmatprep.subr.bf16.mxu0 %v7208_v47 }
 0x2cf   :  { %v6127_v2 = vadd.f32 %v2666_v63, %v8962_v42  ;;  %v6191_v3 = vadd.f32 %v3438_v0, %v8964_v43  ;;  %v2668_v4 = vpop.f32.mrb[30].mxu0  ;;  %v3440_v6 = vpop.f32.mrb[30].mxu1  ;;  %4205 = vmatprep.mubr.bf16.mxu0 %v3678_v54 }
 0x2d0   :  { %v6128_v9 = vadd.f32 %v2668_v4, %v8956_v40  ;;  %v6192_v11 = vadd.f32 %v3440_v6, %v8958_v41  ;;  %v2670_v12 = vpop.f32.mrb[31].mxu0  ;;  %v3442_v13 = vpop.f32.mrb[31].mxu1  ;;  %4206 = vmatmul.mubr.bf16.gmra.mrb[88].mxu0 %v3677_v52  ;;  %v3581_v19 = vmax.f32 %v6126_v61, 0.0  ;;  %v3583_v20 = vmax.f32 %v6190_v62, 0.0 }
 0x2d1   :  { %v6129_v15 = vadd.f32 %v2670_v12, %v8962_v42  ;;  %v6193_v17 = vadd.f32 %v3442_v13, %v8964_v43  ;;  %4331 = vmatpush1.bf16.msra.mxu0 %v7206_v60  ;;  %v3582_v24 = vmax.f32 %v6127_v2, 0.0  ;;  %v3584_v25 = vmax.f32 %v6191_v3, 0.0 }
 0x2d2   :  { %v3585_v21 = vmax.f32 %v6128_v9, 0.0  ;;  %v3587_v22 = vmax.f32 %v6192_v11, 0.0  ;;  %4332 = vmatprep.subr.bf16.mxu0 %v7211_v1  ;;  %v7215_v1 = vld [vmem:[%s9657_s3 + $0x1f0] ss:$8 sps:$4 sm:$0xff]  }
 0x2d3   :  { %v3586_v26 = vmax.f32 %v6129_v15, 0.0  ;;  %v3588_v28 = vmax.f32 %v6193_v17, 0.0 }
 0x2d4   :  { %v3681_v30 = vpack.c.bf16 %v3585_v21, %v3581_v19  ;;  %v9142_v31 = vpack.c.bf16 %v3587_v22, %v3583_v20 }
 0x2d5   :  { %v3682_v32 = vpack.c.bf16 %v3586_v26, %v3582_v24  ;;  %v9144_v33 = vpack.c.bf16 %v3588_v28, %v3584_v25  ;;  %v2674_v36 = vpop.f32.mrb[32].mxu0  ;;  %v3446_v37 = vpop.f32.mrb[32].mxu1  ;;  %4333 = vmatpush1.bf16.msra.mxu0 %v7209_v18 }
 0x2d6   :  { %v6130_v45 = vadd.f32 %v2674_v36, %v8956_v40  ;;  %v6194_v47 = vadd.f32 %v3446_v37, %v8958_v41  ;;  %v2676_v48 = vpop.f32.mrb[33].mxu0  ;;  %v3448_v49 = vpop.f32.mrb[33].mxu1  ;;  %4334 = vmatprep.subr.bf16.mxu0 %v7214_v23 }
 0x2d7   :  { %v6131_v51 = vadd.f32 %v2676_v48, %v8962_v42  ;;  %v6195_v52 = vadd.f32 %v3448_v49, %v8964_v43  ;;  %v2678_v54 = vpop.f32.mrb[34].mxu0  ;;  %v3450_v58 = vpop.f32.mrb[34].mxu1  ;;  %4215 = vmatprep.mubr.bf16.mxu0 %v3682_v32 }
 0x2d8   :  { %v6132_v59 = vadd.f32 %v2678_v54, %v8956_v40  ;;  %v6196_v60 = vadd.f32 %v3450_v58, %v8958_v41  ;;  %v2680_v61 = vpop.f32.mrb[35].mxu0  ;;  %v3452_v62 = vpop.f32.mrb[35].mxu1  ;;  %4216 = vmatmul.mubr.bf16.gmra.mrb[92].mxu0 %v3681_v30  ;;  %v3589_v2 = vmax.f32 %v6130_v45, 0.0  ;;  %v3591_v3 = vmax.f32 %v6194_v47, 0.0 }
 0x2d9   :  { %v6133_v63 = vadd.f32 %v2680_v61, %v8962_v42  ;;  %v6197_v0 = vadd.f32 %v3452_v62, %v8964_v43  ;;  %4335 = vmatpush1.bf16.msra.mxu0 %v7212_v39  ;;  %v3590_v9 = vmax.f32 %v6131_v51, 0.0  ;;  %v3592_v11 = vmax.f32 %v6195_v52, 0.0 }
 0x2da   :  { %v3593_v4 = vmax.f32 %v6132_v59, 0.0  ;;  %v3595_v6 = vmax.f32 %v6196_v60, 0.0  ;;  %4336 = vmatprep.subr.bf16.mxu0 %v7217_v50 }
 0x2db   :  { %v3594_v12 = vmax.f32 %v6133_v63, 0.0  ;;  %v3596_v13 = vmax.f32 %v6197_v0, 0.0 }
 0x2dc   :  { %v3685_v15 = vpack.c.bf16 %v3593_v4, %v3589_v2  ;;  %v9163_v17 = vpack.c.bf16 %v3595_v6, %v3591_v3 }
 0x2dd   :  { %v3686_v18 = vpack.c.bf16 %v3594_v12, %v3590_v9  ;;  %v9165_v19 = vpack.c.bf16 %v3596_v13, %v3592_v11  ;;  %v2684_v20 = vpop.f32.mrb[36].mxu0  ;;  %v3456_v21 = vpop.f32.mrb[36].mxu1  ;;  %4337 = vmatpush1.bf16.msra.mxu0 %v7215_v1 }
 0x2de   :  { %v6134_v22 = vadd.f32 %v2684_v20, %v8956_v40  ;;  %v6198_v23 = vadd.f32 %v3456_v21, %v8958_v41  ;;  %v2686_v24 = vpop.f32.mrb[37].mxu0  ;;  %v3458_v25 = vpop.f32.mrb[37].mxu1 }
 0x2df   :  { %v6135_v26 = vadd.f32 %v2686_v24, %v8962_v42  ;;  %v6199_v28 = vadd.f32 %v3458_v25, %v8964_v43  ;;  %v2688_v30 = vpop.f32.mrb[38].mxu0  ;;  %v3460_v32 = vpop.f32.mrb[38].mxu1  ;;  %4225 = vmatprep.mubr.bf16.mxu0 %v3686_v18 }
 0x2e0   :  { %v6136_v36 = vadd.f32 %v2688_v30, %v8956_v40  ;;  %v6200_v37 = vadd.f32 %v3460_v32, %v8958_v41  ;;  %v2690_v39 = vpop.f32.mrb[39].mxu0  ;;  %v3462_v45 = vpop.f32.mrb[39].mxu1  ;;  %4226 = vmatmul.mubr.bf16.gmra.mrb[96].mxu0 %v3685_v15  ;;  %v3597_v49 = vmax.f32 %v6134_v22, 0.0  ;;  %v3599_v50 = vmax.f32 %v6198_v23, 0.0 }
 0x2e1   :  { %v6137_v47 = vadd.f32 %v2690_v39, %v8962_v42  ;;  %v6201_v48 = vadd.f32 %v3462_v45, %v8964_v43  ;;  %v3598_v54 = vmax.f32 %v6135_v26, 0.0  ;;  %v3600_v58 = vmax.f32 %v6199_v28, 0.0 }
 0x2e2   :  { %v3601_v51 = vmax.f32 %v6136_v36, 0.0  ;;  %v3603_v52 = vmax.f32 %v6200_v37, 0.0 }
 0x2e3   :  { %v3602_v59 = vmax.f32 %v6137_v47, 0.0  ;;  %v3604_v60 = vmax.f32 %v6201_v48, 0.0 }
 0x2e4   :  { %v3689_v61 = vpack.c.bf16 %v3601_v51, %v3597_v49  ;;  %v9175_v62 = vpack.c.bf16 %v3603_v52, %v3599_v50 }
 0x2e5   :  { %v3690_v63 = vpack.c.bf16 %v3602_v59, %v3598_v54  ;;  %v9177_v0 = vpack.c.bf16 %v3604_v60, %v3600_v58  ;;  %v2694_v1 = vpop.f32.mrb[40].mxu0  ;;  %v3466_v2 = vpop.f32.mrb[40].mxu1 }
 0x2e6   :  { %v6138_v3 = vadd.f32 %v2694_v1, %v8956_v40  ;;  %v6202_v4 = vadd.f32 %v3466_v2, %v8958_v41  ;;  %v2696_v6 = vpop.f32.mrb[41].mxu0  ;;  %v3468_v9 = vpop.f32.mrb[41].mxu1 }
 0x2e7   :  { %v6139_v11 = vadd.f32 %v2696_v6, %v8962_v42  ;;  %v6203_v12 = vadd.f32 %v3468_v9, %v8964_v43  ;;  %v2698_v13 = vpop.f32.mrb[42].mxu0  ;;  %v3470_v15 = vpop.f32.mrb[42].mxu1  ;;  %4235 = vmatprep.mubr.bf16.mxu0 %v3690_v63 }
 0x2e8   :  { %v6140_v18 = vadd.f32 %v2698_v13, %v8956_v40  ;;  %v6204_v20 = vadd.f32 %v3470_v15, %v8958_v41  ;;  %v2700_v21 = vpop.f32.mrb[43].mxu0  ;;  %v3472_v22 = vpop.f32.mrb[43].mxu1  ;;  %4236 = vmatmul.mubr.bf16.gmra.mrb[100].mxu0 %v3689_v61  ;;  %v3605_v25 = vmax.f32 %v6138_v3, 0.0  ;;  %v3607_v26 = vmax.f32 %v6202_v4, 0.0 }
 0x2e9   :  { %v6141_v23 = vadd.f32 %v2700_v21, %v8962_v42  ;;  %v6205_v24 = vadd.f32 %v3472_v22, %v8964_v43  ;;  %v3606_v32 = vmax.f32 %v6139_v11, 0.0  ;;  %v3608_v36 = vmax.f32 %v6203_v12, 0.0 }
 0x2ea   :  { %v3609_v28 = vmax.f32 %v6140_v18, 0.0  ;;  %v3611_v30 = vmax.f32 %v6204_v20, 0.0 }
 0x2eb   :  { %v3610_v37 = vmax.f32 %v6141_v23, 0.0  ;;  %v3612_v39 = vmax.f32 %v6205_v24, 0.0 }
 0x2ec   :  { %v3693_v45 = vpack.c.bf16 %v3609_v28, %v3605_v25  ;;  %v9187_v47 = vpack.c.bf16 %v3611_v30, %v3607_v26 }
 0x2ed   :  { %v3694_v48 = vpack.c.bf16 %v3610_v37, %v3606_v32  ;;  %v9189_v49 = vpack.c.bf16 %v3612_v39, %v3608_v36  ;;  %v2704_v50 = vpop.f32.mrb[44].mxu0  ;;  %v3476_v51 = vpop.f32.mrb[44].mxu1 }
 0x2ee   :  { %v6142_v52 = vadd.f32 %v2704_v50, %v8956_v40  ;;  %v6206_v54 = vadd.f32 %v3476_v51, %v8958_v41  ;;  %v2706_v58 = vpop.f32.mrb[45].mxu0  ;;  %v3478_v59 = vpop.f32.mrb[45].mxu1 }
 0x2ef   :  { %v6143_v60 = vadd.f32 %v2706_v58, %v8962_v42  ;;  %v6207_v61 = vadd.f32 %v3478_v59, %v8964_v43  ;;  %v2708_v63 = vpop.f32.mrb[46].mxu0  ;;  %v3480_v1 = vpop.f32.mrb[46].mxu1  ;;  %4245 = vmatprep.mubr.bf16.mxu0 %v3694_v48 }
 0x2f0   :  { %v6144_v2 = vadd.f32 %v2708_v63, %v8956_v40  ;;  %v6208_v3 = vadd.f32 %v3480_v1, %v8958_v41  ;;  %v2710_v4 = vpop.f32.mrb[47].mxu0  ;;  %v3482_v6 = vpop.f32.mrb[47].mxu1  ;;  %4246 = vmatmul.mubr.bf16.gmra.mrb[104].mxu0 %v3693_v45  ;;  %v3613_v12 = vmax.f32 %v6142_v52, 0.0  ;;  %v3615_v13 = vmax.f32 %v6206_v54, 0.0 }
 0x2f1   :  { %v6145_v9 = vadd.f32 %v2710_v4, %v8962_v42  ;;  %v6209_v11 = vadd.f32 %v3482_v6, %v8964_v43  ;;  %v3614_v20 = vmax.f32 %v6143_v60, 0.0  ;;  %v3616_v21 = vmax.f32 %v6207_v61, 0.0 }
 0x2f2   :  { %v3617_v15 = vmax.f32 %v6144_v2, 0.0  ;;  %v3619_v18 = vmax.f32 %v6208_v3, 0.0 }
 0x2f3   :  { %v3618_v22 = vmax.f32 %v6145_v9, 0.0  ;;  %v3620_v23 = vmax.f32 %v6209_v11, 0.0 }
 0x2f4   :  { %v3697_v24 = vpack.c.bf16 %v3617_v15, %v3613_v12  ;;  %v9199_v25 = vpack.c.bf16 %v3619_v18, %v3615_v13  ;;  %v7218_v13 = vld [vmem:[%s9659_s5 + $0x40] sm:$0xff]  }
 0x2f5   :  { %v3698_v26 = vpack.c.bf16 %v3618_v22, %v3614_v20  ;;  %v9201_v28 = vpack.c.bf16 %v3620_v23, %v3616_v21  ;;  %v2714_v30 = vpop.f32.mrb[48].mxu0  ;;  %v3486_v32 = vpop.f32.mrb[48].mxu1  ;;  %v7219_v15 = vld [vmem:[%s9659_s5] sm:$0xff]   ;;  %5842 = vmatprep.subr.bf16.mxu1 %v7218_v13 }
 0x2f6   :  { %v6146_v36 = vadd.f32 %v2714_v30, %v8956_v40  ;;  %v6210_v37 = vadd.f32 %v3486_v32, %v8958_v41  ;;  %v2716_v39 = vpop.f32.mrb[49].mxu0  ;;  %v3488_v45 = vpop.f32.mrb[49].mxu1  ;;  %5843 = vmatpush3.bf16.msra.mxu1 %v7219_v15 }
 0x2f7   :  { %v6147_v48 = vadd.f32 %v2716_v39, %v8962_v42  ;;  %v6211_v50 = vadd.f32 %v3488_v45, %v8964_v43  ;;  %v2718_v51 = vpop.f32.mrb[50].mxu0  ;;  %v3490_v52 = vpop.f32.mrb[50].mxu1  ;;  %4255 = vmatprep.mubr.bf16.mxu0 %v3698_v26 }
 0x2f8   :  { %v3621_v54 = vmax.f32 %v6146_v36, 0.0  ;;  %v3623_v58 = vmax.f32 %v6210_v37, 0.0  ;;  %v6148_v59 = vadd.f32 %v2718_v51, %v8956_v40  ;;  %v6212_v60 = vadd.f32 %v3490_v52, %v8958_v41  ;;  %v2720_v61 = vpop.f32.mrb[51].mxu0  ;;  %v3492_v63 = vpop.f32.mrb[51].mxu1  ;;  %4256 = vmatmul.mubr.bf16.gmra.mrb[108].mxu0 %v3697_v24 }
 0x2f9   :  { %v3622_v1 = vmax.f32 %v6147_v48, 0.0  ;;  %v3624_v2 = vmax.f32 %v6211_v50, 0.0  ;;  %v6149_v3 = vadd.f32 %v2720_v61, %v8962_v42  ;;  %v6213_v4 = vadd.f32 %v3492_v63, %v8964_v43 }
 0x2fa   :  { %v3625_v6 = vmax.f32 %v6148_v59, 0.0  ;;  %v3627_v9 = vmax.f32 %v6212_v60, 0.0 }
 0x2fb   :  { %v3626_v11 = vmax.f32 %v6149_v3, 0.0  ;;  %v3628_v12 = vmax.f32 %v6213_v4, 0.0 }
 0x2fc   :  { %v3701_v18 = vpack.c.bf16 %v3625_v6, %v3621_v54  ;;  %v9217_v20 = vpack.c.bf16 %v3627_v9, %v3623_v58 }
 0x2fd   :  { %v3702_v21 = vpack.c.bf16 %v3626_v11, %v3622_v1  ;;  %v9219_v22 = vpack.c.bf16 %v3628_v12, %v3624_v2  ;;  %v2724_v23 = vpop.f32.mrb[52].mxu0  ;;  %v3496_v24 = vpop.f32.mrb[52].mxu1 }
 0x2fe   :  { %v6150_v26 = vadd.f32 %v2724_v23, %v8956_v40  ;;  %v6214_v30 = vadd.f32 %v3496_v24, %v8958_v41  ;;  %v2726_v32 = vpop.f32.mrb[53].mxu0  ;;  %v3498_v36 = vpop.f32.mrb[53].mxu1 }
 0x2ff   :  { %v6151_v37 = vadd.f32 %v2726_v32, %v8962_v42  ;;  %v6215_v39 = vadd.f32 %v3498_v36, %v8964_v43  ;;  %v2728_v45 = vpop.f32.mrb[54].mxu0  ;;  %v3500_v48 = vpop.f32.mrb[54].mxu1  ;;  %4265 = vmatprep.mubr.bf16.mxu0 %v3702_v21 }
 0x300   :  { %v3629_v50 = vmax.f32 %v6150_v26, 0.0  ;;  %v3631_v51 = vmax.f32 %v6214_v30, 0.0  ;;  %v6152_v52 = vadd.f32 %v2728_v45, %v8956_v40  ;;  %v6216_v54 = vadd.f32 %v3500_v48, %v8958_v41  ;;  %v2730_v58 = vpop.f32.mrb[55].mxu0  ;;  %v3502_v59 = vpop.f32.mrb[55].mxu1  ;;  %4266 = vmatmul.mubr.bf16.gmra.mrb[112].mxu0 %v3701_v18 }
 0x301   :  { %v3630_v60 = vmax.f32 %v6151_v37, 0.0  ;;  %v3632_v61 = vmax.f32 %v6215_v39, 0.0  ;;  %v6153_v63 = vadd.f32 %v2730_v58, %v8962_v42  ;;  %v6217_v1 = vadd.f32 %v3502_v59, %v8964_v43  ;;  %v7220_v59 = vld [vmem:[%s9659_s5 + $0x48] sm:$0xff]  }
 0x302   :  { %v3633_v2 = vmax.f32 %v6152_v52, 0.0  ;;  %v3635_v3 = vmax.f32 %v6216_v54, 0.0  ;;  %5844 = vmatprep.subr.bf16.mxu1 %v7220_v59 }
 0x303   :  { %v3634_v4 = vmax.f32 %v6153_v63, 0.0  ;;  %v3636_v6 = vmax.f32 %v6217_v1, 0.0 }
 0x304   :  { %v3705_v9 = vpack.c.bf16 %v3633_v2, %v3629_v50  ;;  %v9229_v11 = vpack.c.bf16 %v3635_v3, %v3631_v51 }
 0x305   :  { %v3706_v12 = vpack.c.bf16 %v3634_v4, %v3630_v60  ;;  %v9231_v13 = vpack.c.bf16 %v3636_v6, %v3632_v61  ;;  %v2734_v15 = vpop.f32.mrb[56].mxu0  ;;  %v3506_v21 = vpop.f32.mrb[56].mxu1  ;;  %v7221_v60 = vld [vmem:[%s9659_s5 + $0x8] sm:$0xff]  }
 0x306   :  { %v6154_v18 = vadd.f32 %v2734_v15, %v8956_v40  ;;  %v6218_v23 = vadd.f32 %v3506_v21, %v8958_v41  ;;  %v2736_v24 = vpop.f32.mrb[57].mxu0  ;;  %v3508_v26 = vpop.f32.mrb[57].mxu1  ;;  %5845 = vmatpush3.bf16.msra.mxu1 %v7221_v60 }
 0x307   :  { %v6155_v30 = vadd.f32 %v2736_v24, %v8962_v42  ;;  %v6219_v32 = vadd.f32 %v3508_v26, %v8964_v43  ;;  %v2738_v36 = vpop.f32.mrb[58].mxu0  ;;  %v3510_v37 = vpop.f32.mrb[58].mxu1  ;;  %4275 = vmatprep.mubr.bf16.mxu0 %v3706_v12 }
 0x308   :  { %v6156_v39 = vadd.f32 %v2738_v36, %v8956_v40  ;;  %v6220_v45 = vadd.f32 %v3510_v37, %v8958_v41  ;;  %v2740_v48 = vpop.f32.mrb[59].mxu0  ;;  %v3512_v50 = vpop.f32.mrb[59].mxu1  ;;  %4276 = vmatmul.mubr.bf16.gmra.mrb[116].mxu0 %v3705_v9  ;;  %v3637_v51 = vmax.f32 %v6154_v18, 0.0  ;;  %v3639_v52 = vmax.f32 %v6218_v23, 0.0 }
 0x309   :  { %v6157_v54 = vadd.f32 %v2740_v48, %v8962_v42  ;;  %v6221_v58 = vadd.f32 %v3512_v50, %v8964_v43  ;;  %v3638_v1 = vmax.f32 %v6155_v30, 0.0  ;;  %v3640_v2 = vmax.f32 %v6219_v32, 0.0 }
 0x30a   :  { %v3641_v61 = vmax.f32 %v6156_v39, 0.0  ;;  %v3643_v63 = vmax.f32 %v6220_v45, 0.0 }
 0x30b   :  { %v3642_v3 = vmax.f32 %v6157_v54, 0.0  ;;  %v3644_v4 = vmax.f32 %v6221_v58, 0.0 }
 0x30c   :  { %v3709_v6 = vpack.c.bf16 %v3641_v61, %v3637_v51  ;;  %v9247_v9 = vpack.c.bf16 %v3643_v63, %v3639_v52 }
 0x30d   :  { %v3710_v12 = vpack.c.bf16 %v3642_v3, %v3638_v1  ;;  %v9249_v15 = vpack.c.bf16 %v3644_v4, %v3640_v2  ;;  %v2744_v21 = vpop.f32.mrb[60].mxu0  ;;  %v3516_v18 = vpop.f32.mrb[60].mxu1 }
 0x30e   :  { %v6158_v23 = vadd.f32 %v2744_v21, %v8956_v40  ;;  %v6222_v24 = vadd.f32 %v3516_v18, %v8958_v41  ;;  %v2746_v26 = vpop.f32.mrb[61].mxu0  ;;  %v3518_v36 = vpop.f32.mrb[61].mxu1  ;;  %v7226_v18 = vld [vmem:[%s9659_s5 + $0x60] sm:$0xff]  }
 0x30f   :  { %v6159_v30 = vadd.f32 %v2746_v26, %v8962_v42  ;;  %v6223_v32 = vadd.f32 %v3518_v36, %v8964_v43  ;;  %v2748_v37 = vpop.f32.mrb[62].mxu0  ;;  %v3520_v39 = vpop.f32.mrb[62].mxu1  ;;  %4285 = vmatprep.mubr.bf16.mxu0 %v3710_v12  ;;  %v7230_v26 = vld [vmem:[%s9659_s5 + $0x70] sm:$0xff]   ;;  %v7233_v36 = vld [vmem:[%s9659_s5 + $0x38] sm:$0xff]  }
 0x310   :  { %v6160_v45 = vadd.f32 %v2748_v37, %v8956_v40  ;;  %v6224_v48 = vadd.f32 %v3520_v39, %v8958_v41  ;;  %v2750_v50 = vpop.f32.mrb[63].mxu0  ;;  %v3522_v51 = vpop.f32.mrb[63].mxu1  ;;  %4286 = vmatmul.mubr.bf16.gmra.mrb[120].mxu0 %v3709_v6  ;;  %v3645_v58 = vmax.f32 %v6158_v23, 0.0  ;;  %v3647_v59 = vmax.f32 %v6222_v24, 0.0  ;;  %v7222_v41 = vld [vmem:[%s9659_s5 + $0x50] sm:$0xff]   ;;  %v7225_v6 = vld [vmem:[%s9659_s5 + $0x18] sm:$0xff]  }
 0x311   :  { %v6161_v52 = vadd.f32 %v2750_v50, %v8962_v42  ;;  %v6225_v54 = vadd.f32 %v3522_v51, %v8964_v43  ;;  %v3646_v63 = vmax.f32 %v6159_v30, 0.0  ;;  %v3648_v1 = vmax.f32 %v6223_v32, 0.0  ;;  %v7223_v42 = vld [vmem:[%s9659_s5 + $0x10] sm:$0xff]   ;;  %v7224_v43 = vld [vmem:[%s9659_s5 + $0x58] sm:$0xff]   ;;  %5846 = vmatprep.subr.bf16.mxu1 %v7222_v41  ;;  %v7227_v23 = vld [vmem:[%s9659_s5 + $0x20] sm:$0xff]  }
 0x312   :  { %v3649_v60 = vmax.f32 %v6160_v45, 0.0  ;;  %v3651_v61 = vmax.f32 %v6224_v48, 0.0  ;;  %5847 = vmatpush3.bf16.msra.mxu1 %v7223_v42  ;;  %v7229_v24 = vld [vmem:[%s9659_s5 + $0x28] sm:$0xff]   ;;  %v7237_v51 = vld [vmem:[%s9661_s7 + $0x18] sm:$0xff]  }
 0x313   :  { %v3650_v2 = vmax.f32 %v6161_v52, 0.0  ;;  %v3652_v3 = vmax.f32 %v6225_v54, 0.0  ;;  %5848 = vmatprep.subr.bf16.mxu1 %v7224_v43 }
 0x314   :  { %v3713_v4 = vpack.c.bf16 %v3649_v60, %v3645_v58  ;;  %v3715_v12 = vpack.c.bf16 %v3651_v61, %v3647_v59 }
 0x315   :  { %v3714_v40 = vpack.c.bf16 %v3650_v2, %v3646_v63  ;;  %v3716_v21 = vpack.c.bf16 %v3652_v3, %v3648_v1 }
 0x316   :  { %5849 = vmatpush3.bf16.msra.mxu1 %v7225_v6 }
 0x317   :  { %4295 = vmatprep.mubr.bf16.mxu0 %v3714_v40  ;;  %5850 = vmatprep.subr.bf16.mxu1 %v7226_v18 }
 0x318   :  { %4296 = vmatmul.mubr.bf16.gmra.mrb[124].mxu0 %v3713_v4 }
 0x319   :  { %4338 = vmatprep.mubr.bf16.mxu0 %v8976_v7  ;;  %v7228_v7 = vld [vmem:[%s9659_s5 + $0x68] sm:$0xff]  }
 0x31a   :  { %5851 = vmatpush3.bf16.msra.mxu1 %v7227_v23 }
 0x31b   :  { %5852 = vmatprep.subr.bf16.mxu1 %v7228_v7 }
 0x31e   :  { %5853 = vmatpush3.bf16.msra.mxu1 %v7229_v24 }
 0x31f   :  { %5854 = vmatprep.subr.bf16.mxu1 %v7230_v26 }
 0x320   :  { %4339 = vmatmul.mubr.bf16.vlgmr.msra.gmra.mrb[64].mxu0 %v8974_v5  ;;  %v7231_v5 = vld [vmem:[%s9659_s5 + $0x30] sm:$0xff]  }
 0x321   :  { %4348 = vmatprep.mubr.bf16.mxu0 %v9000_v46  ;;  %v7232_v46 = vld [vmem:[%s9659_s5 + $0x78] sm:$0xff]  }
 0x322   :  { %5855 = vmatpush3.bf16.msra.mxu1 %v7231_v5 }
 0x323   :  { %5856 = vmatprep.subr.bf16.mxu1 %v7232_v46 }
 0x326   :  { %5857 = vmatpush3.bf16.msra.mxu1 %v7233_v36 }
 0x328   :  { %4349 = vmatmul.mubr.bf16.gmra.mrb[68].mxu0 %v8998_v44  ;;  %v3781_v44 = vld [vmem:[%s9660_s4] sm:$0x3] }
 0x329   :  { %4358 = vmatprep.mubr.bf16.mxu0 %v9024_v16  ;;  %v9334_v16 = vrot.slane %v3781_v44, %v687_v38 }
 0x330   :  { %4359 = vmatmul.mubr.bf16.gmra.mrb[72].mxu0 %v9022_v14  ;;  %v9330_v14 = vrot.slane %v3781_v44, %v683_v35  ;;  %v7234_v35 = vld [vmem:[%s9661_s7] sm:$0xff]  }
 0x331   :  { %4368 = vmatprep.mubr.bf16.mxu0 %v9048_v57  ;;  %6002 = vmatprep.subr.bf16.mxu1 %v7234_v35 }
 0x338   :  { %4369 = vmatmul.mubr.bf16.gmra.mrb[76].mxu0 %v9046_v55 }
 0x339   :  { %4378 = vmatprep.mubr.bf16.mxu0 %v9072_v29 }
 0x340   :  { %4379 = vmatmul.mubr.bf16.gmra.mrb[80].mxu0 %v9070_v27 }
 0x341   :  { %4388 = vmatprep.mubr.bf16.mxu0 %v9096_v10 }
 0x348   :  { %4389 = vmatmul.mubr.bf16.gmra.mrb[84].mxu0 %v9094_v8 }
 0x349   :  { %4398 = vmatprep.mubr.bf16.mxu0 %v9120_v56 }
 0x350   :  { %4399 = vmatmul.mubr.bf16.gmra.mrb[88].mxu0 %v9118_v53 }
 0x351   :  { %4408 = vmatprep.mubr.bf16.mxu0 %v9144_v33 }
 0x358   :  { %4409 = vmatmul.mubr.bf16.gmra.mrb[92].mxu0 %v9142_v31 }
 0x359   :  { %4418 = vmatprep.mubr.bf16.mxu0 %v9165_v19 }
 0x360   :  { %4419 = vmatmul.mubr.bf16.gmra.mrb[96].mxu0 %v9163_v17 }
 0x361   :  { %4428 = vmatprep.mubr.bf16.mxu0 %v9177_v0 }
 0x368   :  { %4429 = vmatmul.mubr.bf16.gmra.mrb[100].mxu0 %v9175_v62 }
 0x369   :  { %4438 = vmatprep.mubr.bf16.mxu0 %v9189_v49  ;;  %v7235_v49 = vld [vmem:[%s9661_s7 + $0x8] sm:$0xff]  }
 0x370   :  { %4439 = vmatmul.mubr.bf16.gmra.mrb[104].mxu0 %v9187_v47 }
 0x371   :  { %4448 = vmatprep.mubr.bf16.mxu0 %v9201_v28 }
 0x378   :  { %4449 = vmatmul.mubr.bf16.gmra.mrb[108].mxu0 %v9199_v25 }
 0x379   :  { %4458 = vmatprep.mubr.bf16.mxu0 %v9219_v22 }
 0x380   :  { %4459 = vmatmul.mubr.bf16.gmra.mrb[112].mxu0 %v9217_v20 }
 0x381   :  { %4468 = vmatprep.mubr.bf16.mxu0 %v9231_v13 }
 0x388   :  { %4469 = vmatmul.mubr.bf16.gmra.mrb[116].mxu0 %v9229_v11 }
 0x389   :  { %4478 = vmatprep.mubr.bf16.mxu0 %v9249_v15  ;;  %v7236_v15 = vld [vmem:[%s9661_s7 + $0x10] sm:$0xff]  }
 0x390   :  { %4479 = vmatmul.mubr.bf16.gmra.mrb[120].mxu0 %v9247_v9 }
 0x391   :  { %4488 = vmatprep.mubr.bf16.mxu0 %v3716_v21 }
 0x398   :  { %4489 = vmatmul.mubr.bf16.gmra.mrb[124].mxu0 %v3715_v12 }
 0x3f3   :  { %v4340_v55 = vpop.f32.mrb[64].mxu0 }
 0x3f4   :  { %v6226_v57 = vadd.f32 %v4340_v55, %v9330_v14  ;;  %v4342_v27 = vpop.f32.mrb[65].mxu0 }
 0x3f5   :  { %v6227_v29 = vadd.f32 %v4342_v27, %v9334_v16  ;;  %v4344_v8 = vpop.f32.mrb[66].mxu0 }
 0x3f6   :  { %v6228_v10 = vadd.f32 %v4344_v8, %v9330_v14  ;;  %v4346_v53 = vpop.f32.mrb[67].mxu0  ;;  %v4499_v31 = vmax.f32 %v6226_v57, 0.0 }
 0x3f7   :  { %v6229_v56 = vadd.f32 %v4346_v53, %v9334_v16  ;;  %v4500_v38 = vmax.f32 %v6227_v29, 0.0 }
 0x3f8   :  { %v4501_v34 = vmax.f32 %v6228_v10, 0.0 }
 0x3f9   :  { %v4502_v33 = vmax.f32 %v6229_v56, 0.0 }
 0x3fa   :  { %v4563_v17 = vpack.c.bf16 %v4501_v34, %v4499_v31 }
 0x3fb   :  { %v4564_v19 = vpack.c.bf16 %v4502_v33, %v4500_v38  ;;  %v4350_v62 = vpop.f32.mrb[68].mxu0 }
 0x3fc   :  { %v6230_v0 = vadd.f32 %v4350_v62, %v9330_v14  ;;  %v4352_v47 = vpop.f32.mrb[69].mxu0 }
 0x3fd   :  { %v6231_v25 = vadd.f32 %v4352_v47, %v9334_v16  ;;  %v4354_v28 = vpop.f32.mrb[70].mxu0  ;;  %4762 = vmatprep.mubr.bf16.mxu1 %v4564_v19 }
 0x3fe   :  { %v6232_v20 = vadd.f32 %v4354_v28, %v9330_v14  ;;  %v4356_v22 = vpop.f32.mrb[71].mxu0  ;;  %4763 = vmatmul.mubr.bf16.vlgmr.msra.gmra.mrb[64].mxu1 %v4563_v17  ;;  %v4503_v13 = vmax.f32 %v6230_v0, 0.0 }
 0x3ff   :  { %v6233_v11 = vadd.f32 %v4356_v22, %v9334_v16  ;;  %6003 = vmatpush3.bf16.msra.mxu1 %v7234_v35  ;;  %v4504_v30 = vmax.f32 %v6231_v25, 0.0 }
 0x400   :  { %v4505_v9 = vmax.f32 %v6232_v20, 0.0  ;;  %6004 = vmatprep.subr.bf16.mxu1 %v7235_v49 }
 0x401   :  { %v4506_v32 = vmax.f32 %v6233_v11, 0.0 }
 0x402   :  { %v4565_v37 = vpack.c.bf16 %v4505_v9, %v4503_v13 }
 0x403   :  { %v4566_v39 = vpack.c.bf16 %v4506_v32, %v4504_v30  ;;  %v4360_v45 = vpop.f32.mrb[72].mxu0  ;;  %6005 = vmatpush3.bf16.msra.mxu1 %v7235_v49 }
 0x404   :  { %v6234_v48 = vadd.f32 %v4360_v45, %v9330_v14  ;;  %v4362_v50 = vpop.f32.mrb[73].mxu0  ;;  %6006 = vmatprep.subr.bf16.mxu1 %v7236_v15 }
 0x405   :  { %v6235_v52 = vadd.f32 %v4362_v50, %v9334_v16  ;;  %v4364_v54 = vpop.f32.mrb[74].mxu0  ;;  %4770 = vmatprep.mubr.bf16.mxu1 %v4566_v39 }
 0x406   :  { %v6236_v58 = vadd.f32 %v4364_v54, %v9330_v14  ;;  %v4366_v59 = vpop.f32.mrb[75].mxu0  ;;  %4771 = vmatmul.mubr.bf16.gmra.mrb[68].mxu1 %v4565_v37  ;;  %v4507_v61 = vmax.f32 %v6234_v48, 0.0 }
 0x407   :  { %v6237_v60 = vadd.f32 %v4366_v59, %v9334_v16  ;;  %6007 = vmatpush3.bf16.msra.mxu1 %v7236_v15  ;;  %v4508_v1 = vmax.f32 %v6235_v52, 0.0 }
 0x408   :  { %v4509_v63 = vmax.f32 %v6236_v58, 0.0  ;;  %6008 = vmatprep.subr.bf16.mxu1 %v7237_v51 }
 0x409   :  { %v4510_v2 = vmax.f32 %v6237_v60, 0.0 }
 0x40a   :  { %v4567_v3 = vpack.c.bf16 %v4509_v63, %v4507_v61 }
 0x40b   :  { %v4568_v4 = vpack.c.bf16 %v4510_v2, %v4508_v1  ;;  %v4370_v12 = vpop.f32.mrb[76].mxu0  ;;  %6009 = vmatpush3.bf16.msra.mxu1 %v7237_v51 }
 0x40c   :  { %v6238_v40 = vadd.f32 %v4370_v12, %v9330_v14  ;;  %v4372_v21 = vpop.f32.mrb[77].mxu0 }
 0x40d   :  { %v6239_v41 = vadd.f32 %v4372_v21, %v9334_v16  ;;  %v4374_v42 = vpop.f32.mrb[78].mxu0  ;;  %4778 = vmatprep.mubr.bf16.mxu1 %v4568_v4 }
 0x40e   :  { %v6240_v43 = vadd.f32 %v4374_v42, %v9330_v14  ;;  %v4376_v6 = vpop.f32.mrb[79].mxu0  ;;  %4779 = vmatmul.mubr.bf16.gmra.mrb[72].mxu1 %v4567_v3  ;;  %v4511_v23 = vmax.f32 %v6238_v40, 0.0 }
 0x40f   :  { %v6241_v18 = vadd.f32 %v4376_v6, %v9334_v16  ;;  %v4512_v24 = vmax.f32 %v6239_v41, 0.0 }
 0x410   :  { %v4513_v7 = vmax.f32 %v6240_v43, 0.0 }
 0x411   :  { %v4514_v26 = vmax.f32 %v6241_v18, 0.0 }
 0x412   :  { %v4569_v5 = vpack.c.bf16 %v4513_v7, %v4511_v23 }
 0x413   :  { %v4570_v46 = vpack.c.bf16 %v4514_v26, %v4512_v24  ;;  %v4380_v36 = vpop.f32.mrb[80].mxu0 }
 0x414   :  { %v6242_v44 = vadd.f32 %v4380_v36, %v9330_v14  ;;  %v4382_v55 = vpop.f32.mrb[81].mxu0 }
 0x415   :  { %v6243_v57 = vadd.f32 %v4382_v55, %v9334_v16  ;;  %v4384_v27 = vpop.f32.mrb[82].mxu0  ;;  %4786 = vmatprep.mubr.bf16.mxu1 %v4570_v46 }
 0x416   :  { %v6244_v29 = vadd.f32 %v4384_v27, %v9330_v14  ;;  %v4386_v8 = vpop.f32.mrb[83].mxu0  ;;  %4787 = vmatmul.mubr.bf16.gmra.mrb[76].mxu1 %v4569_v5  ;;  %v4515_v53 = vmax.f32 %v6242_v44, 0.0 }
 0x417   :  { %v6245_v10 = vadd.f32 %v4386_v8, %v9334_v16  ;;  %v4516_v35 = vmax.f32 %v6243_v57, 0.0 }
 0x418   :  { %v4517_v56 = vmax.f32 %v6244_v29, 0.0 }
 0x419   :  { %v4518_v31 = vmax.f32 %v6245_v10, 0.0 }
 0x41a   :  { %v4571_v34 = vpack.c.bf16 %v4517_v56, %v4515_v53 }
 0x41b   :  { %v4572_v38 = vpack.c.bf16 %v4518_v31, %v4516_v35  ;;  %v4390_v33 = vpop.f32.mrb[84].mxu0 }
 0x41c   :  { %v6246_v17 = vadd.f32 %v4390_v33, %v9330_v14  ;;  %v4392_v19 = vpop.f32.mrb[85].mxu0 }
 0x41d   :  { %v6247_v62 = vadd.f32 %v4392_v19, %v9334_v16  ;;  %v4394_v0 = vpop.f32.mrb[86].mxu0  ;;  %4794 = vmatprep.mubr.bf16.mxu1 %v4572_v38 }
 0x41e   :  { %v6248_v47 = vadd.f32 %v4394_v0, %v9330_v14  ;;  %v4396_v49 = vpop.f32.mrb[87].mxu0  ;;  %4795 = vmatmul.mubr.bf16.gmra.mrb[80].mxu1 %v4571_v34  ;;  %v4519_v28 = vmax.f32 %v6246_v17, 0.0 }
 0x41f   :  { %v6249_v25 = vadd.f32 %v4396_v49, %v9334_v16  ;;  %v4520_v22 = vmax.f32 %v6247_v62, 0.0 }
 0x420   :  { %v4521_v20 = vmax.f32 %v6248_v47, 0.0 }
 0x421   :  { %v4522_v11 = vmax.f32 %v6249_v25, 0.0 }
 0x422   :  { %v4573_v13 = vpack.c.bf16 %v4521_v20, %v4519_v28 }
 0x423   :  { %v4574_v9 = vpack.c.bf16 %v4522_v11, %v4520_v22  ;;  %v4400_v15 = vpop.f32.mrb[88].mxu0 }
 0x424   :  { %v6250_v30 = vadd.f32 %v4400_v15, %v9330_v14  ;;  %v4402_v32 = vpop.f32.mrb[89].mxu0 }
 0x425   :  { %v6251_v37 = vadd.f32 %v4402_v32, %v9334_v16  ;;  %v4404_v39 = vpop.f32.mrb[90].mxu0  ;;  %4802 = vmatprep.mubr.bf16.mxu1 %v4574_v9 }
 0x426   :  { %v6252_v45 = vadd.f32 %v4404_v39, %v9330_v14  ;;  %v4406_v48 = vpop.f32.mrb[91].mxu0  ;;  %4803 = vmatmul.mubr.bf16.gmra.mrb[84].mxu1 %v4573_v13  ;;  %v4523_v51 = vmax.f32 %v6250_v30, 0.0 }
 0x427   :  { %v6253_v50 = vadd.f32 %v4406_v48, %v9334_v16  ;;  %v4524_v54 = vmax.f32 %v6251_v37, 0.0 }
 0x428   :  { %v4525_v52 = vmax.f32 %v6252_v45, 0.0 }
 0x429   :  { %v4526_v58 = vmax.f32 %v6253_v50, 0.0 }
 0x42a   :  { %v4575_v59 = vpack.c.bf16 %v4525_v52, %v4523_v51 }
 0x42b   :  { %v4576_v60 = vpack.c.bf16 %v4526_v58, %v4524_v54  ;;  %v4410_v61 = vpop.f32.mrb[92].mxu0 }
 0x42c   :  { %v6254_v63 = vadd.f32 %v4410_v61, %v9330_v14  ;;  %v4412_v1 = vpop.f32.mrb[93].mxu0 }
 0x42d   :  { %v6255_v2 = vadd.f32 %v4412_v1, %v9334_v16  ;;  %v4414_v3 = vpop.f32.mrb[94].mxu0  ;;  %4810 = vmatprep.mubr.bf16.mxu1 %v4576_v60 }
 0x42e   :  { %v6256_v4 = vadd.f32 %v4414_v3, %v9330_v14  ;;  %v4416_v12 = vpop.f32.mrb[95].mxu0  ;;  %4811 = vmatmul.mubr.bf16.gmra.mrb[88].mxu1 %v4575_v59  ;;  %v4527_v21 = vmax.f32 %v6254_v63, 0.0 }
 0x42f   :  { %v6257_v40 = vadd.f32 %v4416_v12, %v9334_v16  ;;  %v4528_v42 = vmax.f32 %v6255_v2, 0.0 }
 0x430   :  { %v4529_v41 = vmax.f32 %v6256_v4, 0.0 }
 0x431   :  { %v4530_v43 = vmax.f32 %v6257_v40, 0.0 }
 0x432   :  { %v4577_v6 = vpack.c.bf16 %v4529_v41, %v4527_v21  ;;  %v7238_v41 = vld [vmem:[%s9661_s7 + $0x20] sm:$0xff]  }
 0x433   :  { %v4578_v18 = vpack.c.bf16 %v4530_v43, %v4528_v42  ;;  %v4420_v23 = vpop.f32.mrb[96].mxu0  ;;  %6010 = vmatprep.subr.bf16.mxu1 %v7238_v41 }
 0x434   :  { %v6258_v7 = vadd.f32 %v4420_v23, %v9330_v14  ;;  %v4422_v24 = vpop.f32.mrb[97].mxu0  ;;  %6011 = vmatpush3.bf16.msra.mxu1 %v7238_v41 }
 0x435   :  { %v6259_v26 = vadd.f32 %v4422_v24, %v9334_v16  ;;  %v4424_v5 = vpop.f32.mrb[98].mxu0  ;;  %4818 = vmatprep.mubr.bf16.mxu1 %v4578_v18 }
 0x436   :  { %v6260_v46 = vadd.f32 %v4424_v5, %v9330_v14  ;;  %v4426_v36 = vpop.f32.mrb[99].mxu0  ;;  %4819 = vmatmul.mubr.bf16.gmra.mrb[92].mxu1 %v4577_v6  ;;  %v4531_v55 = vmax.f32 %v6258_v7, 0.0 }
 0x437   :  { %v6261_v44 = vadd.f32 %v4426_v36, %v9334_v16  ;;  %v4532_v27 = vmax.f32 %v6259_v26, 0.0  ;;  %v7239_v26 = vld [vmem:[%s9661_s7 + $0x28] sm:$0xff]  }
 0x438   :  { %v4533_v57 = vmax.f32 %v6260_v46, 0.0  ;;  %6012 = vmatprep.subr.bf16.mxu1 %v7239_v26 }
 0x439   :  { %v4534_v29 = vmax.f32 %v6261_v44, 0.0  ;;  %6013 = vmatpush3.bf16.msra.mxu1 %v7239_v26 }
 0x43a   :  { %v4579_v8 = vpack.c.bf16 %v4533_v57, %v4531_v55 }
 0x43b   :  { %v4580_v10 = vpack.c.bf16 %v4534_v29, %v4532_v27  ;;  %v4430_v53 = vpop.f32.mrb[100].mxu0  ;;  %v7240_v29 = vld [vmem:[%s9661_s7 + $0x30] sm:$0xff]  }
 0x43c   :  { %v6262_v56 = vadd.f32 %v4430_v53, %v9330_v14  ;;  %v4432_v35 = vpop.f32.mrb[101].mxu0  ;;  %6014 = vmatprep.subr.bf16.mxu1 %v7240_v29 }
 0x43d   :  { %v6263_v31 = vadd.f32 %v4432_v35, %v9334_v16  ;;  %v4434_v34 = vpop.f32.mrb[102].mxu0  ;;  %4826 = vmatprep.mubr.bf16.mxu1 %v4580_v10  ;;  %6015 = vmatpush3.bf16.msra.mxu1 %v7240_v29 }
 0x43e   :  { %v6264_v38 = vadd.f32 %v4434_v34, %v9330_v14  ;;  %v4436_v33 = vpop.f32.mrb[103].mxu0  ;;  %4827 = vmatmul.mubr.bf16.gmra.mrb[96].mxu1 %v4579_v8  ;;  %v4535_v19 = vmax.f32 %v6262_v56, 0.0 }
 0x43f   :  { %v6265_v17 = vadd.f32 %v4436_v33, %v9334_v16  ;;  %v4536_v0 = vmax.f32 %v6263_v31, 0.0 }
 0x440   :  { %v4537_v62 = vmax.f32 %v6264_v38, 0.0  ;;  %v7241_v38 = vld [vmem:[%s9661_s7 + $0x38] sm:$0xff]  }
 0x441   :  { %v4538_v47 = vmax.f32 %v6265_v17, 0.0  ;;  %6016 = vmatprep.subr.bf16.mxu1 %v7241_v38 }
 0x442   :  { %v4581_v49 = vpack.c.bf16 %v4537_v62, %v4535_v19  ;;  %6017 = vmatpush3.bf16.msra.mxu1 %v7241_v38 }
 0x443   :  { %v4582_v25 = vpack.c.bf16 %v4538_v47, %v4536_v0  ;;  %v4440_v28 = vpop.f32.mrb[104].mxu0 }
 0x444   :  { %v6266_v20 = vadd.f32 %v4440_v28, %v9330_v14  ;;  %v4442_v22 = vpop.f32.mrb[105].mxu0 }
 0x445   :  { %v6267_v11 = vadd.f32 %v4442_v22, %v9334_v16  ;;  %v4444_v13 = vpop.f32.mrb[106].mxu0  ;;  %4834 = vmatprep.mubr.bf16.mxu1 %v4582_v25 }
 0x446   :  { %v6268_v9 = vadd.f32 %v4444_v13, %v9330_v14  ;;  %v4446_v15 = vpop.f32.mrb[107].mxu0  ;;  %4835 = vmatmul.mubr.bf16.gmra.mrb[100].mxu1 %v4581_v49  ;;  %v4539_v32 = vmax.f32 %v6266_v20, 0.0 }
 0x447   :  { %v6269_v30 = vadd.f32 %v4446_v15, %v9334_v16  ;;  %v4540_v39 = vmax.f32 %v6267_v11, 0.0 }
 0x448   :  { %v4541_v37 = vmax.f32 %v6268_v9, 0.0 }
 0x449   :  { %v4542_v45 = vmax.f32 %v6269_v30, 0.0 }
 0x44a   :  { %v4583_v48 = vpack.c.bf16 %v4541_v37, %v4539_v32 }
 0x44b   :  { %v4584_v50 = vpack.c.bf16 %v4542_v45, %v4540_v39  ;;  %v4450_v51 = vpop.f32.mrb[108].mxu0 }
 0x44c   :  { %v6270_v52 = vadd.f32 %v4450_v51, %v9330_v14  ;;  %v4452_v54 = vpop.f32.mrb[109].mxu0 }
 0x44d   :  { %v6271_v58 = vadd.f32 %v4452_v54, %v9334_v16  ;;  %v4454_v59 = vpop.f32.mrb[110].mxu0  ;;  %4842 = vmatprep.mubr.bf16.mxu1 %v4584_v50 }
 0x44e   :  { %v6272_v60 = vadd.f32 %v4454_v59, %v9330_v14  ;;  %v4456_v61 = vpop.f32.mrb[111].mxu0  ;;  %4843 = vmatmul.mubr.bf16.gmra.mrb[104].mxu1 %v4583_v48  ;;  %v4543_v1 = vmax.f32 %v6270_v52, 0.0 }
 0x44f   :  { %v6273_v63 = vadd.f32 %v4456_v61, %v9334_v16  ;;  %v4544_v3 = vmax.f32 %v6271_v58, 0.0 }
 0x450   :  { %v4545_v2 = vmax.f32 %v6272_v60, 0.0 }
 0x451   :  { %v4546_v4 = vmax.f32 %v6273_v63, 0.0 }
 0x452   :  { %v4585_v12 = vpack.c.bf16 %v4545_v2, %v4543_v1 }
 0x453   :  { %v4586_v40 = vpack.c.bf16 %v4546_v4, %v4544_v3  ;;  %v4460_v21 = vpop.f32.mrb[112].mxu0 }
 0x454   :  { %v6274_v42 = vadd.f32 %v4460_v21, %v9330_v14  ;;  %v4462_v43 = vpop.f32.mrb[113].mxu0 }
 0x455   :  { %v6275_v6 = vadd.f32 %v4462_v43, %v9334_v16  ;;  %v4464_v18 = vpop.f32.mrb[114].mxu0  ;;  %4850 = vmatprep.mubr.bf16.mxu1 %v4586_v40  ;;  %v9427_v40 = vld [vmem:[%s9662_s6] ss:$0 sm:$0xff] }
 0x456   :  { %v6276_v23 = vadd.f32 %v4464_v18, %v9330_v14  ;;  %v4466_v7 = vpop.f32.mrb[115].mxu0  ;;  %4851 = vmatmul.mubr.bf16.gmra.mrb[108].mxu1 %v4585_v12  ;;  %v4547_v5 = vmax.f32 %v6274_v42, 0.0 }
 0x457   :  { %v6277_v24 = vadd.f32 %v4466_v7, %v9334_v16  ;;  %v4548_v36 = vmax.f32 %v6275_v6, 0.0  ;;  %v7242_v6 = vld [vmem:[%s9663_s9] sm:$0xff]  }
 0x458   :  { %v4549_v46 = vmax.f32 %v6276_v23, 0.0  ;;  %6050 = vmatprep.subr.bf16.mxu1 %v7242_v6 }
 0x459   :  { %v4550_v44 = vmax.f32 %v6277_v24, 0.0 }
 0x45a   :  { %v4587_v55 = vpack.c.bf16 %v4549_v46, %v4547_v5 }
 0x45b   :  { %v4588_v57 = vpack.c.bf16 %v4550_v44, %v4548_v36  ;;  %v4470_v27 = vpop.f32.mrb[116].mxu0 }
 0x45c   :  { %v6278_v8 = vadd.f32 %v4470_v27, %v9330_v14  ;;  %v4472_v10 = vpop.f32.mrb[117].mxu0 }
 0x45d   :  { %v6279_v53 = vadd.f32 %v4472_v10, %v9334_v16  ;;  %v4474_v56 = vpop.f32.mrb[118].mxu0  ;;  %4858 = vmatprep.mubr.bf16.mxu1 %v4588_v57 }
 0x45e   :  { %v6280_v35 = vadd.f32 %v4474_v56, %v9330_v14  ;;  %v4476_v31 = vpop.f32.mrb[119].mxu0  ;;  %4859 = vmatmul.mubr.bf16.gmra.mrb[112].mxu1 %v4587_v55  ;;  %v4551_v33 = vmax.f32 %v6278_v8, 0.0 }
 0x45f   :  { %v6281_v34 = vadd.f32 %v4476_v31, %v9334_v16  ;;  %v4552_v19 = vmax.f32 %v6279_v53, 0.0 }
 0x460   :  { %v4553_v17 = vmax.f32 %v6280_v35, 0.0 }
 0x461   :  { %v4554_v62 = vmax.f32 %v6281_v34, 0.0  ;;  %v7243_v34 = vld [vmem:[%s9663_s9 + $0x8] sm:$0xff]  }
 0x462   :  { %v4589_v0 = vpack.c.bf16 %v4553_v17, %v4551_v33 }
 0x463   :  { %v4590_v47 = vpack.c.bf16 %v4554_v62, %v4552_v19  ;;  %v4480_v49 = vpop.f32.mrb[120].mxu0  ;;  %v7244_v62 = vld [vmem:[%s9663_s9 + $0x10] sm:$0xff]  }
 0x464   :  { %v6282_v25 = vadd.f32 %v4480_v49, %v9330_v14  ;;  %v4482_v28 = vpop.f32.mrb[121].mxu0 }
 0x465   :  { %v6283_v20 = vadd.f32 %v4482_v28, %v9334_v16  ;;  %v4484_v22 = vpop.f32.mrb[122].mxu0  ;;  %4866 = vmatprep.mubr.bf16.mxu1 %v4590_v47 }
 0x466   :  { %v6284_v11 = vadd.f32 %v4484_v22, %v9330_v14  ;;  %v4486_v13 = vpop.f32.mrb[123].mxu0  ;;  %4867 = vmatmul.mubr.bf16.gmra.mrb[116].mxu1 %v4589_v0  ;;  %v4555_v15 = vmax.f32 %v6282_v25, 0.0 }
 0x467   :  { %v6285_v9 = vadd.f32 %v4486_v13, %v9334_v16  ;;  %v4556_v32 = vmax.f32 %v6283_v20, 0.0 }
 0x468   :  { %v4557_v30 = vmax.f32 %v6284_v11, 0.0  ;;  %v7245_v11 = vld [vmem:[%s9663_s9 + $0x18] sm:$0xff]  }
 0x469   :  { %v4558_v37 = vmax.f32 %v6285_v9, 0.0 }
 0x46a   :  { %v4591_v39 = vpack.c.bf16 %v4557_v30, %v4555_v15 }
 0x46b   :  { %v4592_v45 = vpack.c.bf16 %v4558_v37, %v4556_v32  ;;  %v4490_v48 = vpop.f32.mrb[124].mxu0  ;;  %v7246_v32 = vld [vmem:[%s9663_s9 + $0x20] sm:$0xff]  }
 0x46c   :  { %v6286_v50 = vadd.f32 %v4490_v48, %v9330_v14  ;;  %v4492_v51 = vpop.f32.mrb[125].mxu0 }
 0x46d   :  { %v6287_v52 = vadd.f32 %v4492_v51, %v9334_v16  ;;  %v4494_v54 = vpop.f32.mrb[126].mxu0  ;;  %4874 = vmatprep.mubr.bf16.mxu1 %v4592_v45 }
 0x46e   :  { %v6288_v58 = vadd.f32 %v4494_v54, %v9330_v14  ;;  %v4496_v59 = vpop.f32.mrb[127].mxu0  ;;  %4875 = vmatmul.mubr.bf16.gmra.mrb[120].mxu1 %v4591_v39  ;;  %v4559_v61 = vmax.f32 %v6286_v50, 0.0  ;;  %v7247_v54 = vld [vmem:[%s9663_s9 + $0x28] sm:$0xff]  }
 0x46f   :  { %v6289_v60 = vadd.f32 %v4496_v59, %v9334_v16  ;;  %v4560_v1 = vmax.f32 %v6287_v52, 0.0 }
 0x470   :  { %v4561_v63 = vmax.f32 %v6288_v58, 0.0 }
 0x471   :  { %v4562_v2 = vmax.f32 %v6289_v60, 0.0 }
 0x472   :  { %v4593_v3 = vpack.c.bf16 %v4561_v63, %v4559_v61 }
 0x473   :  { %v4594_v4 = vpack.c.bf16 %v4562_v2, %v4560_v1 }
 0x475   :  { %4882 = vmatprep.mubr.bf16.mxu1 %v4594_v4 }
 0x476   :  { %4883 = vmatmul.mubr.bf16.gmra.mrb[124].mxu1 %v4593_v3 }
 0x4d1   :  { %v5858_v12 = vpop.f32.mrb[64].mxu1 }
 0x4d2   :  { %v5859_v21 = vpop.f32.mrb[65].mxu1 }
 0x4d3   :  { %v5860_v14 = vadd.f32 %v5859_v21, %v5858_v12  ;;  %v5861_v41 = vpop.f32.mrb[66].mxu1 }
 0x4d4   :  { %v5862_v42 = vpop.f32.mrb[67].mxu1 }
 0x4d5   :  { %v4765_v16 = vadd.f32 %v5860_v14, %v9427_v40  ;;  %v5863_v43 = vadd.f32 %v5862_v42, %v5861_v41 }
 0x4d7   :  { %v4768_v18 = vadd.f32 %v5863_v43, %v9427_v40  ;;  %v4891_v23 = vmax.f32 %v4765_v16, 0.0 }
 0x4d9   :  { %v4892_v7 = vmax.f32 %v4768_v18, 0.0  ;;  %v5864_v24 = vpop.f32.mrb[68].mxu1 }
 0x4da   :  { %v5865_v26 = vpop.f32.mrb[69].mxu1 }
 0x4db   :  { %v5866_v5 = vadd.f32 %v5865_v26, %v5864_v24  ;;  %v5867_v46 = vpop.f32.mrb[70].mxu1  ;;  %v4923_v36 = vpack.c.bf16 %v4892_v7, %v4891_v23 }
 0x4dc   :  { %v5868_v44 = vpop.f32.mrb[71].mxu1 }
 0x4dd   :  { %v4773_v55 = vadd.f32 %v5866_v5, %v9427_v40  ;;  %v5869_v57 = vadd.f32 %v5868_v44, %v5867_v46  ;;  %6018 = vmatprep.mubr.bf16.mxu1 %v4923_v36 }
 0x4df   :  { %v4776_v27 = vadd.f32 %v5869_v57, %v9427_v40  ;;  %v4893_v29 = vmax.f32 %v4773_v55, 0.0 }
 0x4e1   :  { %v4894_v8 = vmax.f32 %v4776_v27, 0.0  ;;  %v5870_v10 = vpop.f32.mrb[72].mxu1 }
 0x4e2   :  { %v5871_v53 = vpop.f32.mrb[73].mxu1 }
 0x4e3   :  { %v4924_v56 = vpack.c.bf16 %v4894_v8, %v4893_v29  ;;  %v5872_v35 = vadd.f32 %v5871_v53, %v5870_v10  ;;  %v5873_v31 = vpop.f32.mrb[74].mxu1 }
 0x4e4   :  { %v5874_v38 = vpop.f32.mrb[75].mxu1 }
 0x4e5   :  { %v4781_v33 = vadd.f32 %v5872_v35, %v9427_v40  ;;  %v5875_v17 = vadd.f32 %v5874_v38, %v5873_v31  ;;  %6019 = vmatmul.mubr.bf16.vlgmr.msra.gmra.mrb[128].mxu1 %v4924_v56 }
 0x4e6   :  { %6051 = vmatpush3.bf16.msra.mxu1 %v7242_v6 }
 0x4e7   :  { %v4784_v19 = vadd.f32 %v5875_v17, %v9427_v40  ;;  %6052 = vmatprep.subr.bf16.mxu1 %v7243_v34  ;;  %v4895_v0 = vmax.f32 %v4781_v33, 0.0 }
 0x4e9   :  { %v4896_v47 = vmax.f32 %v4784_v19, 0.0  ;;  %v5876_v49 = vpop.f32.mrb[76].mxu1 }
 0x4ea   :  { %v5877_v25 = vpop.f32.mrb[77].mxu1  ;;  %6053 = vmatpush3.bf16.msra.mxu1 %v7243_v34 }
 0x4eb   :  { %v5878_v28 = vadd.f32 %v5877_v25, %v5876_v49  ;;  %v5879_v20 = vpop.f32.mrb[78].mxu1  ;;  %v4925_v22 = vpack.c.bf16 %v4896_v47, %v4895_v0  ;;  %6054 = vmatprep.subr.bf16.mxu1 %v7244_v62 }
 0x4ec   :  { %v5880_v13 = vpop.f32.mrb[79].mxu1 }
 0x4ed   :  { %v4789_v9 = vadd.f32 %v5878_v28, %v9427_v40  ;;  %v5881_v15 = vadd.f32 %v5880_v13, %v5879_v20  ;;  %6022 = vmatprep.mubr.bf16.mxu1 %v4925_v22 }
 0x4ee   :  { %6055 = vmatpush3.bf16.msra.mxu1 %v7244_v62 }
 0x4ef   :  { %v4792_v30 = vadd.f32 %v5881_v15, %v9427_v40  ;;  %6056 = vmatprep.subr.bf16.mxu1 %v7245_v11  ;;  %v4897_v37 = vmax.f32 %v4789_v9, 0.0 }
 0x4f1   :  { %v4898_v39 = vmax.f32 %v4792_v30, 0.0  ;;  %v5882_v45 = vpop.f32.mrb[80].mxu1 }
 0x4f2   :  { %v5883_v48 = vpop.f32.mrb[81].mxu1  ;;  %6057 = vmatpush3.bf16.msra.mxu1 %v7245_v11 }
 0x4f3   :  { %v5884_v50 = vadd.f32 %v5883_v48, %v5882_v45  ;;  %v5885_v51 = vpop.f32.mrb[82].mxu1  ;;  %v4926_v52 = vpack.c.bf16 %v4898_v39, %v4897_v37  ;;  %6058 = vmatprep.subr.bf16.mxu1 %v7246_v32 }
 0x4f4   :  { %v5886_v58 = vpop.f32.mrb[83].mxu1 }
 0x4f5   :  { %v4797_v59 = vadd.f32 %v5884_v50, %v9427_v40  ;;  %v5887_v60 = vadd.f32 %v5886_v58, %v5885_v51  ;;  %6023 = vmatmul.mubr.bf16.gmra.mrb[132].mxu1 %v4926_v52 }
 0x4f6   :  { %6059 = vmatpush3.bf16.msra.mxu1 %v7246_v32 }
 0x4f7   :  { %v4800_v61 = vadd.f32 %v5887_v60, %v9427_v40  ;;  %6060 = vmatprep.subr.bf16.mxu1 %v7247_v54  ;;  %v4899_v63 = vmax.f32 %v4797_v59, 0.0 }
 0x4f9   :  { %v4900_v1 = vmax.f32 %v4800_v61, 0.0  ;;  %v5888_v2 = vpop.f32.mrb[84].mxu1 }
 0x4fa   :  { %v5889_v3 = vpop.f32.mrb[85].mxu1  ;;  %6061 = vmatpush3.bf16.msra.mxu1 %v7247_v54 }
 0x4fb   :  { %v5890_v4 = vadd.f32 %v5889_v3, %v5888_v2  ;;  %v5891_v12 = vpop.f32.mrb[86].mxu1  ;;  %v4927_v21 = vpack.c.bf16 %v4900_v1, %v4899_v63 }
 0x4fc   :  { %v5892_v14 = vpop.f32.mrb[87].mxu1 }
 0x4fd   :  { %v4805_v41 = vadd.f32 %v5890_v4, %v9427_v40  ;;  %v5893_v42 = vadd.f32 %v5892_v14, %v5891_v12  ;;  %6026 = vmatprep.mubr.bf16.mxu1 %v4927_v21 }
 0x4ff   :  { %v4808_v16 = vadd.f32 %v5893_v42, %v9427_v40  ;;  %v4901_v43 = vmax.f32 %v4805_v41, 0.0 }
 0x501   :  { %v4902_v6 = vmax.f32 %v4808_v16, 0.0  ;;  %v5894_v18 = vpop.f32.mrb[88].mxu1 }
 0x502   :  { %v5895_v23 = vpop.f32.mrb[89].mxu1 }
 0x503   :  { %v5896_v7 = vadd.f32 %v5895_v23, %v5894_v18  ;;  %v5897_v24 = vpop.f32.mrb[90].mxu1  ;;  %v4928_v26 = vpack.c.bf16 %v4902_v6, %v4901_v43 }
 0x504   :  { %v5898_v5 = vpop.f32.mrb[91].mxu1 }
 0x505   :  { %v4813_v46 = vadd.f32 %v5896_v7, %v9427_v40  ;;  %v5899_v36 = vadd.f32 %v5898_v5, %v5897_v24  ;;  %6027 = vmatmul.mubr.bf16.gmra.mrb[136].mxu1 %v4928_v26 }
 0x507   :  { %v4816_v44 = vadd.f32 %v5899_v36, %v9427_v40  ;;  %v4903_v55 = vmax.f32 %v4813_v46, 0.0 }
 0x509   :  { %v4904_v57 = vmax.f32 %v4816_v44, 0.0  ;;  %v5900_v27 = vpop.f32.mrb[92].mxu1 }
 0x50a   :  { %v5901_v29 = vpop.f32.mrb[93].mxu1 }
 0x50b   :  { %v5902_v8 = vadd.f32 %v5901_v29, %v5900_v27  ;;  %v5903_v10 = vpop.f32.mrb[94].mxu1  ;;  %v4929_v53 = vpack.c.bf16 %v4904_v57, %v4903_v55 }
 0x50c   :  { %v5904_v56 = vpop.f32.mrb[95].mxu1 }
 0x50d   :  { %v4821_v35 = vadd.f32 %v5902_v8, %v9427_v40  ;;  %v5905_v31 = vadd.f32 %v5904_v56, %v5903_v10  ;;  %6030 = vmatprep.mubr.bf16.mxu1 %v4929_v53  ;;  %v7248_v53 = vld [vmem:[%s9663_s9 + $0x30] sm:$0xff]  }
 0x50e   :  { %6062 = vmatprep.subr.bf16.mxu1 %v7248_v53 }
 0x50f   :  { %v4824_v34 = vadd.f32 %v5905_v31, %v9427_v40  ;;  %v4905_v38 = vmax.f32 %v4821_v35, 0.0  ;;  %6063 = vmatpush3.bf16.msra.mxu1 %v7248_v53 }
 0x511   :  { %v4906_v33 = vmax.f32 %v4824_v34, 0.0  ;;  %v5906_v17 = vpop.f32.mrb[96].mxu1 }
 0x512   :  { %v5907_v19 = vpop.f32.mrb[97].mxu1 }
 0x513   :  { %v5908_v62 = vadd.f32 %v5907_v19, %v5906_v17  ;;  %v5909_v0 = vpop.f32.mrb[98].mxu1  ;;  %v4930_v47 = vpack.c.bf16 %v4906_v33, %v4905_v38  ;;  %v7249_v19 = vld [vmem:[%s9663_s9 + $0x38] sm:$0xff]  }
 0x514   :  { %v5910_v49 = vpop.f32.mrb[99].mxu1  ;;  %6064 = vmatprep.subr.bf16.mxu1 %v7249_v19 }
 0x515   :  { %v4829_v25 = vadd.f32 %v5908_v62, %v9427_v40  ;;  %v5911_v28 = vadd.f32 %v5910_v49, %v5909_v0  ;;  %6031 = vmatmul.mubr.bf16.gmra.mrb[140].mxu1 %v4930_v47 }
 0x516   :  { %6065 = vmatpush3.bf16.msra.mxu1 %v7249_v19 }
 0x517   :  { %v4832_v20 = vadd.f32 %v5911_v28, %v9427_v40  ;;  %v4907_v22 = vmax.f32 %v4829_v25, 0.0 }
 0x519   :  { %v4908_v11 = vmax.f32 %v4832_v20, 0.0  ;;  %v5912_v13 = vpop.f32.mrb[100].mxu1 }
 0x51a   :  { %v5913_v9 = vpop.f32.mrb[101].mxu1 }
 0x51b   :  { %v5914_v15 = vadd.f32 %v5913_v9, %v5912_v13  ;;  %v5915_v30 = vpop.f32.mrb[102].mxu1  ;;  %v4931_v32 = vpack.c.bf16 %v4908_v11, %v4907_v22 }
 0x51c   :  { %v5916_v37 = vpop.f32.mrb[103].mxu1 }
 0x51d   :  { %v4837_v39 = vadd.f32 %v5914_v15, %v9427_v40  ;;  %v5917_v45 = vadd.f32 %v5916_v37, %v5915_v30  ;;  %6034 = vmatprep.mubr.bf16.mxu1 %v4931_v32 }
 0x51f   :  { %v4840_v48 = vadd.f32 %v5917_v45, %v9427_v40  ;;  %v4909_v50 = vmax.f32 %v4837_v39, 0.0 }
 0x521   :  { %v4910_v51 = vmax.f32 %v4840_v48, 0.0  ;;  %v5918_v52 = vpop.f32.mrb[104].mxu1 }
 0x522   :  { %v5919_v54 = vpop.f32.mrb[105].mxu1 }
 0x523   :  { %v5920_v58 = vadd.f32 %v5919_v54, %v5918_v52  ;;  %v5921_v59 = vpop.f32.mrb[106].mxu1  ;;  %v4932_v60 = vpack.c.bf16 %v4910_v51, %v4909_v50 }
 0x524   :  { %v5922_v61 = vpop.f32.mrb[107].mxu1 }
 0x525   :  { %v4845_v63 = vadd.f32 %v5920_v58, %v9427_v40  ;;  %v5923_v1 = vadd.f32 %v5922_v61, %v5921_v59  ;;  %6035 = vmatmul.mubr.bf16.gmra.mrb[144].mxu1 %v4932_v60 }
 0x527   :  { %v4848_v2 = vadd.f32 %v5923_v1, %v9427_v40  ;;  %v4911_v3 = vmax.f32 %v4845_v63, 0.0  ;;  %v9488_v63 = vld [vmem:[%s9664_s8] ss:$0 sm:$0xff] }
 0x529   :  { %v4912_v4 = vmax.f32 %v4848_v2, 0.0  ;;  %v5924_v12 = vpop.f32.mrb[108].mxu1 }
 0x52a   :  { %v5925_v21 = vpop.f32.mrb[109].mxu1 }
 0x52b   :  { %v5926_v14 = vadd.f32 %v5925_v21, %v5924_v12  ;;  %v5927_v41 = vpop.f32.mrb[110].mxu1  ;;  %v4933_v42 = vpack.c.bf16 %v4912_v4, %v4911_v3 }
 0x52c   :  { %v5928_v16 = vpop.f32.mrb[111].mxu1 }
 0x52d   :  { %v4853_v43 = vadd.f32 %v5926_v14, %v9427_v40  ;;  %v5929_v6 = vadd.f32 %v5928_v16, %v5927_v41  ;;  %6038 = vmatprep.mubr.bf16.mxu1 %v4933_v42 }
 0x52f   :  { %v4856_v18 = vadd.f32 %v5929_v6, %v9427_v40  ;;  %v4913_v23 = vmax.f32 %v4853_v43, 0.0 }
 0x531   :  { %v4914_v7 = vmax.f32 %v4856_v18, 0.0  ;;  %v5930_v24 = vpop.f32.mrb[112].mxu1 }
 0x532   :  { %v5931_v26 = vpop.f32.mrb[113].mxu1 }
 0x533   :  { %v5932_v5 = vadd.f32 %v5931_v26, %v5930_v24  ;;  %v5933_v46 = vpop.f32.mrb[114].mxu1  ;;  %v4934_v36 = vpack.c.bf16 %v4914_v7, %v4913_v23 }
 0x534   :  { %v5934_v44 = vpop.f32.mrb[115].mxu1 }
 0x535   :  { %v4861_v55 = vadd.f32 %v5932_v5, %v9427_v40  ;;  %v5935_v57 = vadd.f32 %v5934_v44, %v5933_v46  ;;  %6039 = vmatmul.mubr.bf16.gmra.mrb[148].mxu1 %v4934_v36 }
 0x537   :  { %v4864_v27 = vadd.f32 %v5935_v57, %v9427_v40  ;;  %v4915_v29 = vmax.f32 %v4861_v55, 0.0 }
 0x539   :  { %v4916_v8 = vmax.f32 %v4864_v27, 0.0  ;;  %v5936_v10 = vpop.f32.mrb[116].mxu1 }
 0x53a   :  { %v5937_v56 = vpop.f32.mrb[117].mxu1 }
 0x53b   :  { %v5938_v35 = vadd.f32 %v5937_v56, %v5936_v10  ;;  %v5939_v31 = vpop.f32.mrb[118].mxu1  ;;  %v4935_v34 = vpack.c.bf16 %v4916_v8, %v4915_v29 }
 0x53c   :  { %v5940_v38 = vpop.f32.mrb[119].mxu1 }
 0x53d   :  { %v4869_v33 = vadd.f32 %v5938_v35, %v9427_v40  ;;  %v5941_v17 = vadd.f32 %v5940_v38, %v5939_v31  ;;  %6042 = vmatprep.mubr.bf16.mxu1 %v4935_v34 }
 0x53f   :  { %v4872_v62 = vadd.f32 %v5941_v17, %v9427_v40  ;;  %v4917_v0 = vmax.f32 %v4869_v33, 0.0 }
 0x541   :  { %v4918_v47 = vmax.f32 %v4872_v62, 0.0  ;;  %v5942_v49 = vpop.f32.mrb[120].mxu1 }
 0x542   :  { %v5943_v25 = vpop.f32.mrb[121].mxu1 }
 0x543   :  { %v5944_v28 = vadd.f32 %v5943_v25, %v5942_v49  ;;  %v5945_v20 = vpop.f32.mrb[122].mxu1  ;;  %v4936_v22 = vpack.c.bf16 %v4918_v47, %v4917_v0 }
 0x544   :  { %v5946_v11 = vpop.f32.mrb[123].mxu1 }
 0x545   :  { %v4877_v13 = vadd.f32 %v5944_v28, %v9427_v40  ;;  %v5947_v9 = vadd.f32 %v5946_v11, %v5945_v20  ;;  %6043 = vmatmul.mubr.bf16.gmra.mrb[152].mxu1 %v4936_v22 }
 0x547   :  { %v4880_v15 = vadd.f32 %v5947_v9, %v9427_v40  ;;  %v4919_v30 = vmax.f32 %v4877_v13, 0.0 }
 0x549   :  { %v4920_v32 = vmax.f32 %v4880_v15, 0.0  ;;  %v5948_v37 = vpop.f32.mrb[124].mxu1 }
 0x54a   :  { %v5949_v39 = vpop.f32.mrb[125].mxu1 }
 0x54b   :  { %v5950_v45 = vadd.f32 %v5949_v39, %v5948_v37  ;;  %v5951_v48 = vpop.f32.mrb[126].mxu1  ;;  %v4937_v50 = vpack.c.bf16 %v4920_v32, %v4919_v30 }
 0x54c   :  { %v5952_v51 = vpop.f32.mrb[127].mxu1 }
 0x54d   :  { %v4885_v52 = vadd.f32 %v5950_v45, %v9427_v40  ;;  %v5953_v54 = vadd.f32 %v5952_v51, %v5951_v48  ;;  %6046 = vmatprep.mubr.bf16.mxu1 %v4937_v50 }
 0x54f   :  { %v4888_v58 = vadd.f32 %v5953_v54, %v9427_v40  ;;  %v4921_v59 = vmax.f32 %v4885_v52, 0.0 }
 0x551   :  { %v4922_v60 = vmax.f32 %v4888_v58, 0.0 }
 0x553   :  { %v4938_v61 = vpack.c.bf16 %v4922_v60, %v4921_v59 }
 0x555   :  { %6047 = vmatmul.mubr.bf16.gmra.mrb[156].mxu1 %v4938_v61 }
 0x5b8   :  { %v6020_v1 = vpop.f32.mrb[128].mxu1 }
 0x5b9   :  { %v5053_v2 = vadd.f32 %v6020_v1, %v9488_v63  ;;  %v5044_v3 = vpop.f32.mrb[129].mxu1 }
 0x5ba   :  { %v5045_v4 = vadd.f32 %v9488_v63, %v5044_v3  ;;  %v6021_v12 = vpop.f32.mrb[130].mxu1 }
 0x5bb   :  { %v5056_v21 = vadd.f32 %v6021_v12, %v9488_v63  ;;  %v5047_v14 = vpop.f32.mrb[131].mxu1  ;;  %v5173_v41 = vmax.f32 %v5053_v2, 0.0 }
 0x5bc   :  { %v5048_v40 = vadd.f32 %v9488_v63, %v5047_v14  ;;  %v5171_v16 = vmax.f32 %v5045_v4, 0.0 }
 0x5bd   :  { %v5174_v42 = vmax.f32 %v5056_v21, 0.0 }
 0x5be   :  { %v5172_v43 = vmax.f32 %v5048_v40, 0.0 }
 0x5bf   :  { %v5204_v6 = vpack.c.bf16 %v5174_v42, %v5173_v41 }
 0x5c0   :  { %v5203_v18 = vpack.c.bf16 %v5172_v43, %v5171_v16 }
 0x5c2   :  { %6066 = vmatprep.mubr.bf16.mxu1 %v5203_v18 }
 0x5c3   :  { %6067 = vmatmul.mubr.bf16.vlgmr.msra.gmra.mrb[160].mxu1 %v5204_v6 }
 0x5c8   :  { %v6024_v23 = vpop.f32.mrb[132].mxu1 }
 0x5c9   :  { %v5069_v7 = vadd.f32 %v6024_v23, %v9488_v63  ;;  %v5060_v24 = vpop.f32.mrb[133].mxu1 }
 0x5ca   :  { %v5061_v26 = vadd.f32 %v9488_v63, %v5060_v24  ;;  %v6025_v5 = vpop.f32.mrb[134].mxu1 }
 0x5cb   :  { %v5072_v46 = vadd.f32 %v6025_v5, %v9488_v63  ;;  %v5063_v36 = vpop.f32.mrb[135].mxu1  ;;  %v5177_v55 = vmax.f32 %v5069_v7, 0.0 }
 0x5cc   :  { %v5064_v44 = vadd.f32 %v9488_v63, %v5063_v36  ;;  %v5175_v27 = vmax.f32 %v5061_v26, 0.0 }
 0x5cd   :  { %v5178_v57 = vmax.f32 %v5072_v46, 0.0 }
 0x5ce   :  { %v5176_v29 = vmax.f32 %v5064_v44, 0.0 }
 0x5cf   :  { %v5206_v8 = vpack.c.bf16 %v5178_v57, %v5177_v55 }
 0x5d0   :  { %v5205_v10 = vpack.c.bf16 %v5176_v29, %v5175_v27 }
 0x5d2   :  { %6070 = vmatprep.mubr.bf16.mxu1 %v5205_v10 }
 0x5d3   :  { %6071 = vmatmul.mubr.bf16.gmra.mrb[164].mxu1 %v5206_v8 }
 0x5d8   :  { %v6028_v53 = vpop.f32.mrb[136].mxu1 }
 0x5d9   :  { %v5085_v56 = vadd.f32 %v6028_v53, %v9488_v63  ;;  %v5076_v35 = vpop.f32.mrb[137].mxu1 }
 0x5da   :  { %v5077_v31 = vadd.f32 %v9488_v63, %v5076_v35  ;;  %v6029_v34 = vpop.f32.mrb[138].mxu1 }
 0x5db   :  { %v5088_v38 = vadd.f32 %v6029_v34, %v9488_v63  ;;  %v5079_v33 = vpop.f32.mrb[139].mxu1  ;;  %v5181_v19 = vmax.f32 %v5085_v56, 0.0 }
 0x5dc   :  { %v5080_v17 = vadd.f32 %v9488_v63, %v5079_v33  ;;  %v5179_v0 = vmax.f32 %v5077_v31, 0.0 }
 0x5dd   :  { %v5182_v62 = vmax.f32 %v5088_v38, 0.0 }
 0x5de   :  { %v5180_v47 = vmax.f32 %v5080_v17, 0.0 }
 0x5df   :  { %v5208_v49 = vpack.c.bf16 %v5182_v62, %v5181_v19 }
 0x5e0   :  { %v5207_v25 = vpack.c.bf16 %v5180_v47, %v5179_v0 }
 0x5e2   :  { %6074 = vmatprep.mubr.bf16.mxu1 %v5207_v25 }
 0x5e3   :  { %6075 = vmatmul.mubr.bf16.gmra.mrb[168].mxu1 %v5208_v49 }
 0x5e8   :  { %v6032_v28 = vpop.f32.mrb[140].mxu1 }
 0x5e9   :  { %v5101_v20 = vadd.f32 %v6032_v28, %v9488_v63  ;;  %v5092_v22 = vpop.f32.mrb[141].mxu1 }
 0x5ea   :  { %v5093_v11 = vadd.f32 %v9488_v63, %v5092_v22  ;;  %v6033_v13 = vpop.f32.mrb[142].mxu1 }
 0x5eb   :  { %v5104_v9 = vadd.f32 %v6033_v13, %v9488_v63  ;;  %v5095_v15 = vpop.f32.mrb[143].mxu1  ;;  %v5185_v32 = vmax.f32 %v5101_v20, 0.0 }
 0x5ec   :  { %v5096_v30 = vadd.f32 %v9488_v63, %v5095_v15  ;;  %v5183_v39 = vmax.f32 %v5093_v11, 0.0 }
 0x5ed   :  { %v5186_v37 = vmax.f32 %v5104_v9, 0.0 }
 0x5ee   :  { %v5184_v45 = vmax.f32 %v5096_v30, 0.0  ;;  %v9525_v30 = vld [vmem:[%s9665_s10] ss:$0 sm:$0xff] }
 0x5ef   :  { %v5210_v48 = vpack.c.bf16 %v5186_v37, %v5185_v32 }
 0x5f0   :  { %v5209_v50 = vpack.c.bf16 %v5184_v45, %v5183_v39 }
 0x5f2   :  { %6078 = vmatprep.mubr.bf16.mxu1 %v5209_v50 }
 0x5f3   :  { %6079 = vmatmul.mubr.bf16.gmra.mrb[172].mxu1 %v5210_v48 }
 0x5f8   :  { %v6036_v51 = vpop.f32.mrb[144].mxu1 }
 0x5f9   :  { %v5117_v52 = vadd.f32 %v6036_v51, %v9488_v63  ;;  %v5108_v54 = vpop.f32.mrb[145].mxu1 }
 0x5fa   :  { %v5109_v58 = vadd.f32 %v9488_v63, %v5108_v54  ;;  %v6037_v59 = vpop.f32.mrb[146].mxu1 }
 0x5fb   :  { %v5120_v60 = vadd.f32 %v6037_v59, %v9488_v63  ;;  %v5111_v61 = vpop.f32.mrb[147].mxu1  ;;  %v5189_v2 = vmax.f32 %v5117_v52, 0.0 }
 0x5fc   :  { %v5112_v1 = vadd.f32 %v9488_v63, %v5111_v61  ;;  %v5187_v4 = vmax.f32 %v5109_v58, 0.0 }
 0x5fd   :  { %v5190_v3 = vmax.f32 %v5120_v60, 0.0 }
 0x5fe   :  { %v5188_v12 = vmax.f32 %v5112_v1, 0.0 }
 0x5ff   :  { %v5212_v21 = vpack.c.bf16 %v5190_v3, %v5189_v2 }
 0x600   :  { %v5211_v14 = vpack.c.bf16 %v5188_v12, %v5187_v4 }
 0x602   :  { %6082 = vmatprep.mubr.bf16.mxu1 %v5211_v14 }
 0x603   :  { %6083 = vmatmul.mubr.bf16.gmra.mrb[176].mxu1 %v5212_v21 }
 0x608   :  { %v6040_v40 = vpop.f32.mrb[148].mxu1 }
 0x609   :  { %v5133_v41 = vadd.f32 %v6040_v40, %v9488_v63  ;;  %v5124_v42 = vpop.f32.mrb[149].mxu1 }
 0x60a   :  { %v5125_v16 = vadd.f32 %v9488_v63, %v5124_v42  ;;  %v6041_v43 = vpop.f32.mrb[150].mxu1 }
 0x60b   :  { %v5136_v6 = vadd.f32 %v6041_v43, %v9488_v63  ;;  %v5127_v18 = vpop.f32.mrb[151].mxu1  ;;  %v5193_v7 = vmax.f32 %v5133_v41, 0.0 }
 0x60c   :  { %v5128_v23 = vadd.f32 %v9488_v63, %v5127_v18  ;;  %v5191_v26 = vmax.f32 %v5125_v16, 0.0 }
 0x60d   :  { %v5194_v24 = vmax.f32 %v5136_v6, 0.0 }
 0x60e   :  { %v5192_v5 = vmax.f32 %v5128_v23, 0.0 }
 0x60f   :  { %v5214_v46 = vpack.c.bf16 %v5194_v24, %v5193_v7 }
 0x610   :  { %v5213_v36 = vpack.c.bf16 %v5192_v5, %v5191_v26 }
 0x612   :  { %6086 = vmatprep.mubr.bf16.mxu1 %v5213_v36 }
 0x613   :  { %6087 = vmatmul.mubr.bf16.gmra.mrb[180].mxu1 %v5214_v46 }
 0x618   :  { %v6044_v44 = vpop.f32.mrb[152].mxu1 }
 0x619   :  { %v5149_v55 = vadd.f32 %v6044_v44, %v9488_v63  ;;  %v5140_v57 = vpop.f32.mrb[153].mxu1 }
 0x61a   :  { %v5141_v27 = vadd.f32 %v9488_v63, %v5140_v57  ;;  %v6045_v29 = vpop.f32.mrb[154].mxu1 }
 0x61b   :  { %v5152_v8 = vadd.f32 %v6045_v29, %v9488_v63  ;;  %v5143_v10 = vpop.f32.mrb[155].mxu1  ;;  %v5197_v56 = vmax.f32 %v5149_v55, 0.0 }
 0x61c   :  { %v5144_v53 = vadd.f32 %v9488_v63, %v5143_v10  ;;  %v5195_v31 = vmax.f32 %v5141_v27, 0.0 }
 0x61d   :  { %v5198_v35 = vmax.f32 %v5152_v8, 0.0 }
 0x61e   :  { %v5196_v34 = vmax.f32 %v5144_v53, 0.0 }
 0x61f   :  { %v5216_v38 = vpack.c.bf16 %v5198_v35, %v5197_v56 }
 0x620   :  { %v5215_v33 = vpack.c.bf16 %v5196_v34, %v5195_v31 }
 0x622   :  { %6090 = vmatprep.mubr.bf16.mxu1 %v5215_v33 }
 0x623   :  { %6091 = vmatmul.mubr.bf16.gmra.mrb[184].mxu1 %v5216_v38 }
 0x628   :  { %v6048_v17 = vpop.f32.mrb[156].mxu1 }
 0x629   :  { %v5165_v19 = vadd.f32 %v6048_v17, %v9488_v63  ;;  %v5156_v62 = vpop.f32.mrb[157].mxu1 }
 0x62a   :  { %v5157_v0 = vadd.f32 %v9488_v63, %v5156_v62  ;;  %v6049_v47 = vpop.f32.mrb[158].mxu1 }
 0x62b   :  { %v5168_v49 = vadd.f32 %v6049_v47, %v9488_v63  ;;  %v5159_v25 = vpop.f32.mrb[159].mxu1  ;;  %v5201_v20 = vmax.f32 %v5165_v19, 0.0 }
 0x62c   :  { %v5160_v28 = vadd.f32 %v9488_v63, %v5159_v25  ;;  %v5199_v11 = vmax.f32 %v5157_v0, 0.0 }
 0x62d   :  { %v5202_v22 = vmax.f32 %v5168_v49, 0.0 }
 0x62e   :  { %v5200_v13 = vmax.f32 %v5160_v28, 0.0 }
 0x62f   :  { %v5218_v9 = vpack.c.bf16 %v5202_v22, %v5201_v20 }
 0x630   :  { %v5217_v15 = vpack.c.bf16 %v5200_v13, %v5199_v11 }
 0x632   :  { %6094 = vmatprep.mubr.bf16.mxu1 %v5217_v15 }
 0x633   :  { %6095 = vmatmul.mubr.bf16.gmra.mrb[188].mxu1 %v5218_v9 }
 0x696   :  { %v6068_v32 = vpop.f32.mrb[160].mxu1 }
 0x697   :  { %v5333_v37 = vadd.f32 %v6068_v32, %v9525_v30  ;;  %v5324_v39 = vpop.f32.mrb[161].mxu1 }
 0x698   :  { %v5325_v45 = vadd.f32 %v9525_v30, %v5324_v39  ;;  %v6069_v63 = vpop.f32.mrb[162].mxu1 }
 0x699   :  { %5453 = vst [vmem:[%s9666_s11 + $0x10] sm:$0xff] %v5333_v37  ;;  %v5336_v48 = vadd.f32 %v6069_v63, %v9525_v30  ;;  %v5327_v50 = vpop.f32.mrb[163].mxu1 }
 0x69a   :  { %5451 = vst [vmem:[%s9666_s11] sm:$0xff] %v5325_v45  ;;  %v5328_v51 = vadd.f32 %v9525_v30, %v5327_v50 }
 0x69b   :  { %5454 = vst [vmem:[%s9666_s11 + $0x18] sm:$0xff] %v5336_v48 }
 0x69c   :  { %5452 = vst [vmem:[%s9666_s11 + $0x8] sm:$0xff] %v5328_v51 }
 0x6a6   :  { %v6072_v52 = vpop.f32.mrb[164].mxu1 }
 0x6a7   :  { %v5349_v54 = vadd.f32 %v6072_v52, %v9525_v30  ;;  %v5340_v58 = vpop.f32.mrb[165].mxu1 }
 0x6a8   :  { %v5341_v59 = vadd.f32 %v9525_v30, %v5340_v58  ;;  %v6073_v60 = vpop.f32.mrb[166].mxu1 }
 0x6a9   :  { %5457 = vst [vmem:[%s9666_s11 + $0x30] sm:$0xff] %v5349_v54  ;;  %v5352_v61 = vadd.f32 %v6073_v60, %v9525_v30  ;;  %v5343_v1 = vpop.f32.mrb[167].mxu1 }
 0x6aa   :  { %5455 = vst [vmem:[%s9666_s11 + $0x20] sm:$0xff] %v5341_v59  ;;  %v5344_v2 = vadd.f32 %v9525_v30, %v5343_v1 }
 0x6ab   :  { %5458 = vst [vmem:[%s9666_s11 + $0x38] sm:$0xff] %v5352_v61 }
 0x6ac   :  { %5456 = vst [vmem:[%s9666_s11 + $0x28] sm:$0xff] %v5344_v2 }
 0x6b6   :  { %v6076_v3 = vpop.f32.mrb[168].mxu1 }
 0x6b7   :  { %v5365_v4 = vadd.f32 %v6076_v3, %v9525_v30  ;;  %v5356_v12 = vpop.f32.mrb[169].mxu1 }
 0x6b8   :  { %v5357_v21 = vadd.f32 %v9525_v30, %v5356_v12  ;;  %v6077_v14 = vpop.f32.mrb[170].mxu1 }
 0x6b9   :  { %5461 = vst [vmem:[%s9666_s11 + $0x50] sm:$0xff] %v5365_v4  ;;  %v5368_v40 = vadd.f32 %v6077_v14, %v9525_v30  ;;  %v5359_v41 = vpop.f32.mrb[171].mxu1 }
 0x6ba   :  { %5459 = vst [vmem:[%s9666_s11 + $0x40] sm:$0xff] %v5357_v21  ;;  %v5360_v42 = vadd.f32 %v9525_v30, %v5359_v41 }
 0x6bb   :  { %5462 = vst [vmem:[%s9666_s11 + $0x58] sm:$0xff] %v5368_v40 }
 0x6bc   :  { %5460 = vst [vmem:[%s9666_s11 + $0x48] sm:$0xff] %v5360_v42 }
 0x6c6   :  { %v6080_v16 = vpop.f32.mrb[172].mxu1 }
 0x6c7   :  { %v5381_v43 = vadd.f32 %v6080_v16, %v9525_v30  ;;  %v5372_v6 = vpop.f32.mrb[173].mxu1 }
 0x6c8   :  { %v5373_v18 = vadd.f32 %v9525_v30, %v5372_v6  ;;  %v6081_v23 = vpop.f32.mrb[174].mxu1 }
 0x6c9   :  { %5465 = vst [vmem:[%s9666_s11 + $0x70] sm:$0xff] %v5381_v43  ;;  %v5384_v7 = vadd.f32 %v6081_v23, %v9525_v30  ;;  %v5375_v24 = vpop.f32.mrb[175].mxu1 }
 0x6ca   :  { %5463 = vst [vmem:[%s9666_s11 + $0x60] sm:$0xff] %v5373_v18  ;;  %v5376_v26 = vadd.f32 %v9525_v30, %v5375_v24 }
 0x6cb   :  { %5466 = vst [vmem:[%s9666_s11 + $0x78] sm:$0xff] %v5384_v7 }
 0x6cc   :  { %5464 = vst [vmem:[%s9666_s11 + $0x68] sm:$0xff] %v5376_v26 }
 0x6d6   :  { %v6084_v5 = vpop.f32.mrb[176].mxu1 }
 0x6d7   :  { %v5397_v46 = vadd.f32 %v6084_v5, %v9525_v30  ;;  %v5388_v36 = vpop.f32.mrb[177].mxu1 }
 0x6d8   :  { %v5389_v44 = vadd.f32 %v9525_v30, %v5388_v36  ;;  %v6085_v55 = vpop.f32.mrb[178].mxu1 }
 0x6d9   :  { %5469 = vst [vmem:[%s9666_s11 + $0x90] sm:$0xff] %v5397_v46  ;;  %v5400_v57 = vadd.f32 %v6085_v55, %v9525_v30  ;;  %v5391_v27 = vpop.f32.mrb[179].mxu1 }
 0x6da   :  { %5467 = vst [vmem:[%s9666_s11 + $0x80] sm:$0xff] %v5389_v44  ;;  %v5392_v29 = vadd.f32 %v9525_v30, %v5391_v27 }
 0x6db   :  { %5470 = vst [vmem:[%s9666_s11 + $0x98] sm:$0xff] %v5400_v57 }
 0x6dc   :  { %5468 = vst [vmem:[%s9666_s11 + $0x88] sm:$0xff] %v5392_v29 }
 0x6e6   :  { %v6088_v8 = vpop.f32.mrb[180].mxu1 }
 0x6e7   :  { %v5413_v10 = vadd.f32 %v6088_v8, %v9525_v30  ;;  %v5404_v53 = vpop.f32.mrb[181].mxu1 }
 0x6e8   :  { %v5405_v56 = vadd.f32 %v9525_v30, %v5404_v53  ;;  %v6089_v35 = vpop.f32.mrb[182].mxu1 }
 0x6e9   :  { %5473 = vst [vmem:[%s9666_s11 + $0xb0] sm:$0xff] %v5413_v10  ;;  %v5416_v31 = vadd.f32 %v6089_v35, %v9525_v30  ;;  %v5407_v34 = vpop.f32.mrb[183].mxu1 }
 0x6ea   :  { %5471 = vst [vmem:[%s9666_s11 + $0xa0] sm:$0xff] %v5405_v56  ;;  %v5408_v38 = vadd.f32 %v9525_v30, %v5407_v34 }
 0x6eb   :  { %5474 = vst [vmem:[%s9666_s11 + $0xb8] sm:$0xff] %v5416_v31 }
 0x6ec   :  { %5472 = vst [vmem:[%s9666_s11 + $0xa8] sm:$0xff] %v5408_v38 }
 0x6f6   :  { %v6092_v33 = vpop.f32.mrb[184].mxu1 }
 0x6f7   :  { %v5429_v17 = vadd.f32 %v6092_v33, %v9525_v30  ;;  %v5420_v19 = vpop.f32.mrb[185].mxu1 }
 0x6f8   :  { %v5421_v62 = vadd.f32 %v9525_v30, %v5420_v19  ;;  %v6093_v0 = vpop.f32.mrb[186].mxu1 }
 0x6f9   :  { %5477 = vst [vmem:[%s9666_s11 + $0xd0] sm:$0xff] %v5429_v17  ;;  %v5432_v47 = vadd.f32 %v6093_v0, %v9525_v30  ;;  %v5423_v49 = vpop.f32.mrb[187].mxu1 }
 0x6fa   :  { %5475 = vst [vmem:[%s9666_s11 + $0xc0] sm:$0xff] %v5421_v62  ;;  %v5424_v25 = vadd.f32 %v9525_v30, %v5423_v49 }
 0x6fb   :  { %5478 = vst [vmem:[%s9666_s11 + $0xd8] sm:$0xff] %v5432_v47 }
 0x6fc   :  { %5476 = vst [vmem:[%s9666_s11 + $0xc8] sm:$0xff] %v5424_v25 }
 0x706   :  { %v6096_v28 = vpop.f32.mrb[188].mxu1 }
 0x707   :  { %v5445_v20 = vadd.f32 %v6096_v28, %v9525_v30  ;;  %v5436_v22 = vpop.f32.mrb[189].mxu1 }
 0x708   :  { %v5437_v11 = vadd.f32 %v9525_v30, %v5436_v22  ;;  %v6097_v13 = vpop.f32.mrb[190].mxu1 }
 0x709   :  { %5481 = vst [vmem:[%s9666_s11 + $0xf0] sm:$0xff] %v5445_v20  ;;  %v5448_v9 = vadd.f32 %v6097_v13, %v9525_v30  ;;  %v5439_v15 = vpop.f32.mrb[191].mxu1 }
 0x70a   :  { %5479 = vst [vmem:[%s9666_s11 + $0xe0] sm:$0xff] %v5437_v11  ;;  %v5440_v32 = vadd.f32 %v9525_v30, %v5439_v15 }
 0x70b   :  { %5482 = vst [vmem:[%s9666_s11 + $0xf8] sm:$0xff] %v5448_v9 }
 0x70c   :  { %5480 = vst [vmem:[%s9666_s11 + $0xe8] sm:$0xff] %v5440_v32 }

</bundles_post_ra>
